<compile_context>
chip_gen: v7x
topology: tpu7x:2x2x1
jax: 0.10.0
libtpu: 0.0.40
codegen_flags: <defaults>
</compile_context>

<pallas_src>
import functools
import math

import jax
import jax.numpy as jnp
from jax import lax
from jax.experimental import pallas as pl
from jax.experimental.pallas import tpu as pltpu


# ----------------------------------------------------------------------------
# helpers
# ----------------------------------------------------------------------------
def _lane_group(D):
    """How many stem output rows to pack side-by-side so the lane dim is 128."""
    if D < 128 and 128 % D == 0:
        return 128 // D
    return 1


def _pick_tile_m(M, cap=2048):
    """Largest divisor of M that is a multiple of 8 and <= min(cap, M//2) (>=2 grid
    steps for v7x megacore).  Never silently falls back to the whole array unless
    the array is tiny, so scoped-VMEM limits cannot be blown by odd image sizes."""
    if M <= 128:
        return M
    limit = min(cap, M // 2)
    best = 0
    t = 8
    while t <= limit:
        if M % t == 0:
            best = t
        t += 8
    return best if best else M


def _block_diag(mats):
    rows = sum(m.shape[0] for m in mats)
    cols = sum(m.shape[1] for m in mats)
    out = jnp.zeros((rows, cols), mats[0].dtype)
    r = c = 0
    for m in mats:
        out = out.at[r:r + m.shape[0], c:c + m.shape[1]].set(m)
        r += m.shape[0]
        c += m.shape[1]
    return out


def _resident(arr):
    """BlockSpec for a weight that stays whole and resident across the grid."""
    zeros = (0,) * arr.ndim
    return pl.BlockSpec(arr.shape, lambda b, _z=zeros: _z)


# ----------------------------------------------------------------------------
# Kernel 1: fused stem (4x4/stride-4 conv, GELU) + 1x1 mix conv (GELU)
# ----------------------------------------------------------------------------
def _stem_mix_kernel(p_ref, ws_ref, bs_ref, wm_ref, bm_ref, o_ref):
    f32 = jnp.float32
    y = jnp.dot(p_ref[...], ws_ref[...], preferred_element_type=f32) + bs_ref[...]
    # TODO(synk): tanh-approx GELU (PyTorch default is erf-GELU; ~1e-3 divergence).
    y = jax.nn.gelu(y, approximate=True)
    y = jnp.dot(y.astype(jnp.bfloat16), wm_ref[...], preferred_element_type=f32) + bm_ref[...]
    y = jax.nn.gelu(y, approximate=True)
    o_ref[...] = y.astype(o_ref.dtype)


def stem_mix(patches, pk):
    M, K = patches.shape
    N = pk["stem_w"].shape[1]               # lane-dense output width (G*D = 128)
    tm = _pick_tile_m(M)
    grid = (M // tm,)
    return pl.pallas_call(
        _stem_mix_kernel,
        out_shape=jax.ShapeDtypeStruct((M, N), jnp.bfloat16),
        grid=grid,
        in_specs=[
            pl.BlockSpec((tm, K), lambda i: (i, 0)),
            pl.BlockSpec((K, N), lambda i: (0, 0)),
            pl.BlockSpec((1, N), lambda i: (0, 0)),
            pl.BlockSpec((N, N), lambda i: (0, 0)),
            pl.BlockSpec((1, N), lambda i: (0, 0)),
        ],
        out_specs=pl.BlockSpec((tm, N), lambda i: (i, 0)),
        compiler_params=pltpu.CompilerParams(dimension_semantics=("parallel",)),
    )(patches, pk["stem_w"], pk["stem_b"], pk["mix_w"], pk["mix_b"])


# ----------------------------------------------------------------------------
# Kernel 2: composite pool conv + query emb + step emb + PE + sequence assembly
# ----------------------------------------------------------------------------
def _prep_kernel(pool_ref, wc_ref, bc_ref, qcat_ref, wqe_ref, bqe_ref,
                 temb_ref, wst_ref, bst_ref, pe_ref, o_ref, *, seq_query, hw, l_pad):
    f32 = jnp.float32
    bf16 = jnp.bfloat16
    S = seq_query
    L = S + 1 + hw
    # image tokens (exact pool1 o pool2 as one 16x16/stride-16 conv)
    img_t = jnp.dot(pool_ref[...], wc_ref[...], preferred_element_type=f32) + bc_ref[...]
    # TODO(synk): Query_emb_model internals not specified; one Linear used.
    qf = jnp.dot(qcat_ref[...].astype(bf16), wqe_ref[...],
                 preferred_element_type=f32) + bqe_ref[...]
    # TODO(synk): StepEncoding internals not specified; sinusoid + Linear + GELU.
    tf = jnp.dot(temb_ref[...].astype(bf16), wst_ref[...],
                 preferred_element_type=f32) + bst_ref[...]
    tf = jax.nn.gelu(tf, approximate=True)
    # write each segment straight into the output block (static views, no concat)
    o_ref[0:S, :] = (qf + pe_ref[0:S, :]).astype(o_ref.dtype)
    o_ref[S:S + 1, :] = (tf + pe_ref[S:S + 1, :]).astype(o_ref.dtype)
    o_ref[S + 1:L, :] = (img_t + pe_ref[0:hw, :]).astype(o_ref.dtype)
    if l_pad > L:  # zero the sublane-pad tokens
        o_ref[L:l_pad, :] = jnp.zeros((l_pad - L, o_ref.shape[1]), o_ref.dtype)


def token_prep(pool_patches, qcat, temb, pe, pk, *, seq_query, hw, l_pad):
    B, _, Kp = pool_patches.shape
    S, Dq = qcat.shape[1], qcat.shape[2]
    D = pk["qemb_w"].shape[1]
    return pl.pallas_call(
        functools.partial(_prep_kernel, seq_query=seq_query, hw=hw, l_pad=l_pad),
        out_shape=jax.ShapeDtypeStruct((B, l_pad, D), jnp.float32),
        grid=(B,),
        in_specs=[
            pl.BlockSpec((None, hw, Kp), lambda b: (b, 0, 0)),
            _resident(pk["pool_w"]), _resident(pk["pool_b"]),
            pl.BlockSpec((None, S, Dq), lambda b: (b, 0, 0)),
            _resident(pk["qemb_w"]), _resident(pk["qemb_b"]),
            pl.BlockSpec((None, 1, D), lambda b: (b, 0, 0)),
            _resident(pk["step_w"]), _resident(pk["step_b"]),
            _resident(pe),
        ],
        out_specs=pl.BlockSpec((None, l_pad, D), lambda b: (b, 0, 0)),
        compiler_params=pltpu.CompilerParams(dimension_semantics=("parallel",)),
    )(pool_patches, pk["pool_w"], pk["pool_b"], qcat, pk["qemb_w"], pk["qemb_b"],
      temb, pk["step_w"], pk["step_b"], pe)


# ----------------------------------------------------------------------------
# Kernel 3: full transformer encoder stack + both output heads + residual
# ----------------------------------------------------------------------------
def _transformer_heads_kernel(x_ref, win_ref, bin_ref, wo_ref, bo_ref,
                              g1_ref, be1_ref, wf1_ref, bf1_ref, wf2_ref, bf2_ref,
                              g2_ref, be2_ref,
                              wh1_ref, bh1_ref, wh2_ref, bh2_ref, wh3_ref, bh3_ref,
                              qcat_ref, o_ref, ao_scr,
                              *, num_layers, num_heads, seq_query, seq_valid):
    f32 = jnp.float32
    bf16 = jnp.bfloat16
    Lp, D = x_ref.shape
    H = num_heads
    dh = D // H
    scale = 1.0 / math.sqrt(dh)
    S = seq_query
    L = seq_valid

    # key mask for the sublane-pad tokens (exp(-1e9 - max) underflows to 0)
    key_ids = lax.broadcasted_iota(jnp.int32, (1, Lp), 1)
    key_mask = jnp.where(key_ids < L, 0.0, -1e9).astype(f32)

    def layer_norm(v, g, bb):
        mu = jnp.mean(v, axis=-1, keepdims=True)
        vc = v - mu
        var = jnp.mean(vc * vc, axis=-1, keepdims=True)
        return vc * lax.rsqrt(var + 1e-5) * g + bb

    def layer_body(layer, x):
        xb = x.astype(bf16)
        # ONE fused QKV projection per layer (packed (D, 3D) weight)
        qkv = jnp.dot(xb, win_ref[layer], preferred_element_type=f32) + bin_ref[layer]
        qb = qkv[:, 0:D].astype(bf16)
        kb = qkv[:, D:2 * D].astype(bf16)
        vb = qkv[:, 2 * D:3 * D].astype(bf16)
        for h in range(H):                       # static, small H
            qh = qb[:, h * dh:(h + 1) * dh]
            kh = kb[:, h * dh:(h + 1) * dh]
            vh = vb[:, h * dh:(h + 1) * dh]
            s = lax.dot_general(qh, kh, (((1,), (1,)), ((), ())),
                                preferred_element_type=f32) * scale + key_mask
            s = s - jnp.max(s, axis=-1, keepdims=True)
            p = jnp.exp(s)
            p = p / jnp.sum(p, axis=-1, keepdims=True)     # exact reciprocal
            # head output stored at a static lane offset (no concat / XLU shuffle)
            ao_scr[:, h * dh:(h + 1) * dh] = jnp.dot(p.astype(bf16), vh,
                                                     preferred_element_type=f32)
        ao = jnp.dot(ao_scr[...].astype(bf16), wo_ref[layer],
                     preferred_element_type=f32) + bo_ref[layer]
        x = layer_norm(x + ao, g1_ref[layer], be1_ref[layer])          # post-norm
        ff = jax.nn.gelu(jnp.dot(x.astype(bf16), wf1_ref[layer],
                                 preferred_element_type=f32) + bf1_ref[layer],
                         approximate=True)
        ff = jnp.dot(ff.astype(bf16), wf2_ref[layer],
                     preferred_element_type=f32) + bf2_ref[layer]
        return layer_norm(x + ff, g2_ref[layer], be2_ref[layer])

    x = lax.fori_loop(0, num_layers, layer_body, x_ref[...].astype(f32))

    # output heads (both query keys packed side-by-side / block-diagonally)
    # TODO(synk): LinearBlock internals not specified; Linear + GELU used.
    motion = x[0:S, :]
    y = jax.nn.gelu(jnp.dot(motion.astype(bf16), wh1_ref[...],
                            preferred_element_type=f32) + bh1_ref[...], approximate=True)
    y = jax.nn.gelu(jnp.dot(y.astype(bf16), wh2_ref[...],
                            preferred_element_type=f32) + bh2_ref[...], approximate=True)
    y = jnp.dot(y.astype(bf16), wh3_ref[...], preferred_element_type=f32) + bh3_ref[...]
    o_ref[...] = (qcat_ref[...] + y).astype(o_ref.dtype)   # residual with raw query


def transformer_and_heads(tokens, qcat, pk, *, num_layers, num_heads,
                          seq_query, seq_valid):
    B, Lp, D = tokens.shape
    S, Dq = qcat.shape[1], qcat.shape[2]
    weights = [pk["attn_win"], pk["attn_bin"], pk["attn_wo"], pk["attn_bo"],
               pk["ln1_g"], pk["ln1_b"], pk["ff1_w"], pk["ff1_b"],
               pk["ff2_w"], pk["ff2_b"], pk["ln2_g"], pk["ln2_b"],
               pk["head_w1"], pk["head_b1"], pk["head_w2"], pk["head_b2"],
               pk["head_w3"], pk["head_b3"]]
    return pl.pallas_call(
        functools.partial(_transformer_heads_kernel, num_layers=num_layers,
                          num_heads=num_heads, seq_query=seq_query,
                          seq_valid=seq_valid),
        out_shape=jax.ShapeDtypeStruct((B, S, Dq), jnp.float32),
        grid=(B,),
        in_specs=[pl.BlockSpec((None, Lp, D), lambda b: (b, 0, 0))]
                 + [_resident(w) for w in weights]
                 + [pl.BlockSpec((None, S, Dq), lambda b: (b, 0, 0))],
        out_specs=pl.BlockSpec((None, S, Dq), lambda b: (b, 0, 0)),
        scratch_shapes=[pltpu.VMEM((Lp, D), jnp.float32)],
        compiler_params=pltpu.CompilerParams(dimension_semantics=("parallel",)),
    )(tokens, *weights, qcat)


# ----------------------------------------------------------------------------
# Plain-JAX glue (positional / timestep encodings, computed once per trace)
# ----------------------------------------------------------------------------
def positional_encoding_table(max_len, d_model):
    position = jnp.arange(max_len, dtype=jnp.float32)[:, None]
    div_term = jnp.exp(
        jnp.arange(0, d_model, 2, dtype=jnp.float32) * (-math.log(10000.0) / d_model))
    pe = jnp.zeros((max_len, d_model), jnp.float32)
    pe = pe.at[:, 0::2].set(jnp.sin(position * div_term))
    pe = pe.at[:, 1::2].set(jnp.cos(position * div_term))
    return pe


def timestep_embedding(t, dim):
    half = dim // 2
    freqs = jnp.exp(-math.log(10000.0) * jnp.arange(half, dtype=jnp.float32) / half)
    args = t.astype(jnp.float32)[:, None] * freqs[None, :]
    return jnp.concatenate([jnp.sin(args), jnp.cos(args)], axis=-1)


# ----------------------------------------------------------------------------
# Config, raw params, one-time packing
# ----------------------------------------------------------------------------
class Config:
    query_keys = ("pose", "trans")
    query_dims = (6, 3)
    input_dim = 4
    img_size = 128
    emb_dim = 32      # query_emb_dim == predictor latent_dim (scaled down from 256)
    num_heads = 4
    ff_size = 64      # scaled down from 1024
    num_layers = 2    # scaled down from 8


def init_params(key, cfg):
    D = cfg.emb_dim
    keys = iter(jax.random.split(key, 64))

    def dense(k_in, k_out):
        w = jax.random.normal(next(keys), (k_in, k_out), jnp.float32) / math.sqrt(k_in)
        return w, jnp.zeros((k_out,), jnp.float32)

    def conv(cin, cout, ksz):
        fan_in = cin * ksz * ksz
        w = jax.random.normal(next(keys), (cout, cin, ksz, ksz), jnp.float32) / math.sqrt(fan_in)
        return w, jnp.zeros((cout,), jnp.float32)

    p = {}
    # TODO(synk): Resnet_Like_Encoder / Resnet_Like_Decoder definitions were not
    # provided; (enc o dec) is approximated by a stride-4 patchify conv + a 1x1
    # mixing conv producing an emb_dim feature map at stride 4.
    p["stem_w"], p["stem_b"] = conv(cfg.input_dim, D, 4)
    p["mix_w"], p["mix_b"] = conv(D, D, 1)
    # pool = Sequential(Conv2d(emb,emb,4,stride=4), Conv2d(emb,emb,4,stride=4)) -- exact.
    p["pool1_w"], p["pool1_b"] = conv(D, D, 4)
    p["pool2_w"], p["pool2_b"] = conv(D, D, 4)
    p["qemb_w"], p["qemb_b"] = dense(sum(cfg.query_dims), D)
    p["step_w"], p["step_b"] = dense(D, D)

    layers = []
    for _ in range(cfg.num_layers):
        lp = {}
        lp["in_proj_w"], lp["in_proj_b"] = dense(D, 3 * D)
        lp["out_proj_w"], lp["out_proj_b"] = dense(D, D)
        lp["ff1_w"], lp["ff1_b"] = dense(D, cfg.ff_size)
        lp["ff2_w"], lp["ff2_b"] = dense(cfg.ff_size, D)
        lp["ln1_g"], lp["ln1_b"] = jnp.ones((D,), jnp.float32), jnp.zeros((D,), jnp.float32)
        lp["ln2_g"], lp["ln2_b"] = jnp.ones((D,), jnp.float32), jnp.zeros((D,), jnp.float32)
        layers.append(lp)
    p["layers"] = layers

    heads = {}
    for key_name, dim in zip(cfg.query_keys, cfg.query_dims):
        h = {}
        h["w1"], h["b1"] = dense(D, D // 2)
        h["w2"], h["b2"] = dense(D // 2, D // 2)
        h["w3"], h["b3"] = dense(D // 2, dim)
        heads[key_name] = h
    p["heads"] = heads
    return p


def pack_params(p, cfg):
    """One-time weight packing (outside the hot path): block-diagonal stem/mix for a
    lane-dense 128-wide kernel-1 output, exact pool1 o pool2 composition, packed QKV,
    stacked per-layer weights for fori_loop, packed output heads, bf16."""
    f32 = jnp.float32
    bf16 = jnp.bfloat16
    D = cfg.emb_dim
    Cin = cfg.input_dim
    G = _lane_group(D)
    pk = {}

    # stem / mix (patch column order is (kh, kw, cin)); G-way block-diagonal so that
    # G consecutive patch rows become one 128-lane output row (unmasked stores).
    stem = p["stem_w"].transpose(2, 3, 1, 0).reshape(4 * 4 * Cin, D)
    mix = p["mix_w"].reshape(D, D).T
    pk["stem_w"] = _block_diag([stem] * G).astype(bf16)                  # (G*16*Cin, G*D)
    pk["stem_b"] = jnp.tile(p["stem_b"], G).reshape(1, G * D).astype(f32)
    pk["mix_w"] = _block_diag([mix] * G).astype(bf16)                    # (G*D, G*D)
    pk["mix_b"] = jnp.tile(p["mix_b"], G).reshape(1, G * D).astype(f32)

    # pool1 o pool2 (both linear, no activation between) composed exactly into one
    # 16x16 / stride-16 conv on the mix output.
    # TODO(synk): at emb_dim=256 pool_w is ~32 MiB bf16 -> K-tile this contraction.
    w1, b1 = p["pool1_w"], p["pool1_b"]
    w2, b2 = p["pool2_w"], p["pool2_b"]
    wc = jnp.einsum("ocij,cdkl->odikjl", w2, w1).reshape(D, D, 16, 16)
    bc = b2 + jnp.einsum("ocij,c->o", w2, b1)
    pk["pool_w"] = wc.transpose(2, 3, 1, 0).reshape(16 * 16 * D, D).astype(bf16)
    pk["pool_b"] = bc.reshape(1, D).astype(f32)

    pk["qemb_w"] = p["qemb_w"].astype(bf16)
    pk["qemb_b"] = p["qemb_b"].reshape(1, D).astype(f32)
    pk["step_w"] = p["step_w"].astype(bf16)
    pk["step_b"] = p["step_b"].reshape(1, D).astype(f32)

    # transformer layers: packed QKV, stacked along a leading layer axis.
    win, binb, wo, bo, g1, be1, wf1, bf1, wf2, bf2, g2, be2 = ([] for _ in range(12))
    for lp in p["layers"]:
        win.append(lp["in_proj_w"])                         # (D, 3D)
        binb.append(lp["in_proj_b"].reshape(1, 3 * D))
        wo.append(lp["out_proj_w"]); bo.append(lp["out_proj_b"].reshape(1, D))
        g1.append(lp["ln1_g"].reshape(1, D)); be1.append(lp["ln1_b"].reshape(1, D))
        wf1.append(lp["ff1_w"]); bf1.append(lp["ff1_b"].reshape(1, -1))
        wf2.append(lp["ff2_w"]); bf2.append(lp["ff2_b"].reshape(1, D))
        g2.append(lp["ln2_g"].reshape(1, D)); be2.append(lp["ln2_b"].reshape(1, D))
    pk["attn_win"] = jnp.stack(win).astype(bf16)            # (nl, D, 3D)
    pk["attn_bin"] = jnp.stack(binb).astype(f32)            # (nl, 1, 3D)
    pk["attn_wo"] = jnp.stack(wo).astype(bf16)
    pk["attn_bo"] = jnp.stack(bo).astype(f32)
    pk["ln1_g"] = jnp.stack(g1).astype(f32)
    pk["ln1_b"] = jnp.stack(be1).astype(f32)
    pk["ff1_w"] = jnp.stack(wf1).astype(bf16)               # (nl, D, F)
    pk["ff1_b"] = jnp.stack(bf1).astype(f32)
    pk["ff2_w"] = jnp.stack(wf2).astype(bf16)               # (nl, F, D)
    pk["ff2_b"] = jnp.stack(bf2).astype(f32)
    pk["ln2_g"] = jnp.stack(g2).astype(f32)
    pk["ln2_b"] = jnp.stack(be2).astype(f32)

    # output heads: w1 side-by-side, w2/w3 block-diagonal -> one matmul chain for all keys.
    keys = cfg.query_keys
    pk["head_w1"] = jnp.concatenate([p["heads"][k]["w1"] for k in keys], axis=1).astype(bf16)
    pk["head_b1"] = jnp.concatenate([p["heads"][k]["b1"] for k in keys]).reshape(1, -1).astype(f32)
    pk["head_w2"] = _block_diag([p["heads"][k]["w2"] for k in keys]).astype(bf16)
    pk["head_b2"] = jnp.concatenate([p["heads"][k]["b2"] for k in keys]).reshape(1, -1).astype(f32)
    pk["head_w3"] = _block_diag([p["heads"][k]["w3"] for k in keys]).astype(bf16)
    pk["head_b3"] = jnp.concatenate([p["heads"][k]["b3"] for k in keys]).reshape(1, -1).astype(f32)
    return pk


# ----------------------------------------------------------------------------
# Forward
# ----------------------------------------------------------------------------
def convpool_forward(pk, cfg, img, query, time_step):
    D = cfg.emb_dim
    Cin = cfg.input_dim
    G = _lane_group(D)
    B, _, Hpix, Wpix = img.shape
    assert Hpix % 64 == 0 and Wpix % 64 == 0, "need img_size divisible by 64 (4*4*4)"
    OH, OW = Hpix // 64, Wpix // 64
    hw = OH * OW

    # im2col for the 4x4/stride-4 stem, rows grouped as (b, OH, OW, ph, pw) so the
    # pool stage is a free row-major reshape afterwards; G consecutive patch rows
    # are folded into one 256-column row so kernel 1 stays lane-dense end to end.
    # TODO(synk): fold this strip extraction into kernel 1 via BlockSpec over image
    # row bands to remove the host-side HBM shuffle; bf16 cast halves its bytes.
    patches = img.astype(jnp.bfloat16).reshape(B, Cin, OH, 16, 4, OW, 16, 4)
    patches = patches.transpose(0, 2, 5, 3, 6, 4, 7, 1)    # (B,OH,OW,ph,pw,kh,kw,Cin)
    patches = patches.reshape(B * hw * 256 // G, G * 16 * Cin)

    feat = stem_mix(patches, pk)                            # (M/G, G*D) bf16 lane-dense
    pool_patches = feat.reshape(B, hw, 16 * 16 * D)         # free row-major reshape

    qcat = jnp.concatenate([query[k] for k in cfg.query_keys], axis=-1).astype(jnp.float32)
    S = qcat.shape[1]
    L = S + 1 + hw
    Lp = ((L + 7) // 8) * 8                                 # sublane-pad the sequence
    temb = timestep_embedding(time_step, D).reshape(B, 1, D)
    pe = positional_encoding_table(max(S + 1, hw), D)       # trace-time constant

    # img_guidance_rate = 1.0 -> image tokens always concatenated (as in reference).
    tokens = token_prep(pool_patches, qcat, temb, pe, pk,
                        seq_query=S, hw=hw, l_pad=Lp)                     # (B,Lp,D)
    out = transformer_and_heads(tokens, qcat, pk, num_layers=cfg.num_layers,
                                num_heads=cfg.num_heads, seq_query=S,
                                seq_valid=L)                              # (B,S,9)

    res, off = {}, 0
    for k, dim in zip(cfg.query_keys, cfg.query_dims):
        res[k] = out[:, :, off:off + dim]
        off += dim
    return res


# ----------------------------------------------------------------------------
if __name__ == "__main__":
    cfg = Config()
    root = jax.random.PRNGKey(0)
    kp, ki, kq1, kq2, kt = jax.random.split(root, 5)

    params = init_params(kp, cfg)
    packed = pack_params(params, cfg)   # one-time packing, outside the hot path

    B = 2
    nframes = 8
    img = jax.random.normal(ki, (B, cfg.input_dim, cfg.img_size, cfg.img_size), jnp.float32)
    query = {
        "pose": jax.random.normal(kq1, (B, nframes, cfg.query_dims[0]), jnp.float32),
        "trans": jax.random.normal(kq2, (B, nframes, cfg.query_dims[1]), jnp.float32),
    }
    time_step = jax.random.uniform(kt, (B,), jnp.float32)

    fwd = jax.jit(functools.partial(convpool_forward, packed, cfg))
    out = fwd(img, query, time_step)
    out = jax.block_until_ready(out)

    for k, dim in zip(cfg.query_keys, cfg.query_dims):
        assert out[k].shape == (B, nframes, dim), out[k].shape
        assert bool(jnp.all(jnp.isfinite(out[k])))
    print("KERNEL_OK")
</pallas_src>

<mosaic_0001>
module attributes {stable_mosaic.version = 11 : i64} {
  func.func @_stem_mix_kernel(%arg0: i32, %arg1: memref<256x256xbf16, #tpu.memory_space<vmem>>, %arg2: memref<256x128xbf16, #tpu.memory_space<vmem>>, %arg3: memref<1x128xf32, #tpu.memory_space<vmem>>, %arg4: memref<128x128xbf16, #tpu.memory_space<vmem>>, %arg5: memref<1x128xf32, #tpu.memory_space<vmem>>, %arg6: memref<256x128xbf16, #tpu.memory_space<vmem>>) attributes {dimension_semantics = [#tpu.dimension_semantics<parallel>], iteration_bounds = array<i64: 2>, scalar_prefetch = 0 : i64, scratch_operands = 0 : i64, tpu.core_type = #tpu.core_type<tc>, window_params = [{transform_indices = @transform_0, window_bounds = array<i64: 256, 256>}, {pipeline_mode = #tpu.pipeline_mode<synchronous>, transform_indices = @transform_1, window_bounds = array<i64: 256, 128>}, {pipeline_mode = #tpu.pipeline_mode<synchronous>, transform_indices = @transform_2, window_bounds = array<i64: 1, 128>}, {pipeline_mode = #tpu.pipeline_mode<synchronous>, transform_indices = @transform_3, window_bounds = array<i64: 128, 128>}, {pipeline_mode = #tpu.pipeline_mode<synchronous>, transform_indices = @transform_4, window_bounds = array<i64: 1, 128>}, {transform_indices = @transform_5, window_bounds = array<i64: 256, 128>}]} {
    %c0 = arith.constant 0 : index
    %c0_0 = arith.constant 0 : index
    %0 = vector.load %arg1[%c0, %c0_0] : memref<256x256xbf16, #tpu.memory_space<vmem>>, vector<256x256xbf16>
    %c0_1 = arith.constant 0 : index
    %c0_2 = arith.constant 0 : index
    %1 = vector.load %arg2[%c0_1, %c0_2] : memref<256x128xbf16, #tpu.memory_space<vmem>>, vector<256x128xbf16>
    %cst = arith.constant dense<0.000000e+00> : vector<256x128xf32>
    %2 = tpu.matmul %0, %1, %cst {dimension_numbers = #tpu.dot_dimension_numbers<[1], [0], [0], [1], [0, 0, 1, 1], [], []>} : vector<256x256xbf16>, vector<256x128xbf16>, vector<256x128xf32> -> vector<256x128xf32>
    %c0_3 = arith.constant 0 : index
    %c0_4 = arith.constant 0 : index
    %3 = vector.load %arg3[%c0_3, %c0_4] : memref<1x128xf32, #tpu.memory_space<vmem>>, vector<1x128xf32>
    %4 = vector.broadcast %3 : vector<1x128xf32> to vector<256x128xf32>
    %5 = arith.addf %2, %4 : vector<256x128xf32>
    %6 = arith.mulf %5, %5 : vector<256x128xf32>
    %7 = arith.mulf %5, %6 : vector<256x128xf32>
    %cst_5 = arith.constant 4.471500e-02 : f32
    %8 = vector.broadcast %cst_5 : f32 to vector<256x128xf32>
    %9 = arith.mulf %8, %7 : vector<256x128xf32>
    %10 = arith.addf %5, %9 : vector<256x128xf32>
    %cst_6 = arith.constant 0.797884583 : f32
    %11 = vector.broadcast %cst_6 : f32 to vector<256x128xf32>
    %12 = arith.mulf %11, %10 : vector<256x128xf32>
    %13 = math.tanh %12 : vector<256x128xf32>
    %cst_7 = arith.constant 1.000000e+00 : f32
    %14 = vector.broadcast %cst_7 : f32 to vector<256x128xf32>
    %15 = arith.addf %14, %13 : vector<256x128xf32>
    %cst_8 = arith.constant 5.000000e-01 : f32
    %16 = vector.broadcast %cst_8 : f32 to vector<256x128xf32>
    %17 = arith.mulf %16, %15 : vector<256x128xf32>
    %18 = arith.mulf %5, %17 : vector<256x128xf32>
    %19 = arith.truncf %18 : vector<256x128xf32> to vector<256x128xbf16>
    %c0_9 = arith.constant 0 : index
    %c0_10 = arith.constant 0 : index
    %20 = vector.load %arg4[%c0_9, %c0_10] : memref<128x128xbf16, #tpu.memory_space<vmem>>, vector<128x128xbf16>
    %cst_11 = arith.constant dense<0.000000e+00> : vector<256x128xf32>
    %21 = tpu.matmul %19, %20, %cst_11 {dimension_numbers = #tpu.dot_dimension_numbers<[1], [0], [0], [1], [0, 0, 1, 1], [], []>} : vector<256x128xbf16>, vector<128x128xbf16>, vector<256x128xf32> -> vector<256x128xf32>
    %c0_12 = arith.constant 0 : index
    %c0_13 = arith.constant 0 : index
    %22 = vector.load %arg5[%c0_12, %c0_13] : memref<1x128xf32, #tpu.memory_space<vmem>>, vector<1x128xf32>
    %23 = vector.broadcast %22 : vector<1x128xf32> to vector<256x128xf32>
    %24 = arith.addf %21, %23 : vector<256x128xf32>
    %25 = arith.mulf %24, %24 : vector<256x128xf32>
    %26 = arith.mulf %24, %25 : vector<256x128xf32>
    %cst_14 = arith.constant 4.471500e-02 : f32
    %27 = vector.broadcast %cst_14 : f32 to vector<256x128xf32>
    %28 = arith.mulf %27, %26 : vector<256x128xf32>
    %29 = arith.addf %24, %28 : vector<256x128xf32>
    %cst_15 = arith.constant 0.797884583 : f32
    %30 = vector.broadcast %cst_15 : f32 to vector<256x128xf32>
    %31 = arith.mulf %30, %29 : vector<256x128xf32>
    %32 = math.tanh %31 : vector<256x128xf32>
    %cst_16 = arith.constant 1.000000e+00 : f32
    %33 = vector.broadcast %cst_16 : f32 to vector<256x128xf32>
    %34 = arith.addf %33, %32 : vector<256x128xf32>
    %cst_17 = arith.constant 5.000000e-01 : f32
    %35 = vector.broadcast %cst_17 : f32 to vector<256x128xf32>
    %36 = arith.mulf %35, %34 : vector<256x128xf32>
    %37 = arith.mulf %24, %36 : vector<256x128xf32>
    %38 = arith.truncf %37 : vector<256x128xf32> to vector<256x128xbf16>
    %c0_18 = arith.constant 0 : index
    %c0_19 = arith.constant 0 : index
    %39 = vector.load %arg6[%c0_18, %c0_19] : memref<256x128xbf16, #tpu.memory_space<vmem>>, vector<256x128xbf16>
    tpu.vector_store %arg6[%c0_18, %c0_19], %38 {strides = array<i32>} : memref<256x128xbf16, #tpu.memory_space<vmem>>, vector<256x128xbf16>,
    return
  }
  func.func @transform_0(%arg0: i32) -> (i32, i32) {
    %c0_i32 = arith.constant 0 : i32
    %c0_i32_0 = arith.constant 0 : i32
    return %arg0, %c0_i32 : i32, i32
  }
  func.func @transform_1(%arg0: i32) -> (i32, i32) {
    %c0_i32 = arith.constant 0 : i32
    %c0_i32_0 = arith.constant 0 : i32
    %c0_i32_1 = arith.constant 0 : i32
    return %c0_i32, %c0_i32_0 : i32, i32
  }
  func.func @transform_2(%arg0: i32) -> (i32, i32) {
    %c0_i32 = arith.constant 0 : i32
    %c0_i32_0 = arith.constant 0 : i32
    %c0_i32_1 = arith.constant 0 : i32
    return %c0_i32, %c0_i32_0 : i32, i32
  }
  func.func @transform_3(%arg0: i32) -> (i32, i32) {
    %c0_i32 = arith.constant 0 : i32
    %c0_i32_0 = arith.constant 0 : i32
    %c0_i32_1 = arith.constant 0 : i32
    return %c0_i32, %c0_i32_0 : i32, i32
  }
  func.func @transform_4(%arg0: i32) -> (i32, i32) {
    %c0_i32 = arith.constant 0 : i32
    %c0_i32_0 = arith.constant 0 : i32
    %c0_i32_1 = arith.constant 0 : i32
    return %c0_i32, %c0_i32_0 : i32, i32
  }
  func.func @transform_5(%arg0: i32) -> (i32, i32) {
    %c0_i32 = arith.constant 0 : i32
    %c0_i32_0 = arith.constant 0 : i32
    return %arg0, %c0_i32 : i32, i32
  }
}

module attributes {stable_mosaic.version = 11 : i64} {
  func.func @_prep_kernel(%arg0: i32, %arg1: memref<1x4x8192xbf16, #tpu.memory_space<vmem>>, %arg2: memref<8192x32xbf16, #tpu.memory_space<vmem>>, %arg3: memref<1x32xf32, #tpu.memory_space<vmem>>, %arg4: memref<1x8x9xf32, #tpu.memory_space<vmem>>, %arg5: memref<9x32xbf16, #tpu.memory_space<vmem>>, %arg6: memref<1x32xf32, #tpu.memory_space<vmem>>, %arg7: memref<1x1x32xf32, #tpu.memory_space<vmem>>, %arg8: memref<32x32xbf16, #tpu.memory_space<vmem>>, %arg9: memref<1x32xf32, #tpu.memory_space<vmem>>, %arg10: memref<9x32xf32, #tpu.memory_space<vmem>>, %arg11: memref<1x16x32xf32, #tpu.memory_space<vmem>>) attributes {dimension_semantics = [#tpu.dimension_semantics<parallel>], iteration_bounds = array<i64: 2>, scalar_prefetch = 0 : i64, scratch_operands = 0 : i64, tpu.core_type = #tpu.core_type<tc>, window_params = [{transform_indices = @transform_0, window_bounds = array<i64: 1, 4, 8192>}, {pipeline_mode = #tpu.pipeline_mode<synchronous>, transform_indices = @transform_1, window_bounds = array<i64: 8192, 32>}, {pipeline_mode = #tpu.pipeline_mode<synchronous>, transform_indices = @transform_2, window_bounds = array<i64: 1, 32>}, {transform_indices = @transform_3, window_bounds = array<i64: 1, 8, 9>}, {pipeline_mode = #tpu.pipeline_mode<synchronous>, transform_indices = @transform_4, window_bounds = array<i64: 9, 32>}, {pipeline_mode = #tpu.pipeline_mode<synchronous>, transform_indices = @transform_5, window_bounds = array<i64: 1, 32>}, {transform_indices = @transform_6, window_bounds = array<i64: 1, 1, 32>}, {pipeline_mode = #tpu.pipeline_mode<synchronous>, transform_indices = @transform_7, window_bounds = array<i64: 32, 32>}, {pipeline_mode = #tpu.pipeline_mode<synchronous>, transform_indices = @transform_8, window_bounds = array<i64: 1, 32>}, {pipeline_mode = #tpu.pipeline_mode<synchronous>, transform_indices = @transform_9, window_bounds = array<i64: 9, 32>}, {transform_indices = @transform_10, window_bounds = array<i64: 1, 16, 32>}]} {
    %c0 = arith.constant 0 : index
    %c0_0 = arith.constant 0 : index
    %c0_1 = arith.constant 0 : index
    %0 = vector.load %arg1[%c0, %c0_0, %c0_1] : memref<1x4x8192xbf16, #tpu.memory_space<vmem>>, vector<1x4x8192xbf16>
    %1 = vector.shape_cast %0 : vector<1x4x8192xbf16> to vector<4x8192xbf16>
    %c0_2 = arith.constant 0 : index
    %c0_3 = arith.constant 0 : index
    %2 = vector.load %arg2[%c0_2, %c0_3] : memref<8192x32xbf16, #tpu.memory_space<vmem>>, vector<8192x32xbf16>
    %cst = arith.constant dense<0.000000e+00> : vector<4x32xf32>
    %3 = tpu.matmul %1, %2, %cst {dimension_numbers = #tpu.dot_dimension_numbers<[1], [0], [0], [1], [0, 0, 1, 1], [], []>} : vector<4x8192xbf16>, vector<8192x32xbf16>, vector<4x32xf32> -> vector<4x32xf32>
    %c0_4 = arith.constant 0 : index
    %c0_5 = arith.constant 0 : index
    %4 = vector.load %arg3[%c0_4, %c0_5] : memref<1x32xf32, #tpu.memory_space<vmem>>, vector<1x32xf32>
    %5 = vector.broadcast %4 : vector<1x32xf32> to vector<4x32xf32>
    %6 = arith.addf %3, %5 : vector<4x32xf32>
    %c0_6 = arith.constant 0 : index
    %c0_7 = arith.constant 0 : index
    %c0_8 = arith.constant 0 : index
    %7 = vector.load %arg4[%c0_6, %c0_7, %c0_8] : memref<1x8x9xf32, #tpu.memory_space<vmem>>, vector<1x8x9xf32>
    %8 = vector.shape_cast %7 : vector<1x8x9xf32> to vector<8x9xf32>
    %9 = arith.truncf %8 : vector<8x9xf32> to vector<8x9xbf16>
    %c0_9 = arith.constant 0 : index
    %c0_10 = arith.constant 0 : index
    %10 = vector.load %arg5[%c0_9, %c0_10] : memref<9x32xbf16, #tpu.memory_space<vmem>>, vector<9x32xbf16>
    %cst_11 = arith.constant dense<0.000000e+00> : vector<8x32xf32>
    %11 = tpu.matmul %9, %10, %cst_11 {dimension_numbers = #tpu.dot_dimension_numbers<[1], [0], [0], [1], [0, 0, 1, 1], [], []>} : vector<8x9xbf16>, vector<9x32xbf16>, vector<8x32xf32> -> vector<8x32xf32>
    %c0_12 = arith.constant 0 : index
    %c0_13 = arith.constant 0 : index
    %12 = vector.load %arg6[%c0_12, %c0_13] : memref<1x32xf32, #tpu.memory_space<vmem>>, vector<1x32xf32>
    %13 = vector.broadcast %12 : vector<1x32xf32> to vector<8x32xf32>
    %14 = arith.addf %11, %13 : vector<8x32xf32>
    %c0_14 = arith.constant 0 : index
    %c0_15 = arith.constant 0 : index
    %c0_16 = arith.constant 0 : index
    %15 = vector.load %arg7[%c0_14, %c0_15, %c0_16] : memref<1x1x32xf32, #tpu.memory_space<vmem>>, vector<1x1x32xf32>
    %16 = vector.shape_cast %15 : vector<1x1x32xf32> to vector<1x32xf32>
    %17 = arith.truncf %16 : vector<1x32xf32> to vector<1x32xbf16>
    %c0_17 = arith.constant 0 : index
    %c0_18 = arith.constant 0 : index
    %18 = vector.load %arg8[%c0_17, %c0_18] : memref<32x32xbf16, #tpu.memory_space<vmem>>, vector<32x32xbf16>
    %cst_19 = arith.constant dense<0.000000e+00> : vector<1x32xf32>
    %19 = tpu.matmul %17, %18, %cst_19 {dimension_numbers = #tpu.dot_dimension_numbers<[1], [0], [0], [1], [0, 0, 1, 1], [], []>} : vector<1x32xbf16>, vector<32x32xbf16>, vector<1x32xf32> -> vector<1x32xf32>
    %c0_20 = arith.constant 0 : index
    %c0_21 = arith.constant 0 : index
    %20 = vector.load %arg9[%c0_20, %c0_21] : memref<1x32xf32, #tpu.memory_space<vmem>>, vector<1x32xf32>
    %21 = arith.addf %19, %20 : vector<1x32xf32>
    %22 = arith.mulf %21, %21 : vector<1x32xf32>
    %23 = arith.mulf %21, %22 : vector<1x32xf32>
    %cst_22 = arith.constant 4.471500e-02 : f32
    %24 = vector.broadcast %cst_22 : f32 to vector<1x32xf32>
    %25 = arith.mulf %24, %23 : vector<1x32xf32>
    %26 = arith.addf %21, %25 : vector<1x32xf32>
    %cst_23 = arith.constant 0.797884583 : f32
    %27 = vector.broadcast %cst_23 : f32 to vector<1x32xf32>
    %28 = arith.mulf %27, %26 : vector<1x32xf32>
    %29 = math.tanh %28 : vector<1x32xf32>
    %cst_24 = arith.constant 1.000000e+00 : f32
    %30 = vector.broadcast %cst_24 : f32 to vector<1x32xf32>
    %31 = arith.addf %30, %29 : vector<1x32xf32>
    %cst_25 = arith.constant 5.000000e-01 : f32
    %32 = vector.broadcast %cst_25 : f32 to vector<1x32xf32>
    %33 = arith.mulf %32, %31 : vector<1x32xf32>
    %34 = arith.mulf %21, %33 : vector<1x32xf32>
    %c0_26 = arith.constant 0 : index
    %c0_27 = arith.constant 0 : index
    %35 = vector.load %arg10[%c0_26, %c0_27] : memref<9x32xf32, #tpu.memory_space<vmem>>, vector<8x32xf32>
    %36 = arith.addf %14, %35 : vector<8x32xf32>
    %c0_28 = arith.constant 0 : index
    %c0_29 = arith.constant 0 : index
    %c0_30 = arith.constant 0 : index
    %37 = vector.load %arg11[%c0_28, %c0_29, %c0_30] : memref<1x16x32xf32, #tpu.memory_space<vmem>>, vector<1x8x32xf32>
    %38 = vector.shape_cast %37 : vector<1x8x32xf32> to vector<8x32xf32>
    %39 = vector.shape_cast %36 : vector<8x32xf32> to vector<1x8x32xf32>
    tpu.vector_store %arg11[%c0_28, %c0_29, %c0_30], %39 {strides = array<i32>} : memref<1x16x32xf32, #tpu.memory_space<vmem>>, vector<1x8x32xf32>,
    %c8 = arith.constant 8 : index
    %c0_31 = arith.constant 0 : index
    %40 = vector.load %arg10[%c8, %c0_31] : memref<9x32xf32, #tpu.memory_space<vmem>>, vector<1x32xf32>
    %41 = arith.addf %34, %40 : vector<1x32xf32>
    %c0_32 = arith.constant 0 : index
    %c8_33 = arith.constant 8 : index
    %c0_34 = arith.constant 0 : index
    %42 = vector.load %arg11[%c0_32, %c8_33, %c0_34] : memref<1x16x32xf32, #tpu.memory_space<vmem>>, vector<1x1x32xf32>
    %43 = vector.shape_cast %42 : vector<1x1x32xf32> to vector<1x32xf32>
    %44 = vector.shape_cast %41 : vector<1x32xf32> to vector<1x1x32xf32>
    tpu.vector_store %arg11[%c0_32, %c8_33, %c0_34], %44 {strides = array<i32>} : memref<1x16x32xf32, #tpu.memory_space<vmem>>, vector<1x1x32xf32>,
    %c0_35 = arith.constant 0 : index
    %c0_36 = arith.constant 0 : index
    %45 = vector.load %arg10[%c0_35, %c0_36] : memref<9x32xf32, #tpu.memory_space<vmem>>, vector<4x32xf32>
    %46 = arith.addf %6, %45 : vector<4x32xf32>
    %c0_37 = arith.constant 0 : index
    %c9 = arith.constant 9 : index
    %c0_38 = arith.constant 0 : index
    %47 = vector.load %arg11[%c0_37, %c9, %c0_38] : memref<1x16x32xf32, #tpu.memory_space<vmem>>, vector<1x4x32xf32>
    %48 = vector.shape_cast %47 : vector<1x4x32xf32> to vector<4x32xf32>
    %49 = vector.shape_cast %46 : vector<4x32xf32> to vector<1x4x32xf32>
    tpu.vector_store %arg11[%c0_37, %c9, %c0_38], %49 {strides = array<i32>} : memref<1x16x32xf32, #tpu.memory_space<vmem>>, vector<1x4x32xf32>,
    %cst_39 = arith.constant 0.000000e+00 : f32
    %50 = vector.broadcast %cst_39 : f32 to vector<3x32xf32>
    %c0_40 = arith.constant 0 : index
    %c13 = arith.constant 13 : index
    %c0_41 = arith.constant 0 : index
    %51 = vector.load %arg11[%c0_40, %c13, %c0_41] : memref<1x16x32xf32, #tpu.memory_space<vmem>>, vector<1x3x32xf32>
    %52 = vector.shape_cast %51 : vector<1x3x32xf32> to vector<3x32xf32>
    %53 = vector.shape_cast %50 : vector<3x32xf32> to vector<1x3x32xf32>
    tpu.vector_store %arg11[%c0_40, %c13, %c0_41], %53 {strides = array<i32>} : memref<1x16x32xf32, #tpu.memory_space<vmem>>, vector<1x3x32xf32>,
    return
  }
  func.func @transform_0(%arg0: i32) -> (i32, i32, i32) {
    %c0_i32 = arith.constant 0 : i32
    %c0_i32_0 = arith.constant 0 : i32
    %c0_i32_1 = arith.constant 0 : i32
    return %arg0, %c0_i32, %c0_i32_0 : i32, i32, i32
  }
  func.func @transform_1(%arg0: i32) -> (i32, i32) {
    %c0_i32 = arith.constant 0 : i32
    %c0_i32_0 = arith.constant 0 : i32
    %c0_i32_1 = arith.constant 0 : i32
    return %c0_i32, %c0_i32_0 : i32, i32
  }
  func.func @transform_2(%arg0: i32) -> (i32, i32) {
    %c0_i32 = arith.constant 0 : i32
    %c0_i32_0 = arith.constant 0 : i32
    %c0_i32_1 = arith.constant 0 : i32
    return %c0_i32, %c0_i32_0 : i32, i32
  }
  func.func @transform_3(%arg0: i32) -> (i32, i32, i32) {
    %c0_i32 = arith.constant 0 : i32
    %c0_i32_0 = arith.constant 0 : i32
    %c0_i32_1 = arith.constant 0 : i32
    return %arg0, %c0_i32, %c0_i32_0 : i32, i32, i32
  }
  func.func @transform_4(%arg0: i32) -> (i32, i32) {
    %c0_i32 = arith.constant 0 : i32
    %c0_i32_0 = arith.constant 0 : i32
    %c0_i32_1 = arith.constant 0 : i32
    return %c0_i32, %c0_i32_0 : i32, i32
  }
  func.func @transform_5(%arg0: i32) -> (i32, i32) {
    %c0_i32 = arith.constant 0 : i32
    %c0_i32_0 = arith.constant 0 : i32
    %c0_i32_1 = arith.constant 0 : i32
    return %c0_i32, %c0_i32_0 : i32, i32
  }
  func.func @transform_6(%arg0: i32) -> (i32, i32, i32) {
    %c0_i32 = arith.constant 0 : i32
    %c0_i32_0 = arith.constant 0 : i32
    %c0_i32_1 = arith.constant 0 : i32
    return %arg0, %c0_i32, %c0_i32_0 : i32, i32, i32
  }
  func.func @transform_7(%arg0: i32) -> (i32, i32) {
    %c0_i32 = arith.constant 0 : i32
    %c0_i32_0 = arith.constant 0 : i32
    %c0_i32_1 = arith.constant 0 : i32
    return %c0_i32, %c0_i32_0 : i32, i32
  }
  func.func @transform_8(%arg0: i32) -> (i32, i32) {
    %c0_i32 = arith.constant 0 : i32
    %c0_i32_0 = arith.constant 0 : i32
    %c0_i32_1 = arith.constant 0 : i32
    return %c0_i32, %c0_i32_0 : i32, i32
  }
  func.func @transform_9(%arg0: i32) -> (i32, i32) {
    %c0_i32 = arith.constant 0 : i32
    %c0_i32_0 = arith.constant 0 : i32
    %c0_i32_1 = arith.constant 0 : i32
    return %c0_i32, %c0_i32_0 : i32, i32
  }
  func.func @transform_10(%arg0: i32) -> (i32, i32, i32) {
    %c0_i32 = arith.constant 0 : i32
    %c0_i32_0 = arith.constant 0 : i32
    %c0_i32_1 = arith.constant 0 : i32
    return %arg0, %c0_i32, %c0_i32_0 : i32, i32, i32
  }
}

module attributes {stable_mosaic.version = 11 : i64} {
  func.func @_transformer_heads_kernel(%arg0: i32, %arg1: memref<1x16x32xf32, #tpu.memory_space<vmem>>, %arg2: memref<2x32x96xbf16, #tpu.memory_space<vmem>>, %arg3: memref<2x1x96xf32, #tpu.memory_space<vmem>>, %arg4: memref<2x32x32xbf16, #tpu.memory_space<vmem>>, %arg5: memref<2x1x32xf32, #tpu.memory_space<vmem>>, %arg6: memref<2x1x32xf32, #tpu.memory_space<vmem>>, %arg7: memref<2x1x32xf32, #tpu.memory_space<vmem>>, %arg8: memref<2x32x64xbf16, #tpu.memory_space<vmem>>, %arg9: memref<2x1x64xf32, #tpu.memory_space<vmem>>, %arg10: memref<2x64x32xbf16, #tpu.memory_space<vmem>>, %arg11: memref<2x1x32xf32, #tpu.memory_space<vmem>>, %arg12: memref<2x1x32xf32, #tpu.memory_space<vmem>>, %arg13: memref<2x1x32xf32, #tpu.memory_space<vmem>>, %arg14: memref<32x32xbf16, #tpu.memory_space<vmem>>, %arg15: memref<1x32xf32, #tpu.memory_space<vmem>>, %arg16: memref<32x32xbf16, #tpu.memory_space<vmem>>, %arg17: memref<1x32xf32, #tpu.memory_space<vmem>>, %arg18: memref<32x9xbf16, #tpu.memory_space<vmem>>, %arg19: memref<1x9xf32, #tpu.memory_space<vmem>>, %arg20: memref<1x8x9xf32, #tpu.memory_space<vmem>>, %arg21: memref<1x8x9xf32, #tpu.memory_space<vmem>>, %arg22: memref<16x32xf32, #tpu.memory_space<vmem>>) attributes {dimension_semantics = [#tpu.dimension_semantics<parallel>], iteration_bounds = array<i64: 2>, scalar_prefetch = 0 : i64, scratch_operands = 1 : i64, tpu.core_type = #tpu.core_type<tc>, window_params = [{transform_indices = @transform_0, window_bounds = array<i64: 1, 16, 32>}, {pipeline_mode = #tpu.pipeline_mode<synchronous>, transform_indices = @transform_1, window_bounds = array<i64: 2, 32, 96>}, {pipeline_mode = #tpu.pipeline_mode<synchronous>, transform_indices = @transform_2, window_bounds = array<i64: 2, 1, 96>}, {pipeline_mode = #tpu.pipeline_mode<synchronous>, transform_indices = @transform_3, window_bounds = array<i64: 2, 32, 32>}, {pipeline_mode = #tpu.pipeline_mode<synchronous>, transform_indices = @transform_4, window_bounds = array<i64: 2, 1, 32>}, {pipeline_mode = #tpu.pipeline_mode<synchronous>, transform_indices = @transform_5, window_bounds = array<i64: 2, 1, 32>}, {pipeline_mode = #tpu.pipeline_mode<synchronous>, transform_indices = @transform_6, window_bounds = array<i64: 2, 1, 32>}, {pipeline_mode = #tpu.pipeline_mode<synchronous>, transform_indices = @transform_7, window_bounds = array<i64: 2, 32, 64>}, {pipeline_mode = #tpu.pipeline_mode<synchronous>, transform_indices = @transform_8, window_bounds = array<i64: 2, 1, 64>}, {pipeline_mode = #tpu.pipeline_mode<synchronous>, transform_indices = @transform_9, window_bounds = array<i64: 2, 64, 32>}, {pipeline_mode = #tpu.pipeline_mode<synchronous>, transform_indices = @transform_10, window_bounds = array<i64: 2, 1, 32>}, {pipeline_mode = #tpu.pipeline_mode<synchronous>, transform_indices = @transform_11, window_bounds = array<i64: 2, 1, 32>}, {pipeline_mode = #tpu.pipeline_mode<synchronous>, transform_indices = @transform_12, window_bounds = array<i64: 2, 1, 32>}, {pipeline_mode = #tpu.pipeline_mode<synchronous>, transform_indices = @transform_13, window_bounds = array<i64: 32, 32>}, {pipeline_mode = #tpu.pipeline_mode<synchronous>, transform_indices = @transform_14, window_bounds = array<i64: 1, 32>}, {pipeline_mode = #tpu.pipeline_mode<synchronous>, transform_indices = @transform_15, window_bounds = array<i64: 32, 32>}, {pipeline_mode = #tpu.pipeline_mode<synchronous>, transform_indices = @transform_16, window_bounds = array<i64: 1, 32>}, {pipeline_mode = #tpu.pipeline_mode<synchronous>, transform_indices = @transform_17, window_bounds = array<i64: 32, 9>}, {pipeline_mode = #tpu.pipeline_mode<synchronous>, transform_indices = @transform_18, window_bounds = array<i64: 1, 9>}, {transform_indices = @transform_19, window_bounds = array<i64: 1, 8, 9>}, {transform_indices = @transform_20, window_bounds = array<i64: 1, 8, 9>}]} {
    %0 = tpu.iota {dimensions = array<i32: 1>} : vector<1x16xi32>
    %c13_i32 = arith.constant 13 : i32
    %1 = vector.broadcast %c13_i32 : i32 to vector<1x16xi32>
    %2 = arith.cmpi slt, %0, %1 : vector<1x16xi32>
    %cst = arith.constant 0.000000e+00 : f32
    %cst_0 = arith.constant -1.000000e+09 : f32
    %3 = vector.broadcast %cst : f32 to vector<1x16xf32>
    %4 = vector.broadcast %cst_0 : f32 to vector<1x16xf32>
    %5 = arith.select %2, %3, %4 : vector<1x16xi1>, vector<1x16xf32>
    %c0 = arith.constant 0 : index
    %c0_1 = arith.constant 0 : index
    %c0_2 = arith.constant 0 : index
    %6 = vector.load %arg1[%c0, %c0_1, %c0_2] : memref<1x16x32xf32, #tpu.memory_space<vmem>>, vector<1x16x32xf32>
    %7 = vector.shape_cast %6 : vector<1x16x32xf32> to vector<16x32xf32>
    %c0_i32 = arith.constant 0 : i32
    %c2_i32 = arith.constant 2 : i32
    %8 = arith.addi %c0_i32, %c2_i32 : i32
    %c1_i32 = arith.constant 1 : i32
    %9 = scf.for %arg23 = %c0_i32 to %8 step %c1_i32 iter_args(%arg24 = %7) -> (vector<16x32xf32>)  : i32 {
      %61 = arith.truncf %arg24 : vector<16x32xf32> to vector<16x32xbf16>
      %62 = arith.index_cast %arg23 : i32 to index
      %c0_33 = arith.constant 0 : index
      %c0_34 = arith.constant 0 : index
      %63 = vector.load %arg2[%62, %c0_33, %c0_34] : memref<2x32x96xbf16, #tpu.memory_space<vmem>>, vector<1x32x96xbf16>
      %64 = vector.shape_cast %63 : vector<1x32x96xbf16> to vector<32x96xbf16>
      %cst_35 = arith.constant dense<0.000000e+00> : vector<16x96xf32>
      %65 = tpu.matmul %61, %64, %cst_35 {dimension_numbers = #tpu.dot_dimension_numbers<[1], [0], [0], [1], [0, 0, 1, 1], [], []>} : vector<16x32xbf16>, vector<32x96xbf16>, vector<16x96xf32> -> vector<16x96xf32>
      %66 = arith.index_cast %arg23 : i32 to index
      %c0_36 = arith.constant 0 : index
      %c0_37 = arith.constant 0 : index
      %67 = vector.load %arg3[%66, %c0_36, %c0_37] : memref<2x1x96xf32, #tpu.memory_space<vmem>>, vector<1x1x96xf32>
      %68 = vector.shape_cast %67 : vector<1x1x96xf32> to vector<1x96xf32>
      %69 = vector.broadcast %68 : vector<1x96xf32> to vector<16x96xf32>
      %70 = arith.addf %65, %69 : vector<16x96xf32>
      %71 = vector.extract_strided_slice %70 {offsets = [0, 0], sizes = [16, 32], strides = [1, 1]} : vector<16x96xf32> to vector<16x32xf32>
      %72 = arith.truncf %71 : vector<16x32xf32> to vector<16x32xbf16>
      %73 = vector.extract_strided_slice %70 {offsets = [0, 32], sizes = [16, 32], strides = [1, 1]} : vector<16x96xf32> to vector<16x32xf32>
      %74 = arith.truncf %73 : vector<16x32xf32> to vector<16x32xbf16>
      %75 = vector.extract_strided_slice %70 {offsets = [0, 64], sizes = [16, 32], strides = [1, 1]} : vector<16x96xf32> to vector<16x32xf32>
      %76 = arith.truncf %75 : vector<16x32xf32> to vector<16x32xbf16>
      %77 = vector.extract_strided_slice %72 {offsets = [0, 0], sizes = [16, 8], strides = [1, 1]} : vector<16x32xbf16> to vector<16x8xbf16>
      %78 = vector.extract_strided_slice %74 {offsets = [0, 0], sizes = [16, 8], strides = [1, 1]} : vector<16x32xbf16> to vector<16x8xbf16>
      %79 = vector.extract_strided_slice %76 {offsets = [0, 0], sizes = [16, 8], strides = [1, 1]} : vector<16x32xbf16> to vector<16x8xbf16>
      %cst_38 = arith.constant dense<0.000000e+00> : vector<16x16xf32>
      %80 = tpu.matmul %77, %78, %cst_38 {dimension_numbers = #tpu.dot_dimension_numbers<[1], [1], [0], [0], [0, 0, 1, 0], [], []>} : vector<16x8xbf16>, vector<16x8xbf16>, vector<16x16xf32> -> vector<16x16xf32>
      %cst_39 = arith.constant 0.353553385 : f32
      %81 = vector.broadcast %cst_39 : f32 to vector<16x16xf32>
      %82 = arith.mulf %80, %81 : vector<16x16xf32>
      %83 = vector.broadcast %5 : vector<1x16xf32> to vector<16x16xf32>
      %84 = arith.addf %82, %83 : vector<16x16xf32>
      %cst_40 = arith.constant dense<0xFF800000> : vector<16xf32>
      %85 = vector.multi_reduction <maximumf>, %84, %cst_40 [1] : vector<16x16xf32> to vector<16xf32>
      %86 = vector.shape_cast %85 : vector<16xf32> to vector<16x1xf32>
      %87 = vector.broadcast %86 : vector<16x1xf32> to vector<16x16xf32>
      %88 = arith.subf %84, %87 : vector<16x16xf32>
      %89 = math.exp %88 : vector<16x16xf32>
      %cst_41 = arith.constant dense<0.000000e+00> : vector<16xf32>
      %90 = vector.multi_reduction <add>, %89, %cst_41 [1] : vector<16x16xf32> to vector<16xf32>
      %91 = vector.shape_cast %90 : vector<16xf32> to vector<16x1xf32>
      %92 = vector.broadcast %91 : vector<16x1xf32> to vector<16x16xf32>
      %93 = arith.divf %89, %92 : vector<16x16xf32>
      %94 = arith.truncf %93 : vector<16x16xf32> to vector<16x16xbf16>
      %cst_42 = arith.constant dense<0.000000e+00> : vector<16x8xf32>
      %95 = tpu.matmul %94, %79, %cst_42 {dimension_numbers = #tpu.dot_dimension_numbers<[1], [0], [0], [1], [0, 0, 1, 1], [], []>} : vector<16x16xbf16>, vector<16x8xbf16>, vector<16x8xf32> -> vector<16x8xf32>
      %c0_43 = arith.constant 0 : index
      %c0_44 = arith.constant 0 : index
      %96 = vector.load %arg22[%c0_43, %c0_44] : memref<16x32xf32, #tpu.memory_space<vmem>>, vector<16x8xf32>
      tpu.vector_store %arg22[%c0_43, %c0_44], %95 {strides = array<i32>} : memref<16x32xf32, #tpu.memory_space<vmem>>, vector<16x8xf32>,
      %97 = vector.extract_strided_slice %72 {offsets = [0, 8], sizes = [16, 8], strides = [1, 1]} : vector<16x32xbf16> to vector<16x8xbf16>
      %98 = vector.extract_strided_slice %74 {offsets = [0, 8], sizes = [16, 8], strides = [1, 1]} : vector<16x32xbf16> to vector<16x8xbf16>
      %99 = vector.extract_strided_slice %76 {offsets = [0, 8], sizes = [16, 8], strides = [1, 1]} : vector<16x32xbf16> to vector<16x8xbf16>
      %cst_45 = arith.constant dense<0.000000e+00> : vector<16x16xf32>
      %100 = tpu.matmul %97, %98, %cst_45 {dimension_numbers = #tpu.dot_dimension_numbers<[1], [1], [0], [0], [0, 0, 1, 0], [], []>} : vector<16x8xbf16>, vector<16x8xbf16>, vector<16x16xf32> -> vector<16x16xf32>
      %cst_46 = arith.constant 0.353553385 : f32
      %101 = vector.broadcast %cst_46 : f32 to vector<16x16xf32>
      %102 = arith.mulf %100, %101 : vector<16x16xf32>
      %103 = vector.broadcast %5 : vector<1x16xf32> to vector<16x16xf32>
      %104 = arith.addf %102, %103 : vector<16x16xf32>
      %cst_47 = arith.constant dense<0xFF800000> : vector<16xf32>
      %105 = vector.multi_reduction <maximumf>, %104, %cst_47 [1] : vector<16x16xf32> to vector<16xf32>
      %106 = vector.shape_cast %105 : vector<16xf32> to vector<16x1xf32>
      %107 = vector.broadcast %106 : vector<16x1xf32> to vector<16x16xf32>
      %108 = arith.subf %104, %107 : vector<16x16xf32>
      %109 = math.exp %108 : vector<16x16xf32>
      %cst_48 = arith.constant dense<0.000000e+00> : vector<16xf32>
      %110 = vector.multi_reduction <add>, %109, %cst_48 [1] : vector<16x16xf32> to vector<16xf32>
      %111 = vector.shape_cast %110 : vector<16xf32> to vector<16x1xf32>
      %112 = vector.broadcast %111 : vector<16x1xf32> to vector<16x16xf32>
      %113 = arith.divf %109, %112 : vector<16x16xf32>
      %114 = arith.truncf %113 : vector<16x16xf32> to vector<16x16xbf16>
      %cst_49 = arith.constant dense<0.000000e+00> : vector<16x8xf32>
      %115 = tpu.matmul %114, %99, %cst_49 {dimension_numbers = #tpu.dot_dimension_numbers<[1], [0], [0], [1], [0, 0, 1, 1], [], []>} : vector<16x16xbf16>, vector<16x8xbf16>, vector<16x8xf32> -> vector<16x8xf32>
      %c0_50 = arith.constant 0 : index
      %c8 = arith.constant 8 : index
      %116 = vector.load %arg22[%c0_50, %c8] : memref<16x32xf32, #tpu.memory_space<vmem>>, vector<16x8xf32>
      tpu.vector_store %arg22[%c0_50, %c8], %115 {strides = array<i32>} : memref<16x32xf32, #tpu.memory_space<vmem>>, vector<16x8xf32>,
      %117 = vector.extract_strided_slice %72 {offsets = [0, 16], sizes = [16, 8], strides = [1, 1]} : vector<16x32xbf16> to vector<16x8xbf16>
      %118 = vector.extract_strided_slice %74 {offsets = [0, 16], sizes = [16, 8], strides = [1, 1]} : vector<16x32xbf16> to vector<16x8xbf16>
      %119 = vector.extract_strided_slice %76 {offsets = [0, 16], sizes = [16, 8], strides = [1, 1]} : vector<16x32xbf16> to vector<16x8xbf16>
      %cst_51 = arith.constant dense<0.000000e+00> : vector<16x16xf32>
      %120 = tpu.matmul %117, %118, %cst_51 {dimension_numbers = #tpu.dot_dimension_numbers<[1], [1], [0], [0], [0, 0, 1, 0], [], []>} : vector<16x8xbf16>, vector<16x8xbf16>, vector<16x16xf32> -> vector<16x16xf32>
      %cst_52 = arith.constant 0.353553385 : f32
      %121 = vector.broadcast %cst_52 : f32 to vector<16x16xf32>
      %122 = arith.mulf %120, %121 : vector<16x16xf32>
      %123 = vector.broadcast %5 : vector<1x16xf32> to vector<16x16xf32>
      %124 = arith.addf %122, %123 : vector<16x16xf32>
      %cst_53 = arith.constant dense<0xFF800000> : vector<16xf32>
      %125 = vector.multi_reduction <maximumf>, %124, %cst_53 [1] : vector<16x16xf32> to vector<16xf32>
      %126 = vector.shape_cast %125 : vector<16xf32> to vector<16x1xf32>
      %127 = vector.broadcast %126 : vector<16x1xf32> to vector<16x16xf32>
      %128 = arith.subf %124, %127 : vector<16x16xf32>
      %129 = math.exp %128 : vector<16x16xf32>
      %cst_54 = arith.constant dense<0.000000e+00> : vector<16xf32>
      %130 = vector.multi_reduction <add>, %129, %cst_54 [1] : vector<16x16xf32> to vector<16xf32>
      %131 = vector.shape_cast %130 : vector<16xf32> to vector<16x1xf32>
      %132 = vector.broadcast %131 : vector<16x1xf32> to vector<16x16xf32>
      %133 = arith.divf %129, %132 : vector<16x16xf32>
      %134 = arith.truncf %133 : vector<16x16xf32> to vector<16x16xbf16>
      %cst_55 = arith.constant dense<0.000000e+00> : vector<16x8xf32>
      %135 = tpu.matmul %134, %119, %cst_55 {dimension_numbers = #tpu.dot_dimension_numbers<[1], [0], [0], [1], [0, 0, 1, 1], [], []>} : vector<16x16xbf16>, vector<16x8xbf16>, vector<16x8xf32> -> vector<16x8xf32>
      %c0_56 = arith.constant 0 : index
      %c16 = arith.constant 16 : index
      %136 = vector.load %arg22[%c0_56, %c16] : memref<16x32xf32, #tpu.memory_space<vmem>>, vector<16x8xf32>
      tpu.vector_store %arg22[%c0_56, %c16], %135 {strides = array<i32>} : memref<16x32xf32, #tpu.memory_space<vmem>>, vector<16x8xf32>,
      %137 = vector.extract_strided_slice %72 {offsets = [0, 24], sizes = [16, 8], strides = [1, 1]} : vector<16x32xbf16> to vector<16x8xbf16>
      %138 = vector.extract_strided_slice %74 {offsets = [0, 24], sizes = [16, 8], strides = [1, 1]} : vector<16x32xbf16> to vector<16x8xbf16>
      %139 = vector.extract_strided_slice %76 {offsets = [0, 24], sizes = [16, 8], strides = [1, 1]} : vector<16x32xbf16> to vector<16x8xbf16>
      %cst_57 = arith.constant dense<0.000000e+00> : vector<16x16xf32>
      %140 = tpu.matmul %137, %138, %cst_57 {dimension_numbers = #tpu.dot_dimension_numbers<[1], [1], [0], [0], [0, 0, 1, 0], [], []>} : vector<16x8xbf16>, vector<16x8xbf16>, vector<16x16xf32> -> vector<16x16xf32>
      %cst_58 = arith.constant 0.353553385 : f32
      %141 = vector.broadcast %cst_58 : f32 to vector<16x16xf32>
      %142 = arith.mulf %140, %141 : vector<16x16xf32>
      %143 = vector.broadcast %5 : vector<1x16xf32> to vector<16x16xf32>
      %144 = arith.addf %142, %143 : vector<16x16xf32>
      %cst_59 = arith.constant dense<0xFF800000> : vector<16xf32>
      %145 = vector.multi_reduction <maximumf>, %144, %cst_59 [1] : vector<16x16xf32> to vector<16xf32>
      %146 = vector.shape_cast %145 : vector<16xf32> to vector<16x1xf32>
      %147 = vector.broadcast %146 : vector<16x1xf32> to vector<16x16xf32>
      %148 = arith.subf %144, %147 : vector<16x16xf32>
      %149 = math.exp %148 : vector<16x16xf32>
      %cst_60 = arith.constant dense<0.000000e+00> : vector<16xf32>
      %150 = vector.multi_reduction <add>, %149, %cst_60 [1] : vector<16x16xf32> to vector<16xf32>
      %151 = vector.shape_cast %150 : vector<16xf32> to vector<16x1xf32>
      %152 = vector.broadcast %151 : vector<16x1xf32> to vector<16x16xf32>
      %153 = arith.divf %149, %152 : vector<16x16xf32>
      %154 = arith.truncf %153 : vector<16x16xf32> to vector<16x16xbf16>
      %cst_61 = arith.constant dense<0.000000e+00> : vector<16x8xf32>
      %155 = tpu.matmul %154, %139, %cst_61 {dimension_numbers = #tpu.dot_dimension_numbers<[1], [0], [0], [1], [0, 0, 1, 1], [], []>} : vector<16x16xbf16>, vector<16x8xbf16>, vector<16x8xf32> -> vector<16x8xf32>
      %c0_62 = arith.constant 0 : index
      %c24 = arith.constant 24 : index
      %156 = vector.load %arg22[%c0_62, %c24] : memref<16x32xf32, #tpu.memory_space<vmem>>, vector<16x8xf32>
      tpu.vector_store %arg22[%c0_62, %c24], %155 {strides = array<i32>} : memref<16x32xf32, #tpu.memory_space<vmem>>, vector<16x8xf32>,
      %c0_63 = arith.constant 0 : index
      %c0_64 = arith.constant 0 : index
      %157 = vector.load %arg22[%c0_63, %c0_64] : memref<16x32xf32, #tpu.memory_space<vmem>>, vector<16x32xf32>
      %158 = arith.truncf %157 : vector<16x32xf32> to vector<16x32xbf16>
      %159 = arith.index_cast %arg23 : i32 to index
      %c0_65 = arith.constant 0 : index
      %c0_66 = arith.constant 0 : index
      %160 = vector.load %arg4[%159, %c0_65, %c0_66] : memref<2x32x32xbf16, #tpu.memory_space<vmem>>, vector<1x32x32xbf16>
      %161 = vector.shape_cast %160 : vector<1x32x32xbf16> to vector<32x32xbf16>
      %cst_67 = arith.constant dense<0.000000e+00> : vector<16x32xf32>
      %162 = tpu.matmul %158, %161, %cst_67 {dimension_numbers = #tpu.dot_dimension_numbers<[1], [0], [0], [1], [0, 0, 1, 1], [], []>} : vector<16x32xbf16>, vector<32x32xbf16>, vector<16x32xf32> -> vector<16x32xf32>
      %163 = arith.index_cast %arg23 : i32 to index
      %c0_68 = arith.constant 0 : index
      %c0_69 = arith.constant 0 : index
      %164 = vector.load %arg5[%163, %c0_68, %c0_69] : memref<2x1x32xf32, #tpu.memory_space<vmem>>, vector<1x1x32xf32>
      %165 = vector.shape_cast %164 : vector<1x1x32xf32> to vector<1x32xf32>
      %166 = vector.broadcast %165 : vector<1x32xf32> to vector<16x32xf32>
      %167 = arith.addf %162, %166 : vector<16x32xf32>
      %168 = arith.addf %arg24, %167 : vector<16x32xf32>
      %169 = arith.index_cast %arg23 : i32 to index
      %c0_70 = arith.constant 0 : index
      %c0_71 = arith.constant 0 : index
      %170 = vector.load %arg6[%169, %c0_70, %c0_71] : memref<2x1x32xf32, #tpu.memory_space<vmem>>, vector<1x1x32xf32>
      %171 = vector.shape_cast %170 : vector<1x1x32xf32> to vector<1x32xf32>
      %172 = arith.index_cast %arg23 : i32 to index
      %c0_72 = arith.constant 0 : index
      %c0_73 = arith.constant 0 : index
      %173 = vector.load %arg7[%172, %c0_72, %c0_73] : memref<2x1x32xf32, #tpu.memory_space<vmem>>, vector<1x1x32xf32>
      %174 = vector.shape_cast %173 : vector<1x1x32xf32> to vector<1x32xf32>
      %cst_74 = arith.constant dense<0.000000e+00> : vector<16xf32>
      %175 = vector.multi_reduction <add>, %168, %cst_74 [1] : vector<16x32xf32> to vector<16xf32>
      %176 = vector.shape_cast %175 : vector<16xf32> to vector<16x1xf32>
      %cst_75 = arith.constant 3.200000e+01 : f32
      %177 = vector.broadcast %cst_75 : f32 to vector<16x1xf32>
      %178 = arith.divf %176, %177 : vector<16x1xf32>
      %179 = vector.broadcast %178 : vector<16x1xf32> to vector<16x32xf32>
      %180 = arith.subf %168, %179 : vector<16x32xf32>
      %181 = arith.mulf %180, %180 : vector<16x32xf32>
      %cst_76 = arith.constant dense<0.000000e+00> : vector<16xf32>
      %182 = vector.multi_reduction <add>, %181, %cst_76 [1] : vector<16x32xf32> to vector<16xf32>
      %183 = vector.shape_cast %182 : vector<16xf32> to vector<16x1xf32>
      %cst_77 = arith.constant 3.200000e+01 : f32
      %184 = vector.broadcast %cst_77 : f32 to vector<16x1xf32>
      %185 = arith.divf %183, %184 : vector<16x1xf32>
      %cst_78 = arith.constant 9.99999974E-6 : f32
      %186 = vector.broadcast %cst_78 : f32 to vector<16x1xf32>
      %187 = arith.addf %185, %186 : vector<16x1xf32>
      %188 = math.rsqrt %187 : vector<16x1xf32>
      %189 = vector.broadcast %188 : vector<16x1xf32> to vector<16x32xf32>
      %190 = arith.mulf %180, %189 : vector<16x32xf32>
      %191 = vector.broadcast %171 : vector<1x32xf32> to vector<16x32xf32>
      %192 = arith.mulf %190, %191 : vector<16x32xf32>
      %193 = vector.broadcast %174 : vector<1x32xf32> to vector<16x32xf32>
      %194 = arith.addf %192, %193 : vector<16x32xf32>
      %195 = arith.truncf %194 : vector<16x32xf32> to vector<16x32xbf16>
      %196 = arith.index_cast %arg23 : i32 to index
      %c0_79 = arith.constant 0 : index
      %c0_80 = arith.constant 0 : index
      %197 = vector.load %arg8[%196, %c0_79, %c0_80] : memref<2x32x64xbf16, #tpu.memory_space<vmem>>, vector<1x32x64xbf16>
      %198 = vector.shape_cast %197 : vector<1x32x64xbf16> to vector<32x64xbf16>
      %cst_81 = arith.constant dense<0.000000e+00> : vector<16x64xf32>
      %199 = tpu.matmul %195, %198, %cst_81 {dimension_numbers = #tpu.dot_dimension_numbers<[1], [0], [0], [1], [0, 0, 1, 1], [], []>} : vector<16x32xbf16>, vector<32x64xbf16>, vector<16x64xf32> -> vector<16x64xf32>
      %200 = arith.index_cast %arg23 : i32 to index
      %c0_82 = arith.constant 0 : index
      %c0_83 = arith.constant 0 : index
      %201 = vector.load %arg9[%200, %c0_82, %c0_83] : memref<2x1x64xf32, #tpu.memory_space<vmem>>, vector<1x1x64xf32>
      %202 = vector.shape_cast %201 : vector<1x1x64xf32> to vector<1x64xf32>
      %203 = vector.broadcast %202 : vector<1x64xf32> to vector<16x64xf32>
      %204 = arith.addf %199, %203 : vector<16x64xf32>
      %205 = arith.mulf %204, %204 : vector<16x64xf32>
      %206 = arith.mulf %204, %205 : vector<16x64xf32>
      %cst_84 = arith.constant 4.471500e-02 : f32
      %207 = vector.broadcast %cst_84 : f32 to vector<16x64xf32>
      %208 = arith.mulf %207, %206 : vector<16x64xf32>
      %209 = arith.addf %204, %208 : vector<16x64xf32>
      %cst_85 = arith.constant 0.797884583 : f32
      %210 = vector.broadcast %cst_85 : f32 to vector<16x64xf32>
      %211 = arith.mulf %210, %209 : vector<16x64xf32>
      %212 = math.tanh %211 : vector<16x64xf32>
      %cst_86 = arith.constant 1.000000e+00 : f32
      %213 = vector.broadcast %cst_86 : f32 to vector<16x64xf32>
      %214 = arith.addf %213, %212 : vector<16x64xf32>
      %cst_87 = arith.constant 5.000000e-01 : f32
      %215 = vector.broadcast %cst_87 : f32 to vector<16x64xf32>
      %216 = arith.mulf %215, %214 : vector<16x64xf32>
      %217 = arith.mulf %204, %216 : vector<16x64xf32>
      %218 = arith.truncf %217 : vector<16x64xf32> to vector<16x64xbf16>
      %219 = arith.index_cast %arg23 : i32 to index
      %c0_88 = arith.constant 0 : index
      %c0_89 = arith.constant 0 : index
      %220 = vector.load %arg10[%219, %c0_88, %c0_89] : memref<2x64x32xbf16, #tpu.memory_space<vmem>>, vector<1x64x32xbf16>
      %221 = vector.shape_cast %220 : vector<1x64x32xbf16> to vector<64x32xbf16>
      %cst_90 = arith.constant dense<0.000000e+00> : vector<16x32xf32>
      %222 = tpu.matmul %218, %221, %cst_90 {dimension_numbers = #tpu.dot_dimension_numbers<[1], [0], [0], [1], [0, 0, 1, 1], [], []>} : vector<16x64xbf16>, vector<64x32xbf16>, vector<16x32xf32> -> vector<16x32xf32>
      %223 = arith.index_cast %arg23 : i32 to index
      %c0_91 = arith.constant 0 : index
      %c0_92 = arith.constant 0 : index
      %224 = vector.load %arg11[%223, %c0_91, %c0_92] : memref<2x1x32xf32, #tpu.memory_space<vmem>>, vector<1x1x32xf32>
      %225 = vector.shape_cast %224 : vector<1x1x32xf32> to vector<1x32xf32>
      %226 = vector.broadcast %225 : vector<1x32xf32> to vector<16x32xf32>
      %227 = arith.addf %222, %226 : vector<16x32xf32>
      %228 = arith.addf %194, %227 : vector<16x32xf32>
      %229 = arith.index_cast %arg23 : i32 to index
      %c0_93 = arith.constant 0 : index
      %c0_94 = arith.constant 0 : index
      %230 = vector.load %arg12[%229, %c0_93, %c0_94] : memref<2x1x32xf32, #tpu.memory_space<vmem>>, vector<1x1x32xf32>
      %231 = vector.shape_cast %230 : vector<1x1x32xf32> to vector<1x32xf32>
      %232 = arith.index_cast %arg23 : i32 to index
      %c0_95 = arith.constant 0 : index
      %c0_96 = arith.constant 0 : index
      %233 = vector.load %arg13[%232, %c0_95, %c0_96] : memref<2x1x32xf32, #tpu.memory_space<vmem>>, vector<1x1x32xf32>
      %234 = vector.shape_cast %233 : vector<1x1x32xf32> to vector<1x32xf32>
      %cst_97 = arith.constant dense<0.000000e+00> : vector<16xf32>
      %235 = vector.multi_reduction <add>, %228, %cst_97 [1] : vector<16x32xf32> to vector<16xf32>
      %236 = vector.shape_cast %235 : vector<16xf32> to vector<16x1xf32>
      %cst_98 = arith.constant 3.200000e+01 : f32
      %237 = vector.broadcast %cst_98 : f32 to vector<16x1xf32>
      %238 = arith.divf %236, %237 : vector<16x1xf32>
      %239 = vector.broadcast %238 : vector<16x1xf32> to vector<16x32xf32>
      %240 = arith.subf %228, %239 : vector<16x32xf32>
      %241 = arith.mulf %240, %240 : vector<16x32xf32>
      %cst_99 = arith.constant dense<0.000000e+00> : vector<16xf32>
      %242 = vector.multi_reduction <add>, %241, %cst_99 [1] : vector<16x32xf32> to vector<16xf32>
      %243 = vector.shape_cast %242 : vector<16xf32> to vector<16x1xf32>
      %cst_100 = arith.constant 3.200000e+01 : f32
      %244 = vector.broadcast %cst_100 : f32 to vector<16x1xf32>
      %245 = arith.divf %243, %244 : vector<16x1xf32>
      %cst_101 = arith.constant 9.99999974E-6 : f32
      %246 = vector.broadcast %cst_101 : f32 to vector<16x1xf32>
      %247 = arith.addf %245, %246 : vector<16x1xf32>
      %248 = math.rsqrt %247 : vector<16x1xf32>
      %249 = vector.broadcast %248 : vector<16x1xf32> to vector<16x32xf32>
      %250 = arith.mulf %240, %249 : vector<16x32xf32>
      %251 = vector.broadcast %231 : vector<1x32xf32> to vector<16x32xf32>
      %252 = arith.mulf %250, %251 : vector<16x32xf32>
      %253 = vector.broadcast %234 : vector<1x32xf32> to vector<16x32xf32>
      %254 = arith.addf %252, %253 : vector<16x32xf32>
      scf.yield %254 : vector<16x32xf32>
    }
    %c2_i32_3 = arith.constant 2 : i32
    %10 = vector.extract_strided_slice %9 {offsets = [0, 0], sizes = [8, 32], strides = [1, 1]} : vector<16x32xf32> to vector<8x32xf32>
    %11 = arith.truncf %10 : vector<8x32xf32> to vector<8x32xbf16>
    %c0_4 = arith.constant 0 : index
    %c0_5 = arith.constant 0 : index
    %12 = vector.load %arg14[%c0_4, %c0_5] : memref<32x32xbf16, #tpu.memory_space<vmem>>, vector<32x32xbf16>
    %cst_6 = arith.constant dense<0.000000e+00> : vector<8x32xf32>
    %13 = tpu.matmul %11, %12, %cst_6 {dimension_numbers = #tpu.dot_dimension_numbers<[1], [0], [0], [1], [0, 0, 1, 1], [], []>} : vector<8x32xbf16>, vector<32x32xbf16>, vector<8x32xf32> -> vector<8x32xf32>
    %c0_7 = arith.constant 0 : index
    %c0_8 = arith.constant 0 : index
    %14 = vector.load %arg15[%c0_7, %c0_8] : memref<1x32xf32, #tpu.memory_space<vmem>>, vector<1x32xf32>
    %15 = vector.broadcast %14 : vector<1x32xf32> to vector<8x32xf32>
    %16 = arith.addf %13, %15 : vector<8x32xf32>
    %17 = arith.mulf %16, %16 : vector<8x32xf32>
    %18 = arith.mulf %16, %17 : vector<8x32xf32>
    %cst_9 = arith.constant 4.471500e-02 : f32
    %19 = vector.broadcast %cst_9 : f32 to vector<8x32xf32>
    %20 = arith.mulf %19, %18 : vector<8x32xf32>
    %21 = arith.addf %16, %20 : vector<8x32xf32>
    %cst_10 = arith.constant 0.797884583 : f32
    %22 = vector.broadcast %cst_10 : f32 to vector<8x32xf32>
    %23 = arith.mulf %22, %21 : vector<8x32xf32>
    %24 = math.tanh %23 : vector<8x32xf32>
    %cst_11 = arith.constant 1.000000e+00 : f32
    %25 = vector.broadcast %cst_11 : f32 to vector<8x32xf32>
    %26 = arith.addf %25, %24 : vector<8x32xf32>
    %cst_12 = arith.constant 5.000000e-01 : f32
    %27 = vector.broadcast %cst_12 : f32 to vector<8x32xf32>
    %28 = arith.mulf %27, %26 : vector<8x32xf32>
    %29 = arith.mulf %16, %28 : vector<8x32xf32>
    %30 = arith.truncf %29 : vector<8x32xf32> to vector<8x32xbf16>
    %c0_13 = arith.constant 0 : index
    %c0_14 = arith.constant 0 : index
    %31 = vector.load %arg16[%c0_13, %c0_14] : memref<32x32xbf16, #tpu.memory_space<vmem>>, vector<32x32xbf16>
    %cst_15 = arith.constant dense<0.000000e+00> : vector<8x32xf32>
    %32 = tpu.matmul %30, %31, %cst_15 {dimension_numbers = #tpu.dot_dimension_numbers<[1], [0], [0], [1], [0, 0, 1, 1], [], []>} : vector<8x32xbf16>, vector<32x32xbf16>, vector<8x32xf32> -> vector<8x32xf32>
    %c0_16 = arith.constant 0 : index
    %c0_17 = arith.constant 0 : index
    %33 = vector.load %arg17[%c0_16, %c0_17] : memref<1x32xf32, #tpu.memory_space<vmem>>, vector<1x32xf32>
    %34 = vector.broadcast %33 : vector<1x32xf32> to vector<8x32xf32>
    %35 = arith.addf %32, %34 : vector<8x32xf32>
    %36 = arith.mulf %35, %35 : vector<8x32xf32>
    %37 = arith.mulf %35, %36 : vector<8x32xf32>
    %cst_18 = arith.constant 4.471500e-02 : f32
    %38 = vector.broadcast %cst_18 : f32 to vector<8x32xf32>
    %39 = arith.mulf %38, %37 : vector<8x32xf32>
    %40 = arith.addf %35, %39 : vector<8x32xf32>
    %cst_19 = arith.constant 0.797884583 : f32
    %41 = vector.broadcast %cst_19 : f32 to vector<8x32xf32>
    %42 = arith.mulf %41, %40 : vector<8x32xf32>
    %43 = math.tanh %42 : vector<8x32xf32>
    %cst_20 = arith.constant 1.000000e+00 : f32
    %44 = vector.broadcast %cst_20 : f32 to vector<8x32xf32>
    %45 = arith.addf %44, %43 : vector<8x32xf32>
    %cst_21 = arith.constant 5.000000e-01 : f32
    %46 = vector.broadcast %cst_21 : f32 to vector<8x32xf32>
    %47 = arith.mulf %46, %45 : vector<8x32xf32>
    %48 = arith.mulf %35, %47 : vector<8x32xf32>
    %49 = arith.truncf %48 : vector<8x32xf32> to vector<8x32xbf16>
    %c0_22 = arith.constant 0 : index
    %c0_23 = arith.constant 0 : index
    %50 = vector.load %arg18[%c0_22, %c0_23] : memref<32x9xbf16, #tpu.memory_space<vmem>>, vector<32x9xbf16>
    %cst_24 = arith.constant dense<0.000000e+00> : vector<8x9xf32>
    %51 = tpu.matmul %49, %50, %cst_24 {dimension_numbers = #tpu.dot_dimension_numbers<[1], [0], [0], [1], [0, 0, 1, 1], [], []>} : vector<8x32xbf16>, vector<32x9xbf16>, vector<8x9xf32> -> vector<8x9xf32>
    %c0_25 = arith.constant 0 : index
    %c0_26 = arith.constant 0 : index
    %52 = vector.load %arg19[%c0_25, %c0_26] : memref<1x9xf32, #tpu.memory_space<vmem>>, vector<1x9xf32>
    %53 = vector.broadcast %52 : vector<1x9xf32> to vector<8x9xf32>
    %54 = arith.addf %51, %53 : vector<8x9xf32>
    %c0_27 = arith.constant 0 : index
    %c0_28 = arith.constant 0 : index
    %c0_29 = arith.constant 0 : index
    %55 = vector.load %arg20[%c0_27, %c0_28, %c0_29] : memref<1x8x9xf32, #tpu.memory_space<vmem>>, vector<1x8x9xf32>
    %56 = vector.shape_cast %55 : vector<1x8x9xf32> to vector<8x9xf32>
    %57 = arith.addf %56, %54 : vector<8x9xf32>
    %c0_30 = arith.constant 0 : index
    %c0_31 = arith.constant 0 : index
    %c0_32 = arith.constant 0 : index
    %58 = vector.load %arg21[%c0_30, %c0_31, %c0_32] : memref<1x8x9xf32, #tpu.memory_space<vmem>>, vector<1x8x9xf32>
    %59 = vector.shape_cast %58 : vector<1x8x9xf32> to vector<8x9xf32>
    %60 = vector.shape_cast %57 : vector<8x9xf32> to vector<1x8x9xf32>
    tpu.vector_store %arg21[%c0_30, %c0_31, %c0_32], %60 {strides = array<i32>} : memref<1x8x9xf32, #tpu.memory_space<vmem>>, vector<1x8x9xf32>,
    return
  }
  func.func @transform_0(%arg0: i32) -> (i32, i32, i32) {
    %c0_i32 = arith.constant 0 : i32
    %c0_i32_0 = arith.constant 0 : i32
    %c0_i32_1 = arith.constant 0 : i32
    return %arg0, %c0_i32, %c0_i32_0 : i32, i32, i32
  }
  func.func @transform_1(%arg0: i32) -> (i32, i32, i32) {
    %c0_i32 = arith.constant 0 : i32
    %c0_i32_0 = arith.constant 0 : i32
    %c0_i32_1 = arith.constant 0 : i32
    %c0_i32_2 = arith.constant 0 : i32
    return %c0_i32, %c0_i32_0, %c0_i32_1 : i32, i32, i32
  }
  func.func @transform_2(%arg0: i32) -> (i32, i32, i32) {
    %c0_i32 = arith.constant 0 : i32
    %c0_i32_0 = arith.constant 0 : i32
    %c0_i32_1 = arith.constant 0 : i32
    %c0_i32_2 = arith.constant 0 : i32
    return %c0_i32, %c0_i32_0, %c0_i32_1 : i32, i32, i32
  }
  func.func @transform_3(%arg0: i32) -> (i32, i32, i32) {
    %c0_i32 = arith.constant 0 : i32
    %c0_i32_0 = arith.constant 0 : i32
    %c0_i32_1 = arith.constant 0 : i32
    %c0_i32_2 = arith.constant 0 : i32
    return %c0_i32, %c0_i32_0, %c0_i32_1 : i32, i32, i32
  }
  func.func @transform_4(%arg0: i32) -> (i32, i32, i32) {
    %c0_i32 = arith.constant 0 : i32
    %c0_i32_0 = arith.constant 0 : i32
    %c0_i32_1 = arith.constant 0 : i32
    %c0_i32_2 = arith.constant 0 : i32
    return %c0_i32, %c0_i32_0, %c0_i32_1 : i32, i32, i32
  }
  func.func @transform_5(%arg0: i32) -> (i32, i32, i32) {
    %c0_i32 = arith.constant 0 : i32
    %c0_i32_0 = arith.constant 0 : i32
    %c0_i32_1 = arith.constant 0 : i32
    %c0_i32_2 = arith.constant 0 : i32
    return %c0_i32, %c0_i32_0, %c0_i32_1 : i32, i32, i32
  }
  func.func @transform_6(%arg0: i32) -> (i32, i32, i32) {
    %c0_i32 = arith.constant 0 : i32
    %c0_i32_0 = arith.constant 0 : i32
    %c0_i32_1 = arith.constant 0 : i32
    %c0_i32_2 = arith.constant 0 : i32
    return %c0_i32, %c0_i32_0, %c0_i32_1 : i32, i32, i32
  }
  func.func @transform_7(%arg0: i32) -> (i32, i32, i32) {
    %c0_i32 = arith.constant 0 : i32
    %c0_i32_0 = arith.constant 0 : i32
    %c0_i32_1 = arith.constant 0 : i32
    %c0_i32_2 = arith.constant 0 : i32
    return %c0_i32, %c0_i32_0, %c0_i32_1 : i32, i32, i32
  }
  func.func @transform_8(%arg0: i32) -> (i32, i32, i32) {
    %c0_i32 = arith.constant 0 : i32
    %c0_i32_0 = arith.constant 0 : i32
    %c0_i32_1 = arith.constant 0 : i32
    %c0_i32_2 = arith.constant 0 : i32
    return %c0_i32, %c0_i32_0, %c0_i32_1 : i32, i32, i32
  }
  func.func @transform_9(%arg0: i32) -> (i32, i32, i32) {
    %c0_i32 = arith.constant 0 : i32
    %c0_i32_0 = arith.constant 0 : i32
    %c0_i32_1 = arith.constant 0 : i32
    %c0_i32_2 = arith.constant 0 : i32
    return %c0_i32, %c0_i32_0, %c0_i32_1 : i32, i32, i32
  }
  func.func @transform_10(%arg0: i32) -> (i32, i32, i32) {
    %c0_i32 = arith.constant 0 : i32
    %c0_i32_0 = arith.constant 0 : i32
    %c0_i32_1 = arith.constant 0 : i32
    %c0_i32_2 = arith.constant 0 : i32
    return %c0_i32, %c0_i32_0, %c0_i32_1 : i32, i32, i32
  }
  func.func @transform_11(%arg0: i32) -> (i32, i32, i32) {
    %c0_i32 = arith.constant 0 : i32
    %c0_i32_0 = arith.constant 0 : i32
    %c0_i32_1 = arith.constant 0 : i32
    %c0_i32_2 = arith.constant 0 : i32
    return %c0_i32, %c0_i32_0, %c0_i32_1 : i32, i32, i32
  }
  func.func @transform_12(%arg0: i32) -> (i32, i32, i32) {
    %c0_i32 = arith.constant 0 : i32
    %c0_i32_0 = arith.constant 0 : i32
    %c0_i32_1 = arith.constant 0 : i32
    %c0_i32_2 = arith.constant 0 : i32
    return %c0_i32, %c0_i32_0, %c0_i32_1 : i32, i32, i32
  }
  func.func @transform_13(%arg0: i32) -> (i32, i32) {
    %c0_i32 = arith.constant 0 : i32
    %c0_i32_0 = arith.constant 0 : i32
    %c0_i32_1 = arith.constant 0 : i32
    return %c0_i32, %c0_i32_0 : i32, i32
  }
  func.func @transform_14(%arg0: i32) -> (i32, i32) {
    %c0_i32 = arith.constant 0 : i32
    %c0_i32_0 = arith.constant 0 : i32
    %c0_i32_1 = arith.constant 0 : i32
    return %c0_i32, %c0_i32_0 : i32, i32
  }
  func.func @transform_15(%arg0: i32) -> (i32, i32) {
    %c0_i32 = arith.constant 0 : i32
    %c0_i32_0 = arith.constant 0 : i32
    %c0_i32_1 = arith.constant 0 : i32
    return %c0_i32, %c0_i32_0 : i32, i32
  }
  func.func @transform_16(%arg0: i32) -> (i32, i32) {
    %c0_i32 = arith.constant 0 : i32
    %c0_i32_0 = arith.constant 0 : i32
    %c0_i32_1 = arith.constant 0 : i32
    return %c0_i32, %c0_i32_0 : i32, i32
  }
  func.func @transform_17(%arg0: i32) -> (i32, i32) {
    %c0_i32 = arith.constant 0 : i32
    %c0_i32_0 = arith.constant 0 : i32
    %c0_i32_1 = arith.constant 0 : i32
    return %c0_i32, %c0_i32_0 : i32, i32
  }
  func.func @transform_18(%arg0: i32) -> (i32, i32) {
    %c0_i32 = arith.constant 0 : i32
    %c0_i32_0 = arith.constant 0 : i32
    %c0_i32_1 = arith.constant 0 : i32
    return %c0_i32, %c0_i32_0 : i32, i32
  }
  func.func @transform_19(%arg0: i32) -> (i32, i32, i32) {
    %c0_i32 = arith.constant 0 : i32
    %c0_i32_0 = arith.constant 0 : i32
    %c0_i32_1 = arith.constant 0 : i32
    return %arg0, %c0_i32, %c0_i32_0 : i32, i32, i32
  }
  func.func @transform_20(%arg0: i32) -> (i32, i32, i32) {
    %c0_i32 = arith.constant 0 : i32
    %c0_i32_0 = arith.constant 0 : i32
    %c0_i32_1 = arith.constant 0 : i32
    return %arg0, %c0_i32, %c0_i32_0 : i32, i32, i32
  }
}

</mosaic_0001>

<bundles_post_ra>
// kernel: convpool_forward.3
= control target key start
LH: loop header
LB: loop body
LE: loop exit
PB: predicated region body
PF: predicated region fallthrough
CT: control target
= control target key end

     0   :  { %s2436_s18 = smov 0   ;;  %s3140_s0 = inlined_call_operand.vmem [shape: bf16[512,256], index: 0, kind: input, shape index: {}]   ;;  %s3141_s1 = inlined_call_operand.vmem [shape: bf16[256,128], index: 1, kind: input, shape index: {}]   ;;  %s3142_s2 = inlined_call_operand.vmem [shape: f32[1,128], index: 2, kind: input, shape index: {}, may-alias: {2,4}]   ;;  %s3143_s3 = inlined_call_operand.vmem [shape: bf16[128,128], index: 3, kind: input, shape index: {}]   ;;  %s3144_s4 = inlined_call_operand.vmem [shape: f32[1,128], index: 4, kind: input, shape index: {}, may-alias: {2,4}]   ;;  %s3145_s5 = inlined_call_operand.vmem [shape: bf16[512,128], index: 5, kind: output, shape index: {}]  }
   0x1 LB: > { %s1760_s19 = sadd.s32 4294967295, %s2404_s18   ;;  %p1764_p0 = scmp.ge.s32.totalorder %s2404_s18, 1  ;;  %s2404_s18 = sphi %s2436_s18, %s15_s18  }
   0x2   : > { %p189_p1 = scmp.lt.s32.totalorder %s2404_s18, 3 }
   0x4   : > { %p190_p2 = pnand %p1764_p0, %p189_p1 }
   0x5   : > { %v2198_v0 = vld [vmem:[%s3141_s1 + $0x40] sm:$0xff] (!%p190_p2)   ;;  %s1765_s22 = sshll.u32 (!%p190_p2), %s1760_s19, 5  ;;  %v2200_v2 = vld [vmem:[%s3141_s1 + $0x48] sm:$0xff] (!%p190_p2)   ;;  %v2202_v4 = vld [vmem:[%s3141_s1 + $0x50] sm:$0xff] (!%p190_p2)  }
   0x6   : > { %193 = sbr.rel (%p190_p2) target bundleno = 642 (0x282), region = 40  ;;  %v2199_v1 = vld [vmem:[%s3141_s1] sm:$0xff] (!%p190_p2)   ;;  %1990 = vmatprep.subr.bf16.mxu0 (!%p190_p2), %v2198_v0  ;;  %2174 = vmatprep.subr.bf16.mxu1 (!%p190_p2), %v2198_v0  ;;  %v2201_v3 = vld [vmem:[%s3141_s1 + $0x8] sm:$0xff] (!%p190_p2)   ;;  %p219_p3 = scmp.lt.s32.totalorder (!%p190_p2), %s1765_s22, 63  ;;  %v2203_v5 = vld [vmem:[%s3141_s1 + $0x10] sm:$0xff] (!%p190_p2)  }
   0x7   : > { %1991 = vmatpush3.bf16.msra.mxu0 (!%p190_p2), %v2199_v1  ;;  %2182 = vmatpush3.bf16.msra.mxu1 (!%p190_p2), %v2199_v1  ;;  %v2204_v6 = vld [vmem:[%s3141_s1 + $0x58] sm:$0xff] (!%p190_p2)   ;;  %v2206_v8 = vld [vmem:[%s3141_s1 + $0x60] sm:$0xff] (!%p190_p2)   ;;  %v2208_v10 = vld [vmem:[%s3141_s1 + $0x68] sm:$0xff] (!%p190_p2)  }
   0x8   : > { %1992 = vmatprep.subr.bf16.mxu0 (!%p190_p2), %v2200_v2  ;;  %2175 = vmatprep.subr.bf16.mxu1 (!%p190_p2), %v2200_v2  ;;  %v2205_v7 = vld [vmem:[%s3141_s1 + $0x18] sm:$0xff] (!%p190_p2)   ;;  %v2207_v9 = vld [vmem:[%s3141_s1 + $0x20] sm:$0xff] (!%p190_p2)   ;;  %v2209_v12 = vld [vmem:[%s3141_s1 + $0x28] sm:$0xff] (!%p190_p2)  }
   0x9   : > { %v2210_v13 = vld [vmem:[%s3141_s1 + $0x70] sm:$0xff] (!%p190_p2)   ;;  %v2212_v15 = vld [vmem:[%s3141_s1 + $0x78] sm:$0xff] (!%p190_p2)   ;;  %v2262_v48 = vld [vmem:[%s3143_s3] sm:$0xff] (!%p190_p2)  }
   0xa   : > { %v2211_v14 = vld [vmem:[%s3141_s1 + $0x30] sm:$0xff] (!%p190_p2)   ;;  %v2213_v17 = vld [vmem:[%s3141_s1 + $0x38] sm:$0xff] (!%p190_p2)   ;;  %v2263_v49 = vld [vmem:[%s3143_s3 + $0x8] sm:$0xff] (!%p190_p2)  }
   0xb   : > { %1993 = vmatpush3.bf16.msra.mxu0 (!%p190_p2), %v2201_v3  ;;  %2183 = vmatpush3.bf16.msra.mxu1 (!%p190_p2), %v2201_v3  ;;  %v2264_v50 = vld [vmem:[%s3143_s3 + $0x10] sm:$0xff] (!%p190_p2)   ;;  %v2265_v51 = vld [vmem:[%s3143_s3 + $0x18] sm:$0xff] (!%p190_p2)   ;;  %v2266_v52 = vld [vmem:[%s3143_s3 + $0x20] sm:$0xff] (!%p190_p2)  }
   0xc   : > { %1994 = vmatprep.subr.bf16.mxu0 (!%p190_p2), %v2202_v4  ;;  %2176 = vmatprep.subr.bf16.mxu1 (!%p190_p2), %v2202_v4  ;;  %v2267_v53 = vld [vmem:[%s3143_s3 + $0x28] sm:$0xff] (!%p190_p2)   ;;  %v2268_v54 = vld [vmem:[%s3143_s3 + $0x30] sm:$0xff] (!%p190_p2)   ;;  %v2269_v55 = vld [vmem:[%s3143_s3 + $0x38] sm:$0xff] (!%p190_p2)  }
   0xd   : > { %s3147_s22 = smov (!%p219_p3, %s1765_s22), 63  ;;  %v2559_v57 = vld [vmem:[%s3142_s2] ss:$0 sm:$0xff] }
   0xe   : > { %s1862_s12 = sshll.u32 %s3147_s22, 3  ;;  %s1769_s6 = sshll.u32 %s3147_s22, 2 }
   0xf   : > { %1995 = vmatpush3.bf16.msra.mxu0 %v2203_v5  ;;  %2184 = vmatpush3.bf16.msra.mxu1 %v2203_v5  ;;  %s2477_s17 = scalar_lea.vmem %s3140_s0, %s1862_s12  ;;  %s2922_s9 = scalar_lea.vmem %s3145_s5, %s1769_s6 }
  0x10   : > { %1996 = vmatprep.subr.bf16.mxu0 %v2204_v6  ;;  %2177 = vmatprep.subr.bf16.mxu1 %v2204_v6  ;;  %v2216_v11 = vld [vmem:[%s2477_s17 + $0x4] ss:$8 sps:$4 sm:$0xff]   ;;  %v2214_v18 = vld [vmem:[%s2477_s17] ss:$8 sps:$4 sm:$0xff]   ;;  %v2217_v19 = vld [vmem:[%s2477_s17 + $0x14] ss:$8 sps:$4 sm:$0xff]  }
  0x11   : > { %591 = vmatprep.mubr.bf16.mxu0 %v2216_v11  ;;  %v2237_v16 = vld [vmem:[%s2477_s17 + $0xc4] ss:$8 sps:$4 sm:$0xff]   ;;  %v2235_v20 = vld [vmem:[%s2477_s17 + $0xc0] ss:$8 sps:$4 sm:$0xff]   ;;  %v2241_v21 = vld [vmem:[%s2477_s17 + $0xd4] ss:$8 sps:$4 sm:$0xff]  }
  0x12   : > { %687 = vmatprep.mubr.bf16.mxu1 %v2237_v16  ;;  %v2219_v22 = vld [vmem:[%s2477_s17 + $0x10] ss:$8 sps:$4 sm:$0xff]   ;;  %v2220_v23 = vld [vmem:[%s2477_s17 + $0x24] ss:$8 sps:$4 sm:$0xff]   ;;  %v2222_v26 = vld [vmem:[%s2477_s17 + $0x20] ss:$8 sps:$4 sm:$0xff]  }
  0x13   : > { %1997 = vmatpush3.bf16.msra.mxu0 %v2205_v7  ;;  %2185 = vmatpush3.bf16.msra.mxu1 %v2205_v7  ;;  %v2243_v24 = vld [vmem:[%s2477_s17 + $0xd0] ss:$8 sps:$4 sm:$0xff]   ;;  %v2247_v25 = vld [vmem:[%s2477_s17 + $0xe4] ss:$8 sps:$4 sm:$0xff]   ;;  %v2223_v27 = vld [vmem:[%s2477_s17 + $0x34] ss:$8 sps:$4 sm:$0xff]  }
  0x14   : > { %1998 = vmatprep.subr.bf16.mxu0 %v2206_v8  ;;  %2178 = vmatprep.subr.bf16.mxu1 %v2206_v8  ;;  %v2249_v28 = vld [vmem:[%s2477_s17 + $0xe0] ss:$8 sps:$4 sm:$0xff]   ;;  %v2253_v29 = vld [vmem:[%s2477_s17 + $0xf4] ss:$8 sps:$4 sm:$0xff]   ;;  %v2225_v30 = vld [vmem:[%s2477_s17 + $0x30] ss:$8 sps:$4 sm:$0xff]  }
  0x15   : > { %v2226_v31 = vld [vmem:[%s2477_s17 + $0x44] ss:$8 sps:$4 sm:$0xff]   ;;  %v2255_v32 = vld [vmem:[%s2477_s17 + $0xf0] ss:$8 sps:$4 sm:$0xff]   ;;  %v2228_v33 = vld [vmem:[%s2477_s17 + $0x40] ss:$8 sps:$4 sm:$0xff]  }
  0x16   : > { %v2229_v34 = vld [vmem:[%s2477_s17 + $0x54] ss:$8 sps:$4 sm:$0xff]   ;;  %v2231_v35 = vld [vmem:[%s2477_s17 + $0x50] ss:$8 sps:$4 sm:$0xff]   ;;  %v2232_v36 = vld [vmem:[%s2477_s17 + $0x64] ss:$8 sps:$4 sm:$0xff]  }
  0x17   : > { %1999 = vmatpush3.bf16.msra.mxu0 %v2207_v9  ;;  %2186 = vmatpush3.bf16.msra.mxu1 %v2207_v9  ;;  %v2234_v37 = vld [vmem:[%s2477_s17 + $0x60] ss:$8 sps:$4 sm:$0xff]   ;;  %v2238_v38 = vld [vmem:[%s2477_s17 + $0x74] ss:$8 sps:$4 sm:$0xff]   ;;  %v2240_v39 = vld [vmem:[%s2477_s17 + $0x70] ss:$8 sps:$4 sm:$0xff]  }
  0x18   : > { %2000 = vmatprep.subr.bf16.mxu0 %v2208_v10  ;;  %2179 = vmatprep.subr.bf16.mxu1 %v2208_v10  ;;  %v2244_v40 = vld [vmem:[%s2477_s17 + $0x84] ss:$8 sps:$4 sm:$0xff]   ;;  %v2246_v41 = vld [vmem:[%s2477_s17 + $0x80] ss:$8 sps:$4 sm:$0xff]   ;;  %v2250_v42 = vld [vmem:[%s2477_s17 + $0x94] ss:$8 sps:$4 sm:$0xff]  }
  0x19   : > { %v2252_v43 = vld [vmem:[%s2477_s17 + $0x90] ss:$8 sps:$4 sm:$0xff]   ;;  %v2256_v44 = vld [vmem:[%s2477_s17 + $0xa4] ss:$8 sps:$4 sm:$0xff]   ;;  %v2258_v45 = vld [vmem:[%s2477_s17 + $0xa0] ss:$8 sps:$4 sm:$0xff]  }
  0x1a   : > { %v2259_v46 = vld [vmem:[%s2477_s17 + $0xb4] ss:$8 sps:$4 sm:$0xff]   ;;  %v2261_v47 = vld [vmem:[%s2477_s17 + $0xb0] ss:$8 sps:$4 sm:$0xff]  }
  0x1b   : > { %2001 = vmatpush3.bf16.msra.mxu0 %v2209_v12  ;;  %2187 = vmatpush3.bf16.msra.mxu1 %v2209_v12 }
  0x1c   : > { %2002 = vmatprep.subr.bf16.mxu0 %v2210_v13  ;;  %2180 = vmatprep.subr.bf16.mxu1 %v2210_v13 }
  0x1f   : > { %2003 = vmatpush3.bf16.msra.mxu0 %v2211_v14  ;;  %2188 = vmatpush3.bf16.msra.mxu1 %v2211_v14 }
  0x20   : > { %2004 = vmatprep.subr.bf16.mxu0 %v2212_v15  ;;  %2181 = vmatprep.subr.bf16.mxu1 %v2212_v15 }
  0x23   : > { %2005 = vmatpush3.bf16.msra.mxu0 %v2213_v17  ;;  %2189 = vmatpush3.bf16.msra.mxu1 %v2213_v17 }
  0x24   : > { %2126 = vmatprep.subr.bf16.mxu1 %v2262_v48 }
  0x26   : > { %592 = vmatmul.mubr.bf16.vlgmr.msra.gmra.mrb[0].mxu0 %v2214_v18  ;;  %688 = vmatmul.mubr.bf16.vlgmr.msra.gmra.mrb[0].mxu1 %v2235_v20 }
  0x27   : > { %599 = vmatprep.mubr.bf16.mxu0 %v2217_v19  ;;  %695 = vmatprep.mubr.bf16.mxu1 %v2241_v21 }
  0x28   : > { %2127 = vmatpush3.bf16.msra.mxu1 %v2262_v48 }
  0x29   : > { %2128 = vmatprep.subr.bf16.mxu1 %v2263_v49 }
  0x2c   : > { %2129 = vmatpush3.bf16.msra.mxu1 %v2263_v49 }
  0x2d   : > { %2130 = vmatprep.subr.bf16.mxu1 %v2264_v50 }
  0x2e   : > { %600 = vmatmul.mubr.bf16.gmra.mrb[4].mxu0 %v2219_v22  ;;  %696 = vmatmul.mubr.bf16.gmra.mrb[4].mxu1 %v2243_v24 }
  0x2f   : > { %607 = vmatprep.mubr.bf16.mxu0 %v2220_v23  ;;  %703 = vmatprep.mubr.bf16.mxu1 %v2247_v25 }
  0x30   : > { %2131 = vmatpush3.bf16.msra.mxu1 %v2264_v50 }
  0x31   : > { %2132 = vmatprep.subr.bf16.mxu1 %v2265_v51 }
  0x34   : > { %2133 = vmatpush3.bf16.msra.mxu1 %v2265_v51 }
  0x35   : > { %2134 = vmatprep.subr.bf16.mxu1 %v2266_v52 }
  0x36   : > { %608 = vmatmul.mubr.bf16.gmra.mrb[8].mxu0 %v2222_v26  ;;  %704 = vmatmul.mubr.bf16.gmra.mrb[8].mxu1 %v2249_v28 }
  0x37   : > { %615 = vmatprep.mubr.bf16.mxu0 %v2223_v27  ;;  %711 = vmatprep.mubr.bf16.mxu1 %v2253_v29 }
  0x38   : > { %2135 = vmatpush3.bf16.msra.mxu1 %v2266_v52 }
  0x39   : > { %2136 = vmatprep.subr.bf16.mxu1 %v2267_v53 }
  0x3c   : > { %2137 = vmatpush3.bf16.msra.mxu1 %v2267_v53 }
  0x3d   : > { %2138 = vmatprep.subr.bf16.mxu1 %v2268_v54 }
  0x3e   : > { %616 = vmatmul.mubr.bf16.gmra.mrb[12].mxu0 %v2225_v30  ;;  %712 = vmatmul.mubr.bf16.gmra.mrb[12].mxu1 %v2255_v32 }
  0x3f   : > { %623 = vmatprep.mubr.bf16.mxu0 %v2226_v31 }
  0x40   : > { %2139 = vmatpush3.bf16.msra.mxu1 %v2268_v54 }
  0x41   : > { %2140 = vmatprep.subr.bf16.mxu1 %v2269_v55 }
  0x44   : > { %2141 = vmatpush3.bf16.msra.mxu1 %v2269_v55 }
  0x46   : > { %624 = vmatmul.mubr.bf16.gmra.mrb[16].mxu0 %v2228_v33 }
  0x47   : > { %631 = vmatprep.mubr.bf16.mxu0 %v2229_v34 }
  0x4e   : > { %632 = vmatmul.mubr.bf16.gmra.mrb[20].mxu0 %v2231_v35 }
  0x4f   : > { %639 = vmatprep.mubr.bf16.mxu0 %v2232_v36 }
  0x56   : > { %640 = vmatmul.mubr.bf16.gmra.mrb[24].mxu0 %v2234_v37 }
  0x57   : > { %647 = vmatprep.mubr.bf16.mxu0 %v2238_v38 }
  0x5e   : > { %648 = vmatmul.mubr.bf16.gmra.mrb[28].mxu0 %v2240_v39 }
  0x5f   : > { %655 = vmatprep.mubr.bf16.mxu0 %v2244_v40 }
  0x66   : > { %656 = vmatmul.mubr.bf16.gmra.mrb[32].mxu0 %v2246_v41 }
  0x67   : > { %663 = vmatprep.mubr.bf16.mxu0 %v2250_v42 }
  0x6e   : > { %664 = vmatmul.mubr.bf16.gmra.mrb[36].mxu0 %v2252_v43 }
  0x6f   : > { %671 = vmatprep.mubr.bf16.mxu0 %v2256_v44 }
  0x76   : > { %672 = vmatmul.mubr.bf16.gmra.mrb[40].mxu0 %v2258_v45 }
  0x77   : > { %679 = vmatprep.mubr.bf16.mxu0 %v2259_v46 }
  0x7e   : > { %680 = vmatmul.mubr.bf16.gmra.mrb[44].mxu0 %v2261_v47 }
  0xf9   : > { %v2006_v56 = vpop.f32.mrb[0].mxu0  ;;  %v2078_v59 = vpop.f32.mrb[0].mxu1 }
  0xfa   : > { %v2007_v58 = vpop.f32.mrb[1].mxu0  ;;  %v2079_v62 = vpop.f32.mrb[1].mxu1 }
  0xfb   : > { %v2008_v60 = vadd.f32 %v2007_v58, %v2006_v56  ;;  %v2009_v61 = vpop.f32.mrb[2].mxu0  ;;  %v2080_v0 = vadd.f32 %v2079_v62, %v2078_v59  ;;  %v2081_v1 = vpop.f32.mrb[2].mxu1 }
  0xfc   : > { %v2010_v63 = vpop.f32.mrb[3].mxu0  ;;  %v2082_v4 = vpop.f32.mrb[3].mxu1 }
  0xfd   : > { %v2562_v2 = vadd.f32 %v2008_v60, %v2559_v57  ;;  %v2011_v3 = vadd.f32 %v2010_v63, %v2009_v61  ;;  %v2565_v5 = vadd.f32 %v2080_v0, %v2559_v57  ;;  %v2083_v6 = vadd.f32 %v2082_v4, %v2081_v1 }
  0xff   : > { %v720_v7 = vmul.f32 %v2562_v2, %v2562_v2  ;;  %v2570_v8 = vadd.f32 %v2011_v3, %v2559_v57  ;;  %v744_v9 = vmul.f32 %v2565_v5, %v2565_v5  ;;  %v2575_v10 = vadd.f32 %v2083_v6, %v2559_v57 }
 0x101   : > { %v752_v11 = vmul.f32 %v720_v7, %v2562_v2  ;;  %v721_v12 = vmul.f32 %v2570_v8, %v2570_v8  ;;  %v2012_v13 = vpop.f32.mrb[4].mxu0  ;;  %v776_v15 = vmul.f32 %v744_v9, %v2565_v5  ;;  %v745_v16 = vmul.f32 %v2575_v10, %v2575_v10  ;;  %v2084_v17 = vpop.f32.mrb[4].mxu1 }
 0x102   : > { %v2013_v14 = vpop.f32.mrb[5].mxu0  ;;  %v2085_v22 = vpop.f32.mrb[5].mxu1 }
 0x103   : > { %v784_v18 = vmul.f32 0.044715, %v752_v11  ;;  %v753_v19 = vmul.f32 %v721_v12, %v2570_v8  ;;  %v2014_v20 = vadd.f32 %v2013_v14, %v2012_v13  ;;  %v2015_v21 = vpop.f32.mrb[6].mxu0  ;;  %v808_v24 = vmul.f32 0.044715, %v776_v15  ;;  %v2087_v27 = vpop.f32.mrb[6].mxu1 }
 0x104   : > { %v2016_v23 = vpop.f32.mrb[7].mxu0  ;;  %v777_v25 = vmul.f32 %v745_v16, %v2575_v10  ;;  %v2086_v26 = vadd.f32 %v2085_v22, %v2084_v17  ;;  %v2088_v32 = vpop.f32.mrb[7].mxu1 }
 0x105   : > { %v816_v28 = vadd.f32 %v784_v18, %v2562_v2  ;;  %v785_v29 = vmul.f32 0.044715, %v753_v19  ;;  %v2587_v30 = vadd.f32 %v2014_v20, %v2559_v57  ;;  %v2017_v31 = vadd.f32 %v2016_v23, %v2015_v21 }
 0x106   : > { %v840_v33 = vadd.f32 %v808_v24, %v2565_v5  ;;  %v809_v34 = vmul.f32 0.044715, %v777_v25  ;;  %v2591_v35 = vadd.f32 %v2086_v26, %v2559_v57  ;;  %v2089_v36 = vadd.f32 %v2088_v32, %v2087_v27 }
 0x107   : > { %v848_v37 = vmul.f32 0.7978846, %v816_v28  ;;  %v817_v38 = vadd.f32 %v785_v29, %v2570_v8  ;;  %v722_v39 = vmul.f32 %v2587_v30, %v2587_v30  ;;  %v2597_v40 = vadd.f32 %v2017_v31, %v2559_v57 }
 0x108   : > { %v872_v41 = vmul.f32 0.7978846, %v840_v33  ;;  %v841_v42 = vadd.f32 %v809_v34, %v2575_v10  ;;  %v746_v43 = vmul.f32 %v2591_v35, %v2591_v35  ;;  %v2603_v44 = vadd.f32 %v2089_v36, %v2559_v57 }
 0x109   : > { %v849_v45 = vmul.f32 0.7978846, %v817_v38  ;;  %v754_v46 = vmul.f32 %v722_v39, %v2587_v30  ;;  %v723_v47 = vmul.f32 %v2597_v40, %v2597_v40  ;;  %v2018_v48 = vpop.f32.mrb[8].mxu0  ;;  %2270 = vtanh.f32 %v848_v37  ;;  %v2090_v52 = vpop.f32.mrb[8].mxu1 }
 0x10a   : > { %v2019_v49 = vpop.f32.mrb[9].mxu0  ;;  %v778_v50 = vmul.f32 %v746_v43, %v2591_v35  ;;  %v747_v51 = vmul.f32 %v2603_v44, %v2603_v44  ;;  %v2091_v58 = vpop.f32.mrb[9].mxu1  ;;  %v873_v60 = vmul.f32 0.7978846, %v841_v42 }
 0x10b   : > { %v786_v53 = vmul.f32 0.044715, %v754_v46  ;;  %v755_v54 = vmul.f32 %v723_v47, %v2597_v40  ;;  %v2020_v55 = vadd.f32 %v2019_v49, %v2018_v48  ;;  %v2021_v56 = vpop.f32.mrb[10].mxu0  ;;  %2272 = vtanh.f32 %v849_v45  ;;  %v2093_v63 = vpop.f32.mrb[10].mxu1 }
 0x10c   : > { %v2022_v59 = vpop.f32.mrb[11].mxu0  ;;  %v779_v61 = vmul.f32 %v747_v51, %v2603_v44  ;;  %v2092_v62 = vadd.f32 %v2091_v58, %v2090_v52  ;;  %2274 = vtanh.f32 %v872_v41  ;;  %v2094_v6 = vpop.f32.mrb[11].mxu1  ;;  %v810_v7 = vmul.f32 0.044715, %v778_v50 }
 0x10d   : > { %v818_v0 = vadd.f32 %v786_v53, %v2587_v30  ;;  %v787_v1 = vmul.f32 0.044715, %v755_v54  ;;  %v2615_v3 = vadd.f32 %v2020_v55, %v2559_v57  ;;  %v2023_v4 = vadd.f32 %v2022_v59, %v2021_v56 }
 0x10e   : > { %v811_v9 = vmul.f32 0.044715, %v779_v61  ;;  %v2618_v11 = vadd.f32 %v2092_v62, %v2559_v57  ;;  %v2095_v12 = vadd.f32 %v2094_v6, %v2093_v63  ;;  %2276 = vtanh.f32 %v873_v60 }
 0x10f   : > { %v850_v13 = vmul.f32 0.7978846, %v818_v0  ;;  %v819_v14 = vadd.f32 %v787_v1, %v2597_v40  ;;  %v724_v15 = vmul.f32 %v2615_v3, %v2615_v3  ;;  %v2624_v16 = vadd.f32 %v2023_v4, %v2559_v57 }
 0x110   : > { %v748_v17 = vmul.f32 %v2618_v11, %v2618_v11  ;;  %v2629_v18 = vadd.f32 %v2095_v12, %v2559_v57  ;;  %v842_v24 = vadd.f32 %v810_v7, %v2591_v35  ;;  %v843_v25 = vadd.f32 %v811_v9, %v2603_v44 }
 0x111   : > { %2278 = vtanh.f32 %v850_v13  ;;  %v851_v19 = vmul.f32 0.7978846, %v819_v14  ;;  %v756_v20 = vmul.f32 %v724_v15, %v2615_v3  ;;  %v725_v21 = vmul.f32 %v2624_v16, %v2624_v16  ;;  %v2024_v22 = vpop.f32.mrb[12].mxu0  ;;  %v2096_v28 = vpop.f32.mrb[12].mxu1 }
 0x112   : > { %v2025_v23 = vpop.f32.mrb[13].mxu0  ;;  %v780_v26 = vmul.f32 %v748_v17, %v2618_v11  ;;  %v749_v27 = vmul.f32 %v2629_v18, %v2629_v18  ;;  %v2097_v36 = vpop.f32.mrb[13].mxu1  ;;  %v874_v54 = vmul.f32 0.7978846, %v842_v24  ;;  %v2654_v63 = vmul.f32 0.7978846, %v843_v25 }
 0x113   : > { %v2271_v29 = vpop.eup %2270  ;;  %2280 = vtanh.f32 %v851_v19  ;;  %v788_v31 = vmul.f32 0.044715, %v756_v20  ;;  %v757_v32 = vmul.f32 %v725_v21, %v2624_v16  ;;  %v2026_v33 = vadd.f32 %v2025_v23, %v2024_v22  ;;  %v2027_v34 = vpop.f32.mrb[14].mxu0 }
 0x114   : > { %v2028_v37 = vpop.f32.mrb[15].mxu0  ;;  %v912_v38 = vadd.f32 1.0, %v2271_v29  ;;  %v812_v39 = vmul.f32 0.044715, %v780_v26  ;;  %v781_v41 = vmul.f32 %v749_v27, %v2629_v18  ;;  %v2098_v42 = vadd.f32 %v2097_v36, %v2096_v28  ;;  %v2099_v43 = vpop.f32.mrb[14].mxu1 }
 0x115   : > { %v2273_v45 = vpop.eup %2272  ;;  %v820_v46 = vadd.f32 %v788_v31, %v2615_v3  ;;  %v789_v47 = vmul.f32 0.044715, %v757_v32  ;;  %v2643_v48 = vadd.f32 %v2026_v33, %v2559_v57  ;;  %v2029_v49 = vadd.f32 %v2028_v37, %v2027_v34  ;;  %v2100_v50 = vpop.f32.mrb[15].mxu1 }
 0x116   : > { %v2645_v51 = vpop.eup %2274  ;;  %v913_v52 = vadd.f32 1.0, %v2273_v45  ;;  %v944_v53 = vmul.f32 0.5, %v912_v38  ;;  %v813_v55 = vmul.f32 0.044715, %v781_v41  ;;  %v844_v0 = vadd.f32 %v812_v39, %v2618_v11 }
 0x117   : > { %v852_v56 = vmul.f32 0.7978846, %v820_v46  ;;  %v821_v58 = vadd.f32 %v789_v47, %v2624_v16  ;;  %v726_v59 = vmul.f32 %v2643_v48, %v2643_v48  ;;  %v2651_v60 = vadd.f32 %v2029_v49, %v2559_v57 }
 0x118   : > { %v945_v61 = vmul.f32 0.5, %v913_v52  ;;  %v976_v62 = vmul.f32 %v944_v53, %v2562_v2  ;;  %v2660_v9 = vpop.eup %2276  ;;  %v845_v14 = vadd.f32 %v813_v55, %v2629_v18  ;;  %v2665_v2 = vadd.f32 %v2098_v42, %v2559_v57 }
 0x119   : > { %v853_v1 = vmul.f32 0.7978846, %v821_v58  ;;  %v758_v4 = vmul.f32 %v726_v59, %v2643_v48  ;;  %v727_v6 = vmul.f32 %v2651_v60, %v2651_v60  ;;  %v2030_v7 = vpop.f32.mrb[16].mxu0  ;;  %2282 = vtanh.f32 %v852_v56 }
 0x11a   : > { %v2031_v12 = vpop.f32.mrb[17].mxu0  ;;  %v977_v13 = vmul.f32 %v945_v61, %v2570_v8  ;;  %v2101_v15 = vadd.f32 %v2100_v50, %v2099_v43  ;;  %v750_v26 = vmul.f32 %v2665_v2, %v2665_v2  ;;  %v2686_v45 = vmul.f32 0.7978846, %v844_v0 }
 0x11b   : > { %v2279_v17 = vpop.eup %2278  ;;  %v790_v19 = vmul.f32 0.044715, %v758_v4  ;;  %v759_v20 = vmul.f32 %v727_v6, %v2651_v60  ;;  %v2032_v21 = vadd.f32 %v2031_v12, %v2030_v7  ;;  %v2033_v22 = vpop.f32.mrb[18].mxu0  ;;  %2284 = vtanh.f32 %v853_v1 }
 0x11c   : > { %v914_v23 = vadd.f32 1.0, %v2279_v17  ;;  %v2034_v24 = vpop.f32.mrb[19].mxu0  ;;  %v1008_v25 = vpack.c.bf16 %v977_v13, %v976_v62  ;;  %v2671_v8 = vadd.f32 %v2101_v15, %v2559_v57  ;;  %v782_v36 = vmul.f32 %v750_v26, %v2665_v2 }
 0x11d   : > { %v2281_v27 = vpop.eup %2280  ;;  %v822_v28 = vadd.f32 %v790_v19, %v2643_v48  ;;  %v791_v29 = vmul.f32 0.044715, %v759_v20  ;;  %v2675_v31 = vadd.f32 %v2032_v21, %v2559_v57  ;;  %v2035_v32 = vadd.f32 %v2034_v24, %v2033_v22 }
 0x11e   : > { %v946_v33 = vmul.f32 0.5, %v914_v23  ;;  %v915_v34 = vadd.f32 1.0, %v2281_v27  ;;  %2142 = vmatprep.mubr.bf16.mxu1 %v1008_v25  ;;  %v751_v37 = vmul.f32 %v2671_v8, %v2671_v8  ;;  %v814_v46 = vmul.f32 0.044715, %v782_v36 }
 0x11f   : > { %v854_v38 = vmul.f32 0.7978846, %v822_v28  ;;  %v823_v39 = vadd.f32 %v791_v29, %v2651_v60  ;;  %v728_v41 = vmul.f32 %v2675_v31, %v2675_v31  ;;  %v2684_v42 = vadd.f32 %v2035_v32, %v2559_v57 }
 0x120   : > { %v947_v43 = vmul.f32 0.5, %v915_v34  ;;  %2286 = vtanh.f32 %v874_v54  ;;  %v978_v53 = vmul.f32 %v946_v33, %v2587_v30  ;;  %v2693_v58 = vmul.f32 0.7978846, %v845_v14 }
 0x121   : > { %v855_v47 = vmul.f32 0.7978846, %v823_v39  ;;  %v760_v49 = vmul.f32 %v728_v41, %v2675_v31  ;;  %v729_v50 = vmul.f32 %v2684_v42, %v2684_v42  ;;  %v2036_v52 = vpop.f32.mrb[20].mxu0  ;;  %2288 = vtanh.f32 %v854_v38 }
 0x122   : > { %v979_v55 = vmul.f32 %v947_v43, %v2597_v40  ;;  %v2037_v56 = vpop.f32.mrb[21].mxu0  ;;  %v783_v59 = vmul.f32 %v751_v37, %v2671_v8  ;;  %v846_v12 = vadd.f32 %v814_v46, %v2665_v2  ;;  %v936_v30 = vadd.f32 1.0, %v2645_v51 }
 0x123   : > { %v2283_v61 = vpop.eup %2282  ;;  %v792_v62 = vmul.f32 0.044715, %v760_v49  ;;  %v761_v54 = vmul.f32 %v729_v50, %v2684_v42  ;;  %v2038_v0 = vadd.f32 %v2037_v56, %v2036_v52  ;;  %v2039_v1 = vpop.f32.mrb[22].mxu0  ;;  %2290 = vtanh.f32 %v855_v47 }
 0x124   : > { %v2040_v4 = vpop.f32.mrb[23].mxu0  ;;  %v1009_v6 = vpack.c.bf16 %v979_v55, %v978_v53  ;;  %v916_v7 = vadd.f32 1.0, %v2283_v61  ;;  %v815_v21 = vmul.f32 0.044715, %v783_v59  ;;  %v937_v22 = vadd.f32 1.0, %v2660_v9 }
 0x125   : > { %v2285_v40 = vpop.eup %2284  ;;  %v824_v13 = vadd.f32 %v792_v62, %v2675_v31  ;;  %v793_v14 = vmul.f32 0.044715, %v761_v54  ;;  %v2701_v15 = vadd.f32 %v2038_v0, %v2559_v57  ;;  %v2041_v17 = vadd.f32 %v2040_v4, %v2039_v1 }
 0x126   : > { %2143 = vmatmul.mubr.bf16.vlgmr.msra.gmra.mrb[16].mxu1 %v1009_v6  ;;  %v917_v19 = vadd.f32 1.0, %v2285_v40  ;;  %v948_v20 = vmul.f32 0.5, %v916_v7  ;;  %v968_v28 = vmul.f32 0.5, %v936_v30  ;;  %v969_v29 = vmul.f32 0.5, %v937_v22 }
 0x127   : > { %v856_v23 = vmul.f32 0.7978846, %v824_v13  ;;  %v825_v24 = vadd.f32 %v793_v14, %v2684_v42  ;;  %v730_v51 = vmul.f32 %v2701_v15, %v2701_v15  ;;  %v2708_v25 = vadd.f32 %v2041_v17, %v2559_v57 }
 0x128   : > { %v949_v26 = vmul.f32 0.5, %v917_v19  ;;  %v980_v27 = vmul.f32 %v948_v20, %v2615_v3  ;;  %v2716_v39 = vmul.f32 %v968_v28, %v2565_v5  ;;  %v2719_v41 = vmul.f32 %v969_v29, %v2575_v10 }
 0x129   : > { %v857_v32 = vmul.f32 0.7978846, %v825_v24  ;;  %v762_v33 = vmul.f32 %v730_v51, %v2701_v15  ;;  %v731_v9 = vmul.f32 %v2708_v25, %v2708_v25  ;;  %v2042_v34 = vpop.f32.mrb[24].mxu0  ;;  %2292 = vtanh.f32 %v856_v23 }
 0x12a   : > { %v2287_v36 = vpop.eup %2286  ;;  %v2043_v37 = vpop.f32.mrb[25].mxu0  ;;  %v981_v38 = vmul.f32 %v949_v26, %v2624_v16  ;;  %2294 = vtanh.f32 %v2654_v63  ;;  %v847_v16 = vadd.f32 %v815_v21, %v2671_v8  ;;  %v1020_v5 = vpack.c.bf16 %v2719_v41, %v2716_v39 }
 0x12b   : > { %v2289_v3 = vpop.eup %2288  ;;  %v794_v43 = vmul.f32 0.044715, %v762_v33  ;;  %v763_v46 = vmul.f32 %v731_v9, %v2708_v25  ;;  %v2044_v47 = vadd.f32 %v2043_v37, %v2042_v34  ;;  %v2045_v49 = vpop.f32.mrb[26].mxu0  ;;  %2296 = vtanh.f32 %v857_v32 }
 0x12c   : > { %v2046_v50 = vpop.f32.mrb[27].mxu0  ;;  %v1010_v52 = vpack.c.bf16 %v981_v38, %v980_v27  ;;  %v918_v53 = vadd.f32 1.0, %v2289_v3  ;;  %v878_v54 = vmul.f32 0.7978846, %v846_v12  ;;  %2298 = vtanh.f32 %v2686_v45 }
 0x12d   : > { %v2291_v55 = vpop.eup %2290  ;;  %v826_v10 = vadd.f32 %v794_v43, %v2701_v15  ;;  %v795_v56 = vmul.f32 0.044715, %v763_v46  ;;  %v2728_v63 = vadd.f32 %v2044_v47, %v2559_v57  ;;  %v2047_v59 = vadd.f32 %v2046_v50, %v2045_v49 }
 0x12e   : > { %2146 = vmatprep.mubr.bf16.mxu1 %v1010_v52  ;;  %v919_v61 = vadd.f32 1.0, %v2291_v55  ;;  %v950_v62 = vmul.f32 0.5, %v918_v53  ;;  %v879_v30 = vmul.f32 0.7978846, %v847_v16  ;;  %v938_v40 = vadd.f32 1.0, %v2287_v36 }
 0x12f   : > { %v858_v0 = vmul.f32 0.7978846, %v826_v10  ;;  %v827_v1 = vadd.f32 %v795_v56, %v2708_v25  ;;  %v732_v4 = vmul.f32 %v2728_v63, %v2728_v63  ;;  %v2735_v6 = vadd.f32 %v2047_v59, %v2559_v57 }
 0x130   : > { %v951_v7 = vmul.f32 0.5, %v919_v61  ;;  %2300 = vtanh.f32 %v2693_v58  ;;  %v982_v19 = vmul.f32 %v950_v62, %v2643_v48  ;;  %v970_v29 = vmul.f32 0.5, %v938_v40 }
 0x131   : > { %v859_v13 = vmul.f32 0.7978846, %v827_v1  ;;  %v764_v14 = vmul.f32 %v732_v4, %v2728_v63  ;;  %v733_v45 = vmul.f32 %v2735_v6, %v2735_v6  ;;  %v2048_v12 = vpop.f32.mrb[28].mxu0  ;;  %2302 = vtanh.f32 %v858_v0 }
 0x132   : > { %v2049_v17 = vpop.f32.mrb[29].mxu0  ;;  %v983_v20 = vmul.f32 %v951_v7, %v2651_v60  ;;  %2304 = vtanh.f32 %v878_v54  ;;  %v2755_v52 = vmul.f32 %v970_v29, %v2591_v35 }
 0x133   : > { %v2293_v21 = vpop.eup %2292  ;;  %v796_v22 = vmul.f32 0.044715, %v764_v14  ;;  %v765_v23 = vmul.f32 %v733_v45, %v2735_v6  ;;  %v2050_v24 = vadd.f32 %v2049_v17, %v2048_v12  ;;  %v2051_v58 = vpop.f32.mrb[30].mxu0  ;;  %2306 = vtanh.f32 %v859_v13 }
 0x134   : > { %v2295_v51 = vpop.eup %2294  ;;  %v2052_v26 = vpop.f32.mrb[31].mxu0  ;;  %v1011_v27 = vpack.c.bf16 %v983_v20, %v982_v19  ;;  %v920_v28 = vadd.f32 1.0, %v2293_v21  ;;  %2308 = vtanh.f32 %v879_v30 }
 0x135   : > { %v2297_v32 = vpop.eup %2296  ;;  %v828_v33 = vadd.f32 %v796_v22, %v2728_v63  ;;  %v797_v48 = vmul.f32 0.044715, %v765_v23  ;;  %v2746_v60 = vadd.f32 %v2050_v24, %v2559_v57  ;;  %v2053_v9 = vadd.f32 %v2052_v26, %v2051_v58 }
 0x136   : > { %2147 = vmatmul.mubr.bf16.gmra.mrb[20].mxu1 %v1011_v27  ;;  %v921_v34 = vadd.f32 1.0, %v2297_v32  ;;  %v952_v36 = vmul.f32 0.5, %v920_v28  ;;  %v939_v37 = vadd.f32 1.0, %v2295_v51  ;;  %v2299_v47 = vpop.eup %2298 }
 0x137   : > { %v860_v38 = vmul.f32 0.7978846, %v828_v33  ;;  %v829_v3 = vadd.f32 %v797_v48, %v2735_v6  ;;  %v734_v43 = vmul.f32 %v2746_v60, %v2746_v60  ;;  %v2752_v46 = vadd.f32 %v2053_v9, %v2559_v57 }
 0x138   : > { %v953_v49 = vmul.f32 0.5, %v921_v34  ;;  %v971_v50 = vmul.f32 0.5, %v939_v37  ;;  %v984_v61 = vmul.f32 %v952_v36, %v2675_v31  ;;  %v940_v0 = vadd.f32 1.0, %v2299_v47 }
 0x139   : > { %v861_v53 = vmul.f32 0.7978846, %v829_v3  ;;  %v766_v16 = vmul.f32 %v734_v43, %v2746_v60  ;;  %v735_v55 = vmul.f32 %v2752_v46, %v2752_v46  ;;  %v2054_v10 = vpop.f32.mrb[32].mxu0  ;;  %2310 = vtanh.f32 %v860_v38 }
 0x13a   : > { %v2301_v56 = vpop.eup %2300  ;;  %v2055_v59 = vpop.f32.mrb[33].mxu0  ;;  %v985_v62 = vmul.f32 %v953_v49, %v2684_v42  ;;  %v2763_v54 = vmul.f32 %v971_v50, %v2603_v44  ;;  %v972_v24 = vmul.f32 0.5, %v940_v0 }
 0x13b   : > { %v2303_v35 = vpop.eup %2302  ;;  %v798_v1 = vmul.f32 0.044715, %v766_v16  ;;  %v767_v4 = vmul.f32 %v735_v55, %v2752_v46  ;;  %v2056_v7 = vadd.f32 %v2055_v59, %v2054_v10  ;;  %v2057_v30 = vpop.f32.mrb[34].mxu0  ;;  %2312 = vtanh.f32 %v861_v53 }
 0x13c   : > { %v2305_v40 = vpop.eup %2304  ;;  %v2058_v13 = vpop.f32.mrb[35].mxu0  ;;  %v1012_v14 = vpack.c.bf16 %v985_v62, %v984_v61  ;;  %v922_v45 = vadd.f32 1.0, %v2303_v35  ;;  %v1021_v31 = vpack.c.bf16 %v2763_v54, %v2755_v52  ;;  %v941_v12 = vadd.f32 1.0, %v2301_v56 }
 0x13d   : > { %v2307_v42 = vpop.eup %2306  ;;  %v830_v44 = vadd.f32 %v798_v1, %v2746_v60  ;;  %v799_v17 = vmul.f32 0.044715, %v767_v4  ;;  %v2770_v19 = vadd.f32 %v2056_v7, %v2559_v57  ;;  %v2059_v20 = vadd.f32 %v2058_v13, %v2057_v30 }
 0x13e   : > { %v2309_v21 = vpop.eup %2308  ;;  %2150 = vmatprep.mubr.bf16.mxu1 %v1012_v14  ;;  %v923_v22 = vadd.f32 1.0, %v2307_v42  ;;  %v954_v23 = vmul.f32 0.5, %v922_v45  ;;  %v973_v58 = vmul.f32 0.5, %v941_v12  ;;  %v2780_v33 = vmul.f32 %v972_v24, %v2618_v11 }
 0x13f   : > { %v862_v51 = vmul.f32 0.7978846, %v830_v44  ;;  %v831_v26 = vadd.f32 %v799_v17, %v2752_v46  ;;  %v736_v27 = vmul.f32 %v2770_v19, %v2770_v19  ;;  %v2776_v28 = vadd.f32 %v2059_v20, %v2559_v57 }
 0x140   : > { %v955_v29 = vmul.f32 0.5, %v923_v22  ;;  %v986_v32 = vmul.f32 %v954_v23, %v2701_v15  ;;  %v2783_v48 = vmul.f32 %v973_v58, %v2629_v18  ;;  %v942_v43 = vadd.f32 1.0, %v2305_v40 }
 0x141   : > { %v863_v9 = vmul.f32 0.7978846, %v831_v26  ;;  %v768_v34 = vmul.f32 %v736_v27, %v2770_v19  ;;  %v737_v36 = vmul.f32 %v2776_v28, %v2776_v28  ;;  %v2060_v37 = vpop.f32.mrb[36].mxu0  ;;  %2314 = vtanh.f32 %v862_v51 }
 0x142   : > { %v2061_v38 = vpop.f32.mrb[37].mxu0  ;;  %v987_v3 = vmul.f32 %v955_v29, %v2708_v25  ;;  %v1022_v15 = vpack.c.bf16 %v2783_v48, %v2780_v33  ;;  %v943_v11 = vadd.f32 1.0, %v2309_v21  ;;  %v974_v56 = vmul.f32 0.5, %v942_v43 }
 0x143   : > { %v2311_v47 = vpop.eup %2310  ;;  %v800_v49 = vmul.f32 0.044715, %v768_v34  ;;  %v769_v18 = vmul.f32 %v737_v36, %v2776_v28  ;;  %v2062_v50 = vadd.f32 %v2061_v38, %v2060_v37  ;;  %v2063_v53 = vpop.f32.mrb[38].mxu0  ;;  %2316 = vtanh.f32 %v863_v9 }
 0x144   : > { %v2064_v16 = vpop.f32.mrb[39].mxu0  ;;  %v1013_v55 = vpack.c.bf16 %v987_v3, %v986_v32  ;;  %v924_v10 = vadd.f32 1.0, %v2311_v47  ;;  %v975_v59 = vmul.f32 0.5, %v943_v11  ;;  %v2797_v7 = vmul.f32 %v974_v56, %v2665_v2 }
 0x145   : > { %v2313_v61 = vpop.eup %2312  ;;  %v832_v25 = vadd.f32 %v800_v49, %v2770_v19  ;;  %v801_v62 = vmul.f32 0.044715, %v769_v18  ;;  %v2794_v0 = vadd.f32 %v2062_v50, %v2559_v57  ;;  %v2065_v35 = vadd.f32 %v2064_v16, %v2063_v53 }
 0x146   : > { %2151 = vmatmul.mubr.bf16.gmra.mrb[24].mxu1 %v1013_v55  ;;  %v925_v1 = vadd.f32 1.0, %v2313_v61  ;;  %v956_v4 = vmul.f32 0.5, %v924_v10  ;;  %v2800_v30 = vmul.f32 %v975_v59, %v2671_v8 }
 0x147   : > { %v864_v40 = vmul.f32 0.7978846, %v832_v25  ;;  %v833_v13 = vadd.f32 %v801_v62, %v2776_v28  ;;  %v738_v14 = vmul.f32 %v2794_v0, %v2794_v0  ;;  %v2806_v45 = vadd.f32 %v2065_v35, %v2559_v57 }
 0x148   : > { %v957_v12 = vmul.f32 0.5, %v925_v1  ;;  %v1023_v42 = vpack.c.bf16 %v2800_v30, %v2797_v7  ;;  %v988_v21 = vmul.f32 %v956_v4, %v2728_v63 }
 0x149   : > { %v865_v44 = vmul.f32 0.7978846, %v833_v13  ;;  %v770_v2 = vmul.f32 %v738_v14, %v2794_v0  ;;  %v739_v8 = vmul.f32 %v2806_v45, %v2806_v45  ;;  %v2066_v17 = vpop.f32.mrb[40].mxu0  ;;  %2318 = vtanh.f32 %v864_v40 }
 0x14a   : > { %v2067_v20 = vpop.f32.mrb[41].mxu0  ;;  %v989_v22 = vmul.f32 %v957_v12, %v2735_v6 }
 0x14b   : > { %v2315_v23 = vpop.eup %2314  ;;  %v802_v24 = vmul.f32 0.044715, %v770_v2  ;;  %v771_v58 = vmul.f32 %v739_v8, %v2806_v45  ;;  %v2068_v51 = vadd.f32 %v2067_v20, %v2066_v17  ;;  %v2069_v26 = vpop.f32.mrb[42].mxu0  ;;  %2320 = vtanh.f32 %v865_v44 }
 0x14c   : > { %v2070_v27 = vpop.f32.mrb[43].mxu0  ;;  %v1014_v29 = vpack.c.bf16 %v989_v22, %v988_v21  ;;  %v926_v32 = vadd.f32 1.0, %v2315_v23 }
 0x14d   : > { %v2317_v9 = vpop.eup %2316  ;;  %v834_v34 = vadd.f32 %v802_v24, %v2794_v0  ;;  %v803_v36 = vmul.f32 0.044715, %v771_v58  ;;  %v2818_v37 = vadd.f32 %v2068_v51, %v2559_v57  ;;  %v2071_v63 = vadd.f32 %v2070_v27, %v2069_v26 }
 0x14e   : > { %2154 = vmatprep.mubr.bf16.mxu1 %v1014_v29  ;;  %v927_v6 = vadd.f32 1.0, %v2317_v9  ;;  %v958_v38 = vmul.f32 0.5, %v926_v32 }
 0x14f   : > { %v866_v3 = vmul.f32 0.7978846, %v834_v34  ;;  %v835_v43 = vadd.f32 %v803_v36, %v2806_v45  ;;  %v740_v11 = vmul.f32 %v2818_v37, %v2818_v37  ;;  %v2824_v47 = vadd.f32 %v2071_v63, %v2559_v57 }
 0x150   : > { %v959_v49 = vmul.f32 0.5, %v927_v6  ;;  %v990_v10 = vmul.f32 %v958_v38, %v2746_v60 }
 0x151   : > { %v867_v18 = vmul.f32 0.7978846, %v835_v43  ;;  %v772_v50 = vmul.f32 %v740_v11, %v2818_v37  ;;  %v741_v53 = vmul.f32 %v2824_v47, %v2824_v47  ;;  %v2072_v16 = vpop.f32.mrb[44].mxu0  ;;  %2322 = vtanh.f32 %v866_v3 }
 0x152   : > { %v2073_v55 = vpop.f32.mrb[45].mxu0  ;;  %v991_v56 = vmul.f32 %v959_v49, %v2752_v46 }
 0x153   : > { %v2319_v59 = vpop.eup %2318  ;;  %v804_v61 = vmul.f32 0.044715, %v772_v50  ;;  %v773_v25 = vmul.f32 %v741_v53, %v2824_v47  ;;  %v2074_v62 = vadd.f32 %v2073_v55, %v2072_v16  ;;  %v2075_v35 = vpop.f32.mrb[46].mxu0  ;;  %2324 = vtanh.f32 %v867_v18 }
 0x154   : > { %v2076_v1 = vpop.f32.mrb[47].mxu0  ;;  %v1015_v4 = vpack.c.bf16 %v991_v56, %v990_v10  ;;  %v928_v40 = vadd.f32 1.0, %v2319_v59 }
 0x155   : > { %v2321_v13 = vpop.eup %2320  ;;  %v836_v14 = vadd.f32 %v804_v61, %v2818_v37  ;;  %v805_v12 = vmul.f32 0.044715, %v773_v25  ;;  %v682_v44 = vadd.f32 %v2074_v62, %v2559_v57  ;;  %v2077_v2 = vadd.f32 %v2076_v1, %v2075_v35 }
 0x156   : > { %2155 = vmatmul.mubr.bf16.gmra.mrb[28].mxu1 %v1015_v4  ;;  %v929_v60 = vadd.f32 1.0, %v2321_v13  ;;  %v960_v46 = vmul.f32 0.5, %v928_v40 }
 0x157   : > { %v868_v8 = vmul.f32 0.7978846, %v836_v14  ;;  %v837_v17 = vadd.f32 %v805_v12, %v2824_v47  ;;  %v742_v20 = vmul.f32 %v682_v44, %v682_v44  ;;  %v685_v21 = vadd.f32 %v2077_v2, %v2559_v57 }
 0x158   : > { %v961_v22 = vmul.f32 0.5, %v929_v60  ;;  %v992_v51 = vmul.f32 %v960_v46, %v2770_v19 }
 0x159   : > { %v869_v23 = vmul.f32 0.7978846, %v837_v17  ;;  %v774_v24 = vmul.f32 %v742_v20, %v682_v44  ;;  %v743_v58 = vmul.f32 %v685_v21, %v685_v21  ;;  %2326 = vtanh.f32 %v868_v8 }
 0x15a   : > { %v993_v26 = vmul.f32 %v961_v22, %v2776_v28 }
 0x15b   : > { %v2323_v27 = vpop.eup %2322  ;;  %v806_v29 = vmul.f32 0.044715, %v774_v24  ;;  %v775_v32 = vmul.f32 %v743_v58, %v685_v21  ;;  %2328 = vtanh.f32 %v869_v23 }
 0x15c   : > { %v1016_v9 = vpack.c.bf16 %v993_v26, %v992_v51  ;;  %v930_v34 = vadd.f32 1.0, %v2323_v27 }
 0x15d   : > { %v2325_v36 = vpop.eup %2324  ;;  %v838_v63 = vadd.f32 %v806_v29, %v682_v44  ;;  %v807_v6 = vmul.f32 0.044715, %v775_v32 }
 0x15e   : > { %2158 = vmatprep.mubr.bf16.mxu1 %v1016_v9  ;;  %v931_v57 = vadd.f32 1.0, %v2325_v36  ;;  %v962_v38 = vmul.f32 0.5, %v930_v34 }
 0x15f   : > { %v870_v3 = vmul.f32 0.7978846, %v838_v63  ;;  %v839_v43 = vadd.f32 %v807_v6, %v685_v21 }
 0x160   : > { %v963_v11 = vmul.f32 0.5, %v931_v57  ;;  %v994_v19 = vmul.f32 %v962_v38, %v2794_v0 }
 0x161   : > { %v871_v49 = vmul.f32 0.7978846, %v839_v43  ;;  %2330 = vtanh.f32 %v870_v3 }
 0x162   : > { %v995_v28 = vmul.f32 %v963_v11, %v2806_v45 }
 0x163   : > { %v2327_v18 = vpop.eup %2326  ;;  %2332 = vtanh.f32 %v871_v49 }
 0x164   : > { %v1017_v50 = vpack.c.bf16 %v995_v28, %v994_v19  ;;  %v932_v53 = vadd.f32 1.0, %v2327_v18 }
 0x165   : > { %v2329_v16 = vpop.eup %2328 }
 0x166   : > { %2159 = vmatmul.mubr.bf16.gmra.mrb[32].mxu1 %v1017_v50  ;;  %v933_v55 = vadd.f32 1.0, %v2329_v16  ;;  %v964_v10 = vmul.f32 0.5, %v932_v53 }
 0x168   : > { %v965_v56 = vmul.f32 0.5, %v933_v55  ;;  %v996_v59 = vmul.f32 %v964_v10, %v2818_v37  ;;  %v2857_v37 = vld [vmem:[%s3144_s4] ss:$0 sm:$0xff] }
 0x16a   : > { %v997_v61 = vmul.f32 %v965_v56, %v2824_v47 }
 0x16b   : > { %v2331_v25 = vpop.eup %2330 }
 0x16c   : > { %v1018_v62 = vpack.c.bf16 %v997_v61, %v996_v59  ;;  %v934_v35 = vadd.f32 1.0, %v2331_v25 }
 0x16d   : > { %v2333_v1 = vpop.eup %2332 }
 0x16e   : > { %2162 = vmatprep.mubr.bf16.mxu1 %v1018_v62  ;;  %v935_v0 = vadd.f32 1.0, %v2333_v1  ;;  %v966_v45 = vmul.f32 0.5, %v934_v35 }
 0x170   : > { %v967_v4 = vmul.f32 0.5, %v935_v0  ;;  %v998_v40 = vmul.f32 %v966_v45, %v682_v44 }
 0x172   : > { %v999_v13 = vmul.f32 %v967_v4, %v685_v21 }
 0x174   : > { %v1019_v14 = vpack.c.bf16 %v999_v13, %v998_v40 }
 0x176   : > { %2163 = vmatmul.mubr.bf16.gmra.mrb[36].mxu1 %v1019_v14 }
 0x177   : > { %2166 = vmatprep.mubr.bf16.mxu1 %v1020_v5 }
 0x17e   : > { %2167 = vmatmul.mubr.bf16.gmra.mrb[40].mxu1 %v1021_v31 }
 0x17f   : > { %2170 = vmatprep.mubr.bf16.mxu1 %v1022_v15 }
 0x186   : > { %2171 = vmatmul.mubr.bf16.gmra.mrb[44].mxu1 %v1023_v42 }
 0x1f9   : > { %v2144_v47 = vpop.f32.mrb[16].mxu1 }
 0x1fa   : > { %v2860_v39 = vadd.f32 %v2144_v47, %v2857_v37  ;;  %v1129_v41 = vpop.f32.mrb[17].mxu1 }
 0x1fb   : > { %v2863_v5 = vadd.f32 %v2857_v37, %v1129_v41  ;;  %v2145_v52 = vpop.f32.mrb[18].mxu1 }
 0x1fc   : > { %v1258_v54 = vmul.f32 %v2860_v39, %v2860_v39  ;;  %v2868_v31 = vadd.f32 %v2145_v52, %v2857_v37  ;;  %v1132_v33 = vpop.f32.mrb[19].mxu1 }
 0x1fd   : > { %v1256_v48 = vmul.f32 %v2863_v5, %v2863_v5  ;;  %v2873_v15 = vadd.f32 %v2857_v37, %v1132_v33 }
 0x1fe   : > { %v1290_v7 = vmul.f32 %v1258_v54, %v2860_v39  ;;  %v1259_v30 = vmul.f32 %v2868_v31, %v2868_v31 }
 0x1ff   : > { %v1288_v42 = vmul.f32 %v1256_v48, %v2863_v5  ;;  %v1257_v12 = vmul.f32 %v2873_v15, %v2873_v15 }
 0x200   : > { %v1322_v44 = vmul.f32 0.044715, %v1290_v7  ;;  %v1291_v2 = vmul.f32 %v1259_v30, %v2868_v31 }
 0x201   : > { %v1320_v60 = vmul.f32 0.044715, %v1288_v42  ;;  %v1289_v46 = vmul.f32 %v1257_v12, %v2873_v15 }
 0x202   : > { %v1354_v8 = vadd.f32 %v1322_v44, %v2860_v39  ;;  %v1323_v17 = vmul.f32 0.044715, %v1291_v2 }
 0x203   : > { %v1352_v20 = vadd.f32 %v1320_v60, %v2863_v5  ;;  %v1321_v21 = vmul.f32 0.044715, %v1289_v46 }
 0x204   : > { %v1386_v22 = vmul.f32 0.7978846, %v1354_v8  ;;  %v1355_v23 = vadd.f32 %v1323_v17, %v2868_v31 }
 0x205   : > { %v1384_v24 = vmul.f32 0.7978846, %v1352_v20  ;;  %v1353_v58 = vadd.f32 %v1321_v21, %v2873_v15 }
 0x206   : > { %2334 = vtanh.f32 %v1386_v22  ;;  %v1387_v51 = vmul.f32 0.7978846, %v1355_v23 }
 0x207   : > { %2336 = vtanh.f32 %v1384_v24  ;;  %v1385_v26 = vmul.f32 0.7978846, %v1353_v58 }
 0x208   : > { %2338 = vtanh.f32 %v1387_v51 }
 0x209   : > { %2340 = vtanh.f32 %v1385_v26  ;;  %v2148_v27 = vpop.f32.mrb[20].mxu1 }
 0x20a   : > { %v2888_v29 = vadd.f32 %v2148_v27, %v2857_v37  ;;  %v1145_v32 = vpop.f32.mrb[21].mxu1 }
 0x20b   : > { %v2891_v9 = vadd.f32 %v2857_v37, %v1145_v32  ;;  %v2149_v34 = vpop.f32.mrb[22].mxu1 }
 0x20c   : > { %v1262_v36 = vmul.f32 %v2888_v29, %v2888_v29  ;;  %v2896_v63 = vadd.f32 %v2149_v34, %v2857_v37  ;;  %v1148_v6 = vpop.f32.mrb[23].mxu1 }
 0x20d   : > { %v1260_v57 = vmul.f32 %v2891_v9, %v2891_v9  ;;  %v2901_v38 = vadd.f32 %v2857_v37, %v1148_v6 }
 0x20e   : > { %v1294_v3 = vmul.f32 %v1262_v36, %v2888_v29  ;;  %v1263_v43 = vmul.f32 %v2896_v63, %v2896_v63 }
 0x20f   : > { %v1292_v11 = vmul.f32 %v1260_v57, %v2891_v9  ;;  %v1261_v49 = vmul.f32 %v2901_v38, %v2901_v38 }
 0x210   : > { %v2335_v19 = vpop.eup %2334  ;;  %v1326_v28 = vmul.f32 0.044715, %v1294_v3  ;;  %v1295_v18 = vmul.f32 %v1263_v43, %v2896_v63 }
 0x211   : > { %v2337_v50 = vpop.eup %2336  ;;  %v1450_v53 = vadd.f32 1.0, %v2335_v19  ;;  %v1324_v16 = vmul.f32 0.044715, %v1292_v11  ;;  %v1293_v55 = vmul.f32 %v1261_v49, %v2901_v38 }
 0x212   : > { %v2339_v10 = vpop.eup %2338  ;;  %v1448_v56 = vadd.f32 1.0, %v2337_v50  ;;  %v1358_v59 = vadd.f32 %v1326_v28, %v2888_v29  ;;  %v1327_v61 = vmul.f32 0.044715, %v1295_v18 }
 0x213   : > { %v2341_v25 = vpop.eup %2340  ;;  %v1482_v62 = vmul.f32 0.5, %v1450_v53  ;;  %v1451_v35 = vadd.f32 1.0, %v2339_v10  ;;  %v1356_v1 = vadd.f32 %v1324_v16, %v2891_v9  ;;  %v1325_v0 = vmul.f32 0.044715, %v1293_v55 }
 0x214   : > { %v1480_v45 = vmul.f32 0.5, %v1448_v56  ;;  %v1449_v4 = vadd.f32 1.0, %v2341_v25  ;;  %v1390_v40 = vmul.f32 0.7978846, %v1358_v59  ;;  %v1359_v13 = vadd.f32 %v1327_v61, %v2896_v63 }
 0x215   : > { %v1483_v14 = vmul.f32 0.5, %v1451_v35  ;;  %v1388_v47 = vmul.f32 0.7978846, %v1356_v1  ;;  %v1357_v41 = vadd.f32 %v1325_v0, %v2901_v38  ;;  %v1514_v33 = vmul.f32 %v1482_v62, %v2860_v39 }
 0x216   : > { %v1481_v52 = vmul.f32 0.5, %v1449_v4  ;;  %2342 = vtanh.f32 %v1390_v40  ;;  %v1391_v54 = vmul.f32 0.7978846, %v1359_v13  ;;  %v1512_v30 = vmul.f32 %v1480_v45, %v2863_v5 }
 0x217   : > { %v1515_v48 = vmul.f32 %v1483_v14, %v2868_v31  ;;  %2344 = vtanh.f32 %v1388_v47  ;;  %v1389_v7 = vmul.f32 0.7978846, %v1357_v41 }
 0x218   : > { %v1513_v42 = vmul.f32 %v1481_v52, %v2873_v15  ;;  %2346 = vtanh.f32 %v1391_v54 }
 0x219   : > { %v1903_v12 = vpack.c.bf16 %v1515_v48, %v1514_v33  ;;  %2348 = vtanh.f32 %v1389_v7  ;;  %v2152_v44 = vpop.f32.mrb[24].mxu1 }
 0x21a   : > { %v1898_v39 = vpack.c.bf16 %v1513_v42, %v1512_v30  ;;  %v2926_v31 = vadd.f32 %v2152_v44, %v2857_v37  ;;  %v1161_v2 = vpop.f32.mrb[25].mxu1 }
 0x21b   : > { %1975 = vst [vmem:[%s2922_s9 + $0x8] sm:$0xff] %v1903_v12   ;;  %v2930_v5 = vadd.f32 %v2857_v37, %v1161_v2  ;;  %v2153_v60 = vpop.f32.mrb[26].mxu1 }
 0x21c   : > { %1899 = vst [vmem:[%s2922_s9] sm:$0xff] %v1898_v39   ;;  %v1266_v46 = vmul.f32 %v2926_v31, %v2926_v31  ;;  %v2936_v15 = vadd.f32 %v2153_v60, %v2857_v37  ;;  %v1164_v8 = vpop.f32.mrb[27].mxu1 }
 0x21d   : > { %v1264_v17 = vmul.f32 %v2930_v5, %v2930_v5  ;;  %v2941_v20 = vadd.f32 %v2857_v37, %v1164_v8 }
 0x21e   : > { %v1298_v21 = vmul.f32 %v1266_v46, %v2926_v31  ;;  %v1267_v22 = vmul.f32 %v2936_v15, %v2936_v15 }
 0x21f   : > { %v1296_v23 = vmul.f32 %v1264_v17, %v2930_v5  ;;  %v1265_v24 = vmul.f32 %v2941_v20, %v2941_v20 }
 0x220   : > { %v2343_v58 = vpop.eup %2342  ;;  %v1330_v51 = vmul.f32 0.044715, %v1298_v21  ;;  %v1299_v26 = vmul.f32 %v1267_v22, %v2936_v15 }
 0x221   : > { %v2345_v27 = vpop.eup %2344  ;;  %v1454_v32 = vadd.f32 1.0, %v2343_v58  ;;  %v1328_v34 = vmul.f32 0.044715, %v1296_v23  ;;  %v1297_v36 = vmul.f32 %v1265_v24, %v2941_v20 }
 0x222   : > { %v2347_v6 = vpop.eup %2346  ;;  %v1452_v57 = vadd.f32 1.0, %v2345_v27  ;;  %v1362_v3 = vadd.f32 %v1330_v51, %v2926_v31  ;;  %v1331_v43 = vmul.f32 0.044715, %v1299_v26 }
 0x223   : > { %v2349_v11 = vpop.eup %2348  ;;  %v1486_v49 = vmul.f32 0.5, %v1454_v32  ;;  %v1455_v19 = vadd.f32 1.0, %v2347_v6  ;;  %v1360_v28 = vadd.f32 %v1328_v34, %v2930_v5  ;;  %v1329_v18 = vmul.f32 0.044715, %v1297_v36 }
 0x224   : > { %v1484_v50 = vmul.f32 0.5, %v1452_v57  ;;  %v1453_v53 = vadd.f32 1.0, %v2349_v11  ;;  %v1394_v16 = vmul.f32 0.7978846, %v1362_v3  ;;  %v1363_v55 = vadd.f32 %v1331_v43, %v2936_v15 }
 0x225   : > { %v1487_v10 = vmul.f32 0.5, %v1455_v19  ;;  %v1392_v56 = vmul.f32 0.7978846, %v1360_v28  ;;  %v1361_v59 = vadd.f32 %v1329_v18, %v2941_v20  ;;  %v1518_v62 = vmul.f32 %v1486_v49, %v2888_v29 }
 0x226   : > { %v1485_v61 = vmul.f32 0.5, %v1453_v53  ;;  %2350 = vtanh.f32 %v1394_v16  ;;  %v1395_v25 = vmul.f32 0.7978846, %v1363_v55  ;;  %v1516_v0 = vmul.f32 %v1484_v50, %v2891_v9 }
 0x227   : > { %v1519_v35 = vmul.f32 %v1487_v10, %v2896_v63  ;;  %2352 = vtanh.f32 %v1392_v56  ;;  %v1393_v1 = vmul.f32 0.7978846, %v1361_v59 }
 0x228   : > { %v1517_v45 = vmul.f32 %v1485_v61, %v2901_v38  ;;  %2354 = vtanh.f32 %v1395_v25 }
 0x229   : > { %v1913_v4 = vpack.c.bf16 %v1519_v35, %v1518_v62  ;;  %2356 = vtanh.f32 %v1393_v1  ;;  %v2156_v40 = vpop.f32.mrb[28].mxu1 }
 0x22a   : > { %v1908_v13 = vpack.c.bf16 %v1517_v45, %v1516_v0  ;;  %v2960_v14 = vadd.f32 %v2156_v40, %v2857_v37  ;;  %v1177_v47 = vpop.f32.mrb[29].mxu1 }
 0x22b   : > { %1977 = vst [vmem:[%s2922_s9 + $0x18] sm:$0xff] %v1913_v4   ;;  %v2964_v29 = vadd.f32 %v2857_v37, %v1177_v47  ;;  %v2157_v63 = vpop.f32.mrb[30].mxu1 }
 0x22c   : > { %1976 = vst [vmem:[%s2922_s9 + $0x10] sm:$0xff] %v1908_v13   ;;  %v1270_v9 = vmul.f32 %v2960_v14, %v2960_v14  ;;  %v2970_v38 = vadd.f32 %v2157_v63, %v2857_v37  ;;  %v1180_v41 = vpop.f32.mrb[31].mxu1 }
 0x22d   : > { %v1268_v52 = vmul.f32 %v2964_v29, %v2964_v29  ;;  %v2975_v54 = vadd.f32 %v2857_v37, %v1180_v41 }
 0x22e   : > { %v1302_v33 = vmul.f32 %v1270_v9, %v2960_v14  ;;  %v1271_v48 = vmul.f32 %v2970_v38, %v2970_v38 }
 0x22f   : > { %v1300_v7 = vmul.f32 %v1268_v52, %v2964_v29  ;;  %v1269_v30 = vmul.f32 %v2975_v54, %v2975_v54 }
 0x230   : > { %v2351_v42 = vpop.eup %2350  ;;  %v1334_v12 = vmul.f32 0.044715, %v1302_v33  ;;  %v1303_v44 = vmul.f32 %v1271_v48, %v2970_v38 }
 0x231   : > { %v2353_v39 = vpop.eup %2352  ;;  %v1458_v2 = vadd.f32 1.0, %v2351_v42  ;;  %v1332_v60 = vmul.f32 0.044715, %v1300_v7  ;;  %v1301_v46 = vmul.f32 %v1269_v30, %v2975_v54 }
 0x232   : > { %v2355_v8 = vpop.eup %2354  ;;  %v1456_v17 = vadd.f32 1.0, %v2353_v39  ;;  %v1366_v21 = vadd.f32 %v1334_v12, %v2960_v14  ;;  %v1335_v22 = vmul.f32 0.044715, %v1303_v44 }
 0x233   : > { %v2357_v23 = vpop.eup %2356  ;;  %v1490_v24 = vmul.f32 0.5, %v1458_v2  ;;  %v1459_v58 = vadd.f32 1.0, %v2355_v8  ;;  %v1364_v51 = vadd.f32 %v1332_v60, %v2964_v29  ;;  %v1333_v26 = vmul.f32 0.044715, %v1301_v46 }
 0x234   : > { %v1488_v27 = vmul.f32 0.5, %v1456_v17  ;;  %v1457_v32 = vadd.f32 1.0, %v2357_v23  ;;  %v1398_v34 = vmul.f32 0.7978846, %v1366_v21  ;;  %v1367_v36 = vadd.f32 %v1335_v22, %v2970_v38 }
 0x235   : > { %v1491_v6 = vmul.f32 0.5, %v1459_v58  ;;  %v1396_v57 = vmul.f32 0.7978846, %v1364_v51  ;;  %v1365_v3 = vadd.f32 %v1333_v26, %v2975_v54  ;;  %v1522_v49 = vmul.f32 %v1490_v24, %v2926_v31 }
 0x236   : > { %v1489_v43 = vmul.f32 0.5, %v1457_v32  ;;  %2358 = vtanh.f32 %v1398_v34  ;;  %v1399_v11 = vmul.f32 0.7978846, %v1367_v36  ;;  %v1520_v18 = vmul.f32 %v1488_v27, %v2930_v5 }
 0x237   : > { %v1523_v19 = vmul.f32 %v1491_v6, %v2936_v15  ;;  %2360 = vtanh.f32 %v1396_v57  ;;  %v1397_v28 = vmul.f32 0.7978846, %v1365_v3 }
 0x238   : > { %v1521_v50 = vmul.f32 %v1489_v43, %v2941_v20  ;;  %2362 = vtanh.f32 %v1399_v11 }
 0x239   : > { %v1923_v53 = vpack.c.bf16 %v1523_v19, %v1522_v49  ;;  %2364 = vtanh.f32 %v1397_v28  ;;  %v2160_v16 = vpop.f32.mrb[32].mxu1 }
 0x23a   : > { %v1918_v55 = vpack.c.bf16 %v1521_v50, %v1520_v18  ;;  %v2994_v10 = vadd.f32 %v2160_v16, %v2857_v37  ;;  %v1193_v56 = vpop.f32.mrb[33].mxu1 }
 0x23b   : > { %1979 = vst [vmem:[%s2922_s9 + $0x28] sm:$0xff] %v1923_v53   ;;  %v2998_v31 = vadd.f32 %v2857_v37, %v1193_v56  ;;  %v2161_v15 = vpop.f32.mrb[34].mxu1 }
 0x23c   : > { %1978 = vst [vmem:[%s2922_s9 + $0x20] sm:$0xff] %v1918_v55   ;;  %v1274_v5 = vmul.f32 %v2994_v10, %v2994_v10  ;;  %v3004_v20 = vadd.f32 %v2161_v15, %v2857_v37  ;;  %v1196_v59 = vpop.f32.mrb[35].mxu1 }
 0x23d   : > { %v1272_v61 = vmul.f32 %v2998_v31, %v2998_v31  ;;  %v3009_v25 = vadd.f32 %v2857_v37, %v1196_v59 }
 0x23e   : > { %v1306_v62 = vmul.f32 %v1274_v5, %v2994_v10  ;;  %v1275_v35 = vmul.f32 %v3004_v20, %v3004_v20 }
 0x23f   : > { %v1304_v1 = vmul.f32 %v1272_v61, %v2998_v31  ;;  %v1273_v0 = vmul.f32 %v3009_v25, %v3009_v25 }
 0x240   : > { %v2359_v45 = vpop.eup %2358  ;;  %v1338_v4 = vmul.f32 0.044715, %v1306_v62  ;;  %v1307_v40 = vmul.f32 %v1275_v35, %v3004_v20 }
 0x241   : > { %v2361_v13 = vpop.eup %2360  ;;  %v1462_v47 = vadd.f32 1.0, %v2359_v45  ;;  %v1336_v63 = vmul.f32 0.044715, %v1304_v1  ;;  %v1305_v9 = vmul.f32 %v1273_v0, %v3009_v25 }
 0x242   : > { %v2363_v41 = vpop.eup %2362  ;;  %v1460_v52 = vadd.f32 1.0, %v2361_v13  ;;  %v1370_v33 = vadd.f32 %v1338_v4, %v2994_v10  ;;  %v1339_v48 = vmul.f32 0.044715, %v1307_v40 }
 0x243   : > { %v2365_v7 = vpop.eup %2364  ;;  %v1494_v30 = vmul.f32 0.5, %v1462_v47  ;;  %v1463_v42 = vadd.f32 1.0, %v2363_v41  ;;  %v1368_v12 = vadd.f32 %v1336_v63, %v2998_v31  ;;  %v1337_v44 = vmul.f32 0.044715, %v1305_v9 }
 0x244   : > { %v1492_v39 = vmul.f32 0.5, %v1460_v52  ;;  %v1461_v2 = vadd.f32 1.0, %v2365_v7  ;;  %v1402_v60 = vmul.f32 0.7978846, %v1370_v33  ;;  %v1371_v46 = vadd.f32 %v1339_v48, %v3004_v20 }
 0x245   : > { %v1495_v8 = vmul.f32 0.5, %v1463_v42  ;;  %v1400_v17 = vmul.f32 0.7978846, %v1368_v12  ;;  %v1369_v21 = vadd.f32 %v1337_v44, %v3009_v25  ;;  %v1526_v24 = vmul.f32 %v1494_v30, %v2960_v14 }
 0x246   : > { %v1493_v22 = vmul.f32 0.5, %v1461_v2  ;;  %2366 = vtanh.f32 %v1402_v60  ;;  %v1403_v23 = vmul.f32 0.7978846, %v1371_v46  ;;  %v1524_v26 = vmul.f32 %v1492_v39, %v2964_v29 }
 0x247   : > { %v1527_v58 = vmul.f32 %v1495_v8, %v2970_v38  ;;  %2368 = vtanh.f32 %v1400_v17  ;;  %v1401_v51 = vmul.f32 0.7978846, %v1369_v21 }
 0x248   : > { %v1525_v27 = vmul.f32 %v1493_v22, %v2975_v54  ;;  %2370 = vtanh.f32 %v1403_v23 }
 0x249   : > { %v1933_v32 = vpack.c.bf16 %v1527_v58, %v1526_v24  ;;  %2372 = vtanh.f32 %v1401_v51  ;;  %v2164_v34 = vpop.f32.mrb[36].mxu1 }
 0x24a   : > { %v1928_v36 = vpack.c.bf16 %v1525_v27, %v1524_v26  ;;  %v3028_v6 = vadd.f32 %v2164_v34, %v2857_v37  ;;  %v1209_v57 = vpop.f32.mrb[37].mxu1 }
 0x24b   : > { %1981 = vst [vmem:[%s2922_s9 + $0x38] sm:$0xff] %v1933_v32   ;;  %v3032_v14 = vadd.f32 %v2857_v37, %v1209_v57  ;;  %v2165_v38 = vpop.f32.mrb[38].mxu1 }
 0x24c   : > { %1980 = vst [vmem:[%s2922_s9 + $0x30] sm:$0xff] %v1928_v36   ;;  %v1278_v29 = vmul.f32 %v3028_v6, %v3028_v6  ;;  %v3038_v54 = vadd.f32 %v2165_v38, %v2857_v37  ;;  %v1212_v3 = vpop.f32.mrb[39].mxu1 }
 0x24d   : > { %v1276_v43 = vmul.f32 %v3032_v14, %v3032_v14  ;;  %v3043_v11 = vadd.f32 %v2857_v37, %v1212_v3 }
 0x24e   : > { %v1310_v49 = vmul.f32 %v1278_v29, %v3028_v6  ;;  %v1279_v19 = vmul.f32 %v3038_v54, %v3038_v54 }
 0x24f   : > { %v1308_v28 = vmul.f32 %v1276_v43, %v3032_v14  ;;  %v1277_v18 = vmul.f32 %v3043_v11, %v3043_v11 }
 0x250   : > { %v2367_v50 = vpop.eup %2366  ;;  %v1342_v53 = vmul.f32 0.044715, %v1310_v49  ;;  %v1311_v16 = vmul.f32 %v1279_v19, %v3038_v54 }
 0x251   : > { %v2369_v55 = vpop.eup %2368  ;;  %v1466_v56 = vadd.f32 1.0, %v2367_v50  ;;  %v1340_v15 = vmul.f32 0.044715, %v1308_v28  ;;  %v1309_v5 = vmul.f32 %v1277_v18, %v3043_v11  ;;  %v2168_v59 = vpop.f32.mrb[40].mxu1 }
 0x252   : > { %v2371_v61 = vpop.eup %2370  ;;  %v1464_v62 = vadd.f32 1.0, %v2369_v55  ;;  %v1374_v35 = vadd.f32 %v1342_v53, %v3028_v6  ;;  %v1343_v1 = vmul.f32 0.044715, %v1311_v16  ;;  %v3055_v0 = vadd.f32 %v2168_v59, %v2857_v37  ;;  %v1225_v45 = vpop.f32.mrb[41].mxu1 }
 0x253   : > { %v2373_v4 = vpop.eup %2372  ;;  %v1498_v40 = vmul.f32 0.5, %v1466_v56  ;;  %v1467_v13 = vadd.f32 1.0, %v2371_v61  ;;  %v1372_v47 = vadd.f32 %v1340_v15, %v3032_v14  ;;  %v1341_v63 = vmul.f32 0.044715, %v1309_v5  ;;  %v2169_v9 = vpop.f32.mrb[42].mxu1 }
 0x254   : > { %v1496_v41 = vmul.f32 0.5, %v1464_v62  ;;  %v1465_v52 = vadd.f32 1.0, %v2373_v4  ;;  %v1406_v33 = vmul.f32 0.7978846, %v1374_v35  ;;  %v1375_v48 = vadd.f32 %v1343_v1, %v3038_v54  ;;  %v1228_v7 = vpop.f32.mrb[43].mxu1 }
 0x255   : > { %v1530_v30 = vmul.f32 %v1498_v40, %v2994_v10  ;;  %v1499_v42 = vmul.f32 0.5, %v1467_v13  ;;  %v1404_v12 = vmul.f32 0.7978846, %v1372_v47  ;;  %v1373_v44 = vadd.f32 %v1341_v63, %v3043_v11 }
 0x256   : > { %v1528_v39 = vmul.f32 %v1496_v41, %v2998_v31  ;;  %v1497_v2 = vmul.f32 0.5, %v1465_v52  ;;  %2374 = vtanh.f32 %v1406_v33  ;;  %v1407_v60 = vmul.f32 0.7978846, %v1375_v48 }
 0x257   : > { %v1531_v46 = vmul.f32 %v1499_v42, %v3004_v20  ;;  %2376 = vtanh.f32 %v1404_v12  ;;  %v1405_v8 = vmul.f32 0.7978846, %v1373_v44  ;;  %v1282_v17 = vmul.f32 %v3055_v0, %v3055_v0 }
 0x258   : > { %v1529_v21 = vmul.f32 %v1497_v2, %v3009_v25  ;;  %2378 = vtanh.f32 %v1407_v60  ;;  %v3067_v10 = vadd.f32 %v2857_v37, %v1225_v45  ;;  %v3070_v22 = vadd.f32 %v2169_v9, %v2857_v37 }
 0x259   : > { %v1943_v31 = vpack.c.bf16 %v1531_v46, %v1530_v30  ;;  %2380 = vtanh.f32 %v1405_v8  ;;  %v1314_v20 = vmul.f32 %v1282_v17, %v3055_v0  ;;  %v3074_v23 = vadd.f32 %v2857_v37, %v1228_v7  ;;  %v2172_v24 = vpop.f32.mrb[44].mxu1 }
 0x25a   : > { %v1938_v58 = vpack.c.bf16 %v1529_v21, %v1528_v39  ;;  %v1280_v25 = vmul.f32 %v3067_v10, %v3067_v10  ;;  %v1283_v51 = vmul.f32 %v3070_v22, %v3070_v22  ;;  %v3081_v26 = vadd.f32 %v2172_v24, %v2857_v37  ;;  %v1241_v27 = vpop.f32.mrb[45].mxu1 }
 0x25b   : > { %1983 = vst [vmem:[%s2922_s9 + $0x48] sm:$0xff] %v1943_v31   ;;  %v1346_v32 = vmul.f32 0.044715, %v1314_v20  ;;  %v1281_v34 = vmul.f32 %v3074_v23, %v3074_v23  ;;  %v3087_v36 = vadd.f32 %v2857_v37, %v1241_v27  ;;  %v2173_v57 = vpop.f32.mrb[46].mxu1 }
 0x25c   : > { %1982 = vst [vmem:[%s2922_s9 + $0x40] sm:$0xff] %v1938_v58   ;;  %v1312_v38 = vmul.f32 %v1280_v25, %v3067_v10  ;;  %v1315_v29 = vmul.f32 %v1283_v51, %v3070_v22  ;;  %v1286_v3 = vmul.f32 %v3081_v26, %v3081_v26  ;;  %v3095_v43 = vadd.f32 %v2173_v57, %v2857_v37  ;;  %v1244_v49 = vpop.f32.mrb[47].mxu1 }
 0x25d   : > { %v1378_v19 = vadd.f32 %v1346_v32, %v3055_v0  ;;  %v1313_v28 = vmul.f32 %v1281_v34, %v3074_v23  ;;  %v1284_v18 = vmul.f32 %v3087_v36, %v3087_v36  ;;  %v3102_v50 = vadd.f32 %v2857_v37, %v1244_v49 }
 0x25e   : > { %v1344_v53 = vmul.f32 0.044715, %v1312_v38  ;;  %v1347_v16 = vmul.f32 0.044715, %v1315_v29  ;;  %v1318_v55 = vmul.f32 %v1286_v3, %v3081_v26  ;;  %v1287_v56 = vmul.f32 %v3095_v43, %v3095_v43 }
 0x25f   : > { %v1410_v15 = vmul.f32 0.7978846, %v1378_v19  ;;  %v1345_v5 = vmul.f32 0.044715, %v1313_v28  ;;  %v1316_v59 = vmul.f32 %v1284_v18, %v3087_v36  ;;  %v1285_v61 = vmul.f32 %v3102_v50, %v3102_v50 }
 0x260   : > { %v2375_v62 = vpop.eup %2374  ;;  %v1376_v35 = vadd.f32 %v1344_v53, %v3067_v10  ;;  %v1379_v37 = vadd.f32 %v1347_v16, %v3070_v22  ;;  %v1350_v1 = vmul.f32 0.044715, %v1318_v55  ;;  %v1319_v45 = vmul.f32 %v1287_v56, %v3095_v43 }
 0x261   : > { %v2377_v4 = vpop.eup %2376  ;;  %v1470_v40 = vadd.f32 1.0, %v2375_v62  ;;  %2382 = vtanh.f32 %v1410_v15  ;;  %v1377_v13 = vadd.f32 %v1345_v5, %v3074_v23  ;;  %v1348_v47 = vmul.f32 0.044715, %v1316_v59 }
 0x262   : > { %v2379_v63 = vpop.eup %2378  ;;  %v1468_v9 = vadd.f32 1.0, %v2377_v4  ;;  %v1408_v41 = vmul.f32 0.7978846, %v1376_v35  ;;  %v1411_v52 = vmul.f32 0.7978846, %v1379_v37  ;;  %v1382_v33 = vadd.f32 %v1350_v1, %v3081_v26 }
 0x263   : > { %v2381_v48 = vpop.eup %2380  ;;  %v1502_v7 = vmul.f32 0.5, %v1470_v40  ;;  %v1471_v30 = vadd.f32 1.0, %v2379_v63  ;;  %v1409_v42 = vmul.f32 0.7978846, %v1377_v13  ;;  %v1380_v12 = vadd.f32 %v1348_v47, %v3087_v36 }
 0x264   : > { %v1500_v44 = vmul.f32 0.5, %v1468_v9  ;;  %v1469_v39 = vadd.f32 1.0, %v2381_v48  ;;  %2384 = vtanh.f32 %v1408_v41  ;;  %v1414_v2 = vmul.f32 0.7978846, %v1382_v33 }
 0x265   : > { %v1503_v60 = vmul.f32 0.5, %v1471_v30  ;;  %2386 = vtanh.f32 %v1411_v52  ;;  %v1412_v46 = vmul.f32 0.7978846, %v1380_v12  ;;  %v1351_v17 = vmul.f32 0.044715, %v1319_v45 }
 0x266   : > { %v1501_v8 = vmul.f32 0.5, %v1469_v39  ;;  %2388 = vtanh.f32 %v1409_v42  ;;  %v1534_v21 = vmul.f32 %v1502_v7, %v3028_v6  ;;  %v1317_v20 = vmul.f32 %v1285_v61, %v3102_v50 }
 0x267   : > { %v1535_v31 = vmul.f32 %v1503_v60, %v3038_v54  ;;  %2390 = vtanh.f32 %v1414_v2  ;;  %v1532_v24 = vmul.f32 %v1500_v44, %v3032_v14  ;;  %v1383_v25 = vadd.f32 %v1351_v17, %v3095_v43 }
 0x268   : > { %v1533_v58 = vmul.f32 %v1501_v8, %v3043_v11  ;;  %2392 = vtanh.f32 %v1412_v46  ;;  %v1349_v27 = vmul.f32 0.044715, %v1317_v20 }
 0x269   : > { %v1953_v51 = vpack.c.bf16 %v1535_v31, %v1534_v21  ;;  %v1415_v34 = vmul.f32 0.7978846, %v1383_v25 }
 0x26a   : > { %v1948_v32 = vpack.c.bf16 %v1533_v58, %v1532_v24  ;;  %v1381_v6 = vadd.f32 %v1349_v27, %v3102_v50 }
 0x26b   : > { %v2383_v57 = vpop.eup %2382  ;;  %1985 = vst [vmem:[%s2922_s9 + $0x58] sm:$0xff] %v1953_v51   ;;  %2394 = vtanh.f32 %v1415_v34 }
 0x26c   : > { %1984 = vst [vmem:[%s2922_s9 + $0x50] sm:$0xff] %v1948_v32   ;;  %v1474_v54 = vadd.f32 1.0, %v2383_v57  ;;  %v1413_v38 = vmul.f32 0.7978846, %v1381_v6 }
 0x26e   : > { %v2385_v29 = vpop.eup %2384  ;;  %2396 = vtanh.f32 %v1413_v38  ;;  %v1506_v49 = vmul.f32 0.5, %v1474_v54 }
 0x26f   : > { %v2387_v3 = vpop.eup %2386  ;;  %v1472_v14 = vadd.f32 1.0, %v2385_v29 }
 0x270   : > { %v2389_v11 = vpop.eup %2388  ;;  %v1475_v19 = vadd.f32 1.0, %v2387_v3  ;;  %v1538_v5 = vmul.f32 %v1506_v49, %v3055_v0 }
 0x271   : > { %v2391_v28 = vpop.eup %2390  ;;  %v1504_v18 = vmul.f32 0.5, %v1472_v14  ;;  %v1473_v53 = vadd.f32 1.0, %v2389_v11 }
 0x272   : > { %v1507_v16 = vmul.f32 0.5, %v1475_v19  ;;  %v2393_v55 = vpop.eup %2392  ;;  %v1478_v15 = vadd.f32 1.0, %v2391_v28 }
 0x273   : > { %v1505_v56 = vmul.f32 0.5, %v1473_v53  ;;  %v1536_v61 = vmul.f32 %v1504_v18, %v3067_v10  ;;  %v1476_v1 = vadd.f32 1.0, %v2393_v55 }
 0x274   : > { %v1539_v59 = vmul.f32 %v1507_v16, %v3070_v22  ;;  %v1510_v4 = vmul.f32 0.5, %v1478_v15 }
 0x275   : > { %v1537_v62 = vmul.f32 %v1505_v56, %v3074_v23  ;;  %v2395_v35 = vpop.eup %2394  ;;  %v1508_v63 = vmul.f32 0.5, %v1476_v1 }
 0x276   : > { %v1963_v37 = vpack.c.bf16 %v1539_v59, %v1538_v5  ;;  %v1479_v40 = vadd.f32 1.0, %v2395_v35  ;;  %v1542_v22 = vmul.f32 %v1510_v4, %v3081_v26 }
 0x277   : > { %v1958_v45 = vpack.c.bf16 %v1537_v62, %v1536_v61  ;;  %v1540_v41 = vmul.f32 %v1508_v63, %v3087_v36 }
 0x278   : > { %1987 = vst [vmem:[%s2922_s9 + $0x68] sm:$0xff] %v1963_v37   ;;  %v2397_v13 = vpop.eup %2396  ;;  %v1511_v47 = vmul.f32 0.5, %v1479_v40 }
 0x279   : > { %1986 = vst [vmem:[%s2922_s9 + $0x60] sm:$0xff] %v1958_v45   ;;  %v1477_v0 = vadd.f32 1.0, %v2397_v13 }
 0x27a   : > { %v1543_v10 = vmul.f32 %v1511_v47, %v3095_v43 }
 0x27b   : > { %v1509_v9 = vmul.f32 0.5, %v1477_v0 }
 0x27c   : > { %v1973_v23 = vpack.c.bf16 %v1543_v10, %v1542_v22 }
 0x27d   : > { %v1541_v52 = vmul.f32 %v1509_v9, %v3102_v50 }
 0x27e   : > { %1989 = vst [vmem:[%s2922_s9 + $0x78] sm:$0xff] %v1973_v23  }
 0x27f   : > { %v1968_v33 = vpack.c.bf16 %v1541_v52, %v1540_v41 }
 0x281   : > { %1988 = vst [vmem:[%s2922_s9 + $0x70] sm:$0xff] %v1968_v33  }
 0x282 PF: > { %s15_s18 = sadd.s32 1, %s2404_s18  }
 0x283   : > { %p12_p4 = scmp.ge.s32.totalorder %s15_s18, 4  }
 0x285   :  { %14 = sbr.rel (!%p12_p4) target bundleno = 1 (0x1), region = 70 }

// kernel: convpool_forward.4
= control target key start
LH: loop header
LB: loop body
LE: loop exit
PB: predicated region body
PF: predicated region fallthrough
CT: control target
= control target key end

     0   :  { %s8239_s13 = smov 0   ;;  %s9926_s0 = inlined_call_operand.vmem [shape: bf16[2,4,8192], index: 0, kind: input, shape index: {}]   ;;  %s9927_s1 = inlined_call_operand.vmem [shape: bf16[8192,32], index: 1, kind: input, shape index: {}]   ;;  %s9928_s2 = inlined_call_operand.vmem [shape: f32[1,32], index: 2, kind: input, shape index: {}, may-alias: {2,5,8}]   ;;  %s9929_s3 = inlined_call_operand.vmem [shape: f32[2,8,9], index: 3, kind: input, shape index: {}]   ;;  %s9930_s4 = inlined_call_operand.vmem [shape: bf16[9,32], index: 4, kind: input, shape index: {}]   ;;  %s9931_s5 = inlined_call_operand.vmem [shape: f32[1,32], index: 5, kind: input, shape index: {}, may-alias: {2,5,8}]   ;;  %s9932_s6 = inlined_call_operand.vmem [shape: f32[2,1,32], index: 6, kind: input, shape index: {}]   ;;  %s9933_s7 = inlined_call_operand.vmem [shape: bf16[32,32], index: 7, kind: input, shape index: {}]   ;;  %s9934_s8 = inlined_call_operand.vmem [shape: f32[1,32], index: 8, kind: input, shape index: {}, may-alias: {2,5,8}]   ;;  %s9935_s9 = inlined_call_operand.vmem [shape: f32[9,32], index: 9, kind: input, shape index: {}]   ;;  %s9936_s10 = inlined_call_operand.vmem [shape: f32[2,16,32], index: 10, kind: output, shape index: {}]  }
   0x1 LB: > { %s6371_s14 = sadd.s32 4294967295, %s8178_s13   ;;  %p6375_p0 = scmp.ge.s32.totalorder %s8178_s13, 1  ;;  %s8178_s13 = sphi %s8239_s13, %s20_s13  }
   0x2   : > { %p329_p1 = scmp.lt.s32.totalorder %s8178_s13, 3 }
   0x4   : > { %p330_p2 = pnand %p6375_p0, %p329_p1 }
   0x5   : > { %v7639_v0 = vld [vmem:[%s9927_s1 + $0x40] sm:$0xff] (!%p330_p2)   ;;  %v7643_v4 = vld [vmem:[%s9927_s1 + $0x48] sm:$0xff] (!%p330_p2)   ;;  %v7647_v8 = vld [vmem:[%s9927_s1 + $0x50] sm:$0xff] (!%p330_p2)   ;;  %p374_p3 = scmp.lt.s32.totalorder (!%p330_p2), %s6371_s14, 1  ;;  %v1459_v28 = vlaneseq (!%p330_p2)  ;;  %v8180_v36 = vmov (!%p330_p2), 1983009808  }
   0x6   : > { %333 = sbr.rel (%p330_p2) target bundleno = 772 (0x304), region = 60  ;;  %v7640_v1 = vld [vmem:[%s9927_s1 + $0xc0] sm:$0xff] (!%p330_p2)   ;;  %6904 = vmatprep.subr.bf16.mxu0 (!%p330_p2), %v7639_v0  ;;  %v7644_v5 = vld [vmem:[%s9927_s1 + $0xc8] sm:$0xff] (!%p330_p2)   ;;  %v7648_v9 = vld [vmem:[%s9927_s1 + $0xd0] sm:$0xff] (!%p330_p2)   ;;  %v1457_v37 = vunpack.c.l.s4 (!%p330_p2), %v8180_v36  ;;  %vm6163_vm0 = vcmask (!%p330_p2), 1043456   ;;  %vm6164_vm1 = vcmask (!%p330_p2), 1044480  }
   0x7   : > { %v7641_v2 = vld [vmem:[%s9927_s1] sm:$0xff] (!%p330_p2)   ;;  %6926 = vmatprep.subr.bf16.mxu1 (!%p330_p2), %v7640_v1  ;;  %v7645_v6 = vld [vmem:[%s9927_s1 + $0x8] sm:$0xff] (!%p330_p2)   ;;  %v7649_v10 = vld [vmem:[%s9927_s1 + $0x10] sm:$0xff] (!%p330_p2)   ;;  %v1460_v33 = vshrl.u32 (!%p330_p2), %v1459_v28, 7  ;;  %vm8183_vm2 = vmmov (!%p330_p2), 0   ;;  %vm6159_vm3 = vcmask (!%p330_p2), 72704  }
   0x8   : > { %v7642_v3 = vld [vmem:[%s9927_s1 + $0x80] sm:$0xff] (!%p330_p2)   ;;  %6905 = vmatpush3.bf16.msra.mxu0 (!%p330_p2), %v7641_v2  ;;  %v7646_v7 = vld [vmem:[%s9927_s1 + $0x88] sm:$0xff] (!%p330_p2)   ;;  %v7650_v11 = vld [vmem:[%s9927_s1 + $0x90] sm:$0xff] (!%p330_p2)   ;;  %v1458_v39 = vunpack.c.0.s8 (!%p330_p2), %v1457_v37  ;;  %vm6229_vm4 = vcmask (!%p330_p2), 261120   ;;  %vm6293_vm5 = vcmask (!%p330_p2), 256000   ;;  %vm6291_vm6 = vcmask (!%p330_p2), 257024  }
   0x9   : > { %6927 = vmatpush3.bf16.msra.mxu1 (!%p330_p2), %v7642_v3  ;;  %6906 = vmatprep.subr.bf16.mxu0 (!%p330_p2), %v7643_v4  ;;  %v7651_v12 = vld [vmem:[%s9927_s1 + $0x58] sm:$0xff] (!%p330_p2)   ;;  %v7655_v16 = vld [vmem:[%s9927_s1 + $0x60] sm:$0xff] (!%p330_p2)   ;;  %v7659_v20 = vld [vmem:[%s9927_s1 + $0x68] sm:$0xff] (!%p330_p2)   ;;  %vm6287_vm7 = vcmask (!%p330_p2), 253952  }
   0xa   : > { %6928 = vmatprep.subr.bf16.mxu1 (!%p330_p2), %v7644_v5  ;;  %v7652_v13 = vld [vmem:[%s9927_s1 + $0xd8] sm:$0xff] (!%p330_p2)   ;;  %v7656_v17 = vld [vmem:[%s9927_s1 + $0xe0] sm:$0xff] (!%p330_p2)   ;;  %v7660_v21 = vld [vmem:[%s9927_s1 + $0xe8] sm:$0xff] (!%p330_p2)   ;;  %v8362_v41 = vsub.s32 (!%p330_p2), %v1458_v39, %v1460_v33 }
   0xb   : > { %v7653_v14 = vld [vmem:[%s9927_s1 + $0x18] sm:$0xff] (!%p330_p2)   ;;  %v7657_v18 = vld [vmem:[%s9927_s1 + $0x20] sm:$0xff] (!%p330_p2)   ;;  %v7661_v22 = vld [vmem:[%s9927_s1 + $0x28] sm:$0xff] (!%p330_p2)  }
   0xc   : > { %6907 = vmatpush3.bf16.msra.mxu0 (!%p330_p2), %v7645_v6  ;;  %v7654_v15 = vld [vmem:[%s9927_s1 + $0x98] sm:$0xff] (!%p330_p2)   ;;  %v7658_v19 = vld [vmem:[%s9927_s1 + $0xa0] sm:$0xff] (!%p330_p2)   ;;  %v7662_v23 = vld [vmem:[%s9927_s1 + $0xa8] sm:$0xff] (!%p330_p2)  }
   0xd   : > { %6929 = vmatpush3.bf16.msra.mxu1 %v7646_v7  ;;  %6908 = vmatprep.subr.bf16.mxu0 %v7647_v8  ;;  %s9938_s14 = smov (!%p374_p3, %s6371_s14), 1  ;;  %v7663_v24 = vld [vmem:[%s9927_s1 + $0x70] sm:$0xff]   ;;  %v7667_v29 = vld [vmem:[%s9927_s1 + $0x78] sm:$0xff]   ;;  %v7672_v35 = vld [vmem:[%s9927_s1 + $0x140] sm:$0xff]  }
   0xe   : > { %6930 = vmatprep.subr.bf16.mxu1 %v7648_v9  ;;  %v7664_v25 = vld [vmem:[%s9927_s1 + $0xf0] sm:$0xff]   ;;  %s6902_s15 = sshll.u32 %s9938_s14, 7  ;;  %v7668_v30 = vld [vmem:[%s9927_s1 + $0xf8] sm:$0xff]   ;;  %v7673_v38 = vld [vmem:[%s9927_s1 + $0x1c0] sm:$0xff]   ;;  %s6378_s21 = sshll.u32 %s9938_s14, 3 }
   0xf   : > { %v7665_v26 = vld [vmem:[%s9927_s1 + $0x30] sm:$0xff]   ;;  %s8347_s24 = scalar_lea.vmem %s9926_s0, %s6902_s15  ;;  %v7669_v31 = vld [vmem:[%s9927_s1 + $0x38] sm:$0xff]   ;;  %v7674_v44 = vld [vmem:[%s9927_s1 + $0x100] sm:$0xff]   ;;  %s382_s26 = scalar_lea.vmem %s9929_s3, %s6378_s21 }
  0x10   : > { %6909 = vmatpush3.bf16.msra.mxu0 %v7649_v10  ;;  %v7666_v27 = vld [vmem:[%s9927_s1 + $0xb0] sm:$0xff]   ;;  %v7670_v32 = vld [vmem:[%s9927_s1 + $0xb8] sm:$0xff]   ;;  %v392_v34 = vld [vmem:[%s8347_s24] sm:$0xff]  ;;  %s385_s11 = scalar_lea.vmem %s9932_s6, %s9938_s14  ;;  %s6903_s16 = sshll.u32 %s9938_s14, 4 }
  0x11   : > { %6931 = vmatpush3.bf16.msra.mxu1 %v7650_v11  ;;  %6910 = vmatprep.subr.bf16.mxu0 %v7651_v12  ;;  %v1455_v40 = vcombine.high %v392_v34, %v392_v34  ;;  %v1462_v42 = vrot.slane %v392_v34, %v8362_v41  ;;  %v7675_v45 = vld [vmem:[%s9927_s1 + $0x180] sm:$0xff]   ;;  %v7676_v48 = vld [vmem:[%s9927_s1 + $0x148] sm:$0xff]   ;;  %v7680_v52 = vld [vmem:[%s9927_s1 + $0x150] sm:$0xff]   ;;  %s9900_s19 = scalar_lea.vmem %s9936_s10, %s6903_s16 }
  0x12   : > { %6932 = vmatprep.subr.bf16.mxu1 %v7652_v13  ;;  %v7677_v49 = vld [vmem:[%s9927_s1 + $0x1c8] sm:$0xff]   ;;  %v7681_v53 = vld [vmem:[%s9927_s1 + $0x1d0] sm:$0xff]   ;;  %v7684_v56 = vld [vmem:[%s9927_s1 + $0x158] sm:$0xff]  }
  0x13   : > { %v1469_v43 = vrot.slane %v1455_v40, %v8362_v41  ;;  %v1470_v46 = vcombine.high %v1462_v42, %v1462_v42  ;;  %v7678_v50 = vld [vmem:[%s9927_s1 + $0x108] sm:$0xff]   ;;  %v7682_v54 = vld [vmem:[%s9927_s1 + $0x110] sm:$0xff]   ;;  %v7685_v57 = vld [vmem:[%s9927_s1 + $0x1d8] sm:$0xff]  }
  0x14   : > { %6911 = vmatpush3.bf16.msra.mxu0 %v7653_v14  ;;  %v7679_v51 = vld [vmem:[%s9927_s1 + $0x188] sm:$0xff]   ;;  %v7683_v55 = vld [vmem:[%s9927_s1 + $0x190] sm:$0xff]   ;;  %v7686_v58 = vld [vmem:[%s9927_s1 + $0x118] sm:$0xff]  }
  0x15   : > { %6933 = vmatpush3.bf16.msra.mxu1 %v7654_v15  ;;  %6912 = vmatprep.subr.bf16.mxu0 %v7655_v16  ;;  %v1471_v47 = vcombine.high %v1469_v43, %v1469_v43  ;;  %v7687_v59 = vld [vmem:[%s9927_s1 + $0x198] sm:$0xff]   ;;  %v7688_v60 = vld [vmem:[%s9927_s1 + $0x160] sm:$0xff]   ;;  %v7692_v0 = vld [vmem:[%s9927_s1 + $0x168] sm:$0xff]  }
  0x16   : > { %6934 = vmatprep.subr.bf16.mxu1 %v7656_v17  ;;  %4895 = vmatprep.mubr.bf16.mxu0 %v1470_v46  ;;  %v7689_v61 = vld [vmem:[%s9927_s1 + $0x1e0] sm:$0xff]   ;;  %v7693_v1 = vld [vmem:[%s9927_s1 + $0x1e8] sm:$0xff]   ;;  %v7696_v4 = vld [vmem:[%s9927_s1 + $0x170] sm:$0xff]  }
  0x17   : > { %4935 = vmatprep.mubr.bf16.mxu1 %v1471_v47  ;;  %v7690_v62 = vld [vmem:[%s9927_s1 + $0x120] sm:$0xff]   ;;  %v7694_v2 = vld [vmem:[%s9927_s1 + $0x128] sm:$0xff]   ;;  %v7697_v5 = vld [vmem:[%s9927_s1 + $0x1f0] sm:$0xff]  }
  0x18   : > { %6913 = vmatpush3.bf16.msra.mxu0 %v7657_v18  ;;  %v7691_v63 = vld [vmem:[%s9927_s1 + $0x1a0] sm:$0xff]   ;;  %v7695_v3 = vld [vmem:[%s9927_s1 + $0x1a8] sm:$0xff]   ;;  %v7698_v6 = vld [vmem:[%s9927_s1 + $0x130] sm:$0xff]  }
  0x19   : > { %6935 = vmatpush3.bf16.msra.mxu1 %v7658_v19  ;;  %6914 = vmatprep.subr.bf16.mxu0 %v7659_v20  ;;  %v7699_v7 = vld [vmem:[%s9927_s1 + $0x1b0] sm:$0xff]   ;;  %v393_v8 = vld [vmem:[%s8347_s24 + $0x8] sm:$0xff]  ;;  %v7700_v9 = vld [vmem:[%s9927_s1 + $0x178] sm:$0xff]  }
  0x1a   : > { %6936 = vmatprep.subr.bf16.mxu1 %v7660_v21  ;;  %v1479_v10 = vrot.slane %v393_v8, %v8362_v41  ;;  %v1472_v11 = vcombine.high %v393_v8, %v393_v8  ;;  %v7701_v12 = vld [vmem:[%s9927_s1 + $0x1f8] sm:$0xff]   ;;  %v7705_v18 = vld [vmem:[%s9927_s1 + $0x240] sm:$0xff]   ;;  %v7715_v28 = vld [vmem:[%s9927_s1 + $0x210] sm:$0xff]  }
  0x1b   : > { %v7702_v13 = vld [vmem:[%s9927_s1 + $0x138] sm:$0xff]   ;;  %v7706_v19 = vld [vmem:[%s9927_s1 + $0x2c0] sm:$0xff]   ;;  %v7726_v39 = vld [vmem:[%s9927_s1 + $0x2e8] sm:$0xff]  }
  0x1c   : > { %6915 = vmatpush3.bf16.msra.mxu0 %v7661_v22  ;;  %v1487_v14 = vcombine.high %v1479_v10, %v1479_v10  ;;  %v1486_v15 = vrot.slane %v1472_v11, %v8362_v41  ;;  %v7703_v16 = vld [vmem:[%s9927_s1 + $0x1b8] sm:$0xff]   ;;  %v7707_v20 = vld [vmem:[%s9927_s1 + $0x200] sm:$0xff]   ;;  %v7709_v22 = vld [vmem:[%s9927_s1 + $0x248] sm:$0xff]  }
  0x1d   : > { %6937 = vmatpush3.bf16.msra.mxu1 %v7662_v23  ;;  %6916 = vmatprep.subr.bf16.mxu0 %v7663_v24  ;;  %v7708_v21 = vld [vmem:[%s9927_s1 + $0x280] sm:$0xff]   ;;  %v7710_v23 = vld [vmem:[%s9927_s1 + $0x2c8] sm:$0xff]   ;;  %v7720_v33 = vld [vmem:[%s9927_s1 + $0x298] sm:$0xff]  }
  0x1e   : > { %6938 = vmatprep.subr.bf16.mxu1 %v7664_v25  ;;  %v1488_v17 = vcombine.high %v1486_v15, %v1486_v15  ;;  %v7711_v24 = vld [vmem:[%s9927_s1 + $0x208] sm:$0xff]   ;;  %v7721_v34 = vld [vmem:[%s9927_s1 + $0x260] sm:$0xff]   ;;  %v7732_v46 = vld [vmem:[%s9927_s1 + $0x2b0] sm:$0xff]  }
  0x1f   : > { %v7712_v25 = vld [vmem:[%s9927_s1 + $0x288] sm:$0xff]   ;;  %v7723_v36 = vld [vmem:[%s9927_s1 + $0x220] sm:$0xff]   ;;  %v394_v47 = vld [vmem:[%s8347_s24 + $0x10] sm:$0xff] }
  0x20   : > { %6917 = vmatpush3.bf16.msra.mxu0 %v7665_v26  ;;  %v7713_v26 = vld [vmem:[%s9927_s1 + $0x250] sm:$0xff]   ;;  %v7724_v37 = vld [vmem:[%s9927_s1 + $0x2a0] sm:$0xff]   ;;  %v7727_v40 = vld [vmem:[%s9927_s1 + $0x228] sm:$0xff]  }
  0x21   : > { %6939 = vmatpush3.bf16.msra.mxu1 %v7666_v27  ;;  %6918 = vmatprep.subr.bf16.mxu0 %v7667_v29  ;;  %v7714_v27 = vld [vmem:[%s9927_s1 + $0x2d0] sm:$0xff]   ;;  %v7753_v8 = vld [vmem:[%s9927_s1 + $0x398] sm:$0xff]   ;;  %v7756_v11 = vld [vmem:[%s9927_s1 + $0x320] sm:$0xff]  }
  0x22   : > { %6940 = vmatprep.subr.bf16.mxu1 %v7668_v30  ;;  %v7716_v29 = vld [vmem:[%s9927_s1 + $0x290] sm:$0xff]   ;;  %v7717_v30 = vld [vmem:[%s9927_s1 + $0x258] sm:$0xff]  }
  0x24   : > { %6919 = vmatpush3.bf16.msra.mxu0 %v7669_v31  ;;  %v7718_v31 = vld [vmem:[%s9927_s1 + $0x2d8] sm:$0xff]  }
  0x25   : > { %6941 = vmatpush3.bf16.msra.mxu1 %v7670_v32  ;;  %6948 = vmatprep.subr.bf16.mxu0 %v7672_v35  ;;  %v7719_v32 = vld [vmem:[%s9927_s1 + $0x218] sm:$0xff]   ;;  %v7722_v35 = vld [vmem:[%s9927_s1 + $0x2e0] sm:$0xff]  }
  0x26   : > { %6970 = vmatprep.subr.bf16.mxu1 %v7673_v38  ;;  %v7725_v38 = vld [vmem:[%s9927_s1 + $0x268] sm:$0xff]  }
  0x27   : > { %4896 = vmatmul.mubr.bf16.vlgmr.msra.gmra.mrb[0].mxu0 %v1462_v42  ;;  %v7728_v42 = vld [vmem:[%s9927_s1 + $0x2a8] sm:$0xff]  }
  0x28   : > { %4936 = vmatmul.mubr.bf16.vlgmr.msra.gmra.mrb[0].mxu1 %v1469_v43  ;;  %6949 = vmatpush3.bf16.msra.mxu0 %v7674_v44  ;;  %v7729_v43 = vld [vmem:[%s9927_s1 + $0x270] sm:$0xff]  }
  0x29   : > { %6971 = vmatpush3.bf16.msra.mxu1 %v7675_v45  ;;  %6950 = vmatprep.subr.bf16.mxu0 %v7676_v48  ;;  %v7730_v44 = vld [vmem:[%s9927_s1 + $0x2f0] sm:$0xff]   ;;  %v7733_v48 = vld [vmem:[%s9927_s1 + $0x278] sm:$0xff]  }
  0x2a   : > { %6972 = vmatprep.subr.bf16.mxu1 %v7677_v49  ;;  %4975 = vmatprep.mubr.bf16.mxu0 %v1487_v14  ;;  %v7731_v45 = vld [vmem:[%s9927_s1 + $0x230] sm:$0xff]   ;;  %v1496_v49 = vrot.slane %v394_v47, %v8362_v41  ;;  %v7759_v14 = vld [vmem:[%s9927_s1 + $0x3e8] sm:$0xff]  }
  0x2b   : > { %5015 = vmatprep.mubr.bf16.mxu1 %v1488_v17  ;;  %v7762_v17 = vld [vmem:[%s9927_s1 + $0x370] sm:$0xff]  }
  0x2c   : > { %6951 = vmatpush3.bf16.msra.mxu0 %v7678_v50  ;;  %v1489_v50 = vcombine.high %v394_v47, %v394_v47  ;;  %v7786_v47 = vld [vmem:[%s9927_s1 + $0x498] sm:$0xff]  }
  0x2d   : > { %6973 = vmatpush3.bf16.msra.mxu1 %v7679_v51  ;;  %6952 = vmatprep.subr.bf16.mxu0 %v7680_v52  ;;  %v7734_v51 = vld [vmem:[%s9927_s1 + $0x2f8] sm:$0xff]  }
  0x2e   : > { %6974 = vmatprep.subr.bf16.mxu1 %v7681_v53  ;;  %v7735_v52 = vld [vmem:[%s9927_s1 + $0x238] sm:$0xff]   ;;  %v1504_v53 = vcombine.high %v1496_v49, %v1496_v49 }
  0x30   : > { %6953 = vmatpush3.bf16.msra.mxu0 %v7682_v54  ;;  %v1503_v54 = vrot.slane %v1489_v50, %v8362_v41  ;;  %v7789_v50 = vld [vmem:[%s9927_s1 + $0x420] sm:$0xff]  }
  0x31   : > { %6975 = vmatpush3.bf16.msra.mxu1 %v7683_v55  ;;  %6954 = vmatprep.subr.bf16.mxu0 %v7684_v56  ;;  %v7736_v55 = vld [vmem:[%s9927_s1 + $0x2b8] sm:$0xff]  }
  0x32   : > { %6976 = vmatprep.subr.bf16.mxu1 %v7685_v57  ;;  %v1505_v56 = vcombine.high %v1503_v54, %v1503_v54  ;;  %v7738_v57 = vld [vmem:[%s9927_s1 + $0x340] sm:$0xff]  }
  0x34   : > { %6955 = vmatpush3.bf16.msra.mxu0 %v7686_v58  ;;  %v7739_v58 = vld [vmem:[%s9927_s1 + $0x3c0] sm:$0xff]  }
  0x35   : > { %6977 = vmatpush3.bf16.msra.mxu1 %v7687_v59  ;;  %6956 = vmatprep.subr.bf16.mxu0 %v7688_v60  ;;  %v7740_v59 = vld [vmem:[%s9927_s1 + $0x300] sm:$0xff]  }
  0x36   : > { %6978 = vmatprep.subr.bf16.mxu1 %v7689_v61  ;;  %v7741_v60 = vld [vmem:[%s9927_s1 + $0x380] sm:$0xff]   ;;  %v7742_v61 = vld [vmem:[%s9927_s1 + $0x348] sm:$0xff]  }
  0x38   : > { %6957 = vmatpush3.bf16.msra.mxu0 %v7690_v62  ;;  %v7743_v62 = vld [vmem:[%s9927_s1 + $0x3c8] sm:$0xff]  }
  0x39   : > { %6979 = vmatpush3.bf16.msra.mxu1 %v7691_v63  ;;  %6958 = vmatprep.subr.bf16.mxu0 %v7692_v0  ;;  %v7744_v63 = vld [vmem:[%s9927_s1 + $0x308] sm:$0xff]  }
  0x3a   : > { %6980 = vmatprep.subr.bf16.mxu1 %v7693_v1  ;;  %v7745_v0 = vld [vmem:[%s9927_s1 + $0x388] sm:$0xff]   ;;  %v7746_v1 = vld [vmem:[%s9927_s1 + $0x350] sm:$0xff]  }
  0x3c   : > { %6959 = vmatpush3.bf16.msra.mxu0 %v7694_v2  ;;  %v7747_v2 = vld [vmem:[%s9927_s1 + $0x3d0] sm:$0xff]  }
  0x3d   : > { %6981 = vmatpush3.bf16.msra.mxu1 %v7695_v3  ;;  %6960 = vmatprep.subr.bf16.mxu0 %v7696_v4  ;;  %v7748_v3 = vld [vmem:[%s9927_s1 + $0x310] sm:$0xff]  }
  0x3e   : > { %6982 = vmatprep.subr.bf16.mxu1 %v7697_v5  ;;  %v7749_v4 = vld [vmem:[%s9927_s1 + $0x390] sm:$0xff]   ;;  %v7750_v5 = vld [vmem:[%s9927_s1 + $0x358] sm:$0xff]  }
  0x40   : > { %6961 = vmatpush3.bf16.msra.mxu0 %v7698_v6  ;;  %v7751_v6 = vld [vmem:[%s9927_s1 + $0x3d8] sm:$0xff]  }
  0x41   : > { %6983 = vmatpush3.bf16.msra.mxu1 %v7699_v7  ;;  %6962 = vmatprep.subr.bf16.mxu0 %v7700_v9  ;;  %v7752_v7 = vld [vmem:[%s9927_s1 + $0x318] sm:$0xff]   ;;  %v7754_v9 = vld [vmem:[%s9927_s1 + $0x360] sm:$0xff]  }
  0x42   : > { %6984 = vmatprep.subr.bf16.mxu1 %v7701_v12  ;;  %v7757_v12 = vld [vmem:[%s9927_s1 + $0x3a0] sm:$0xff]  }
  0x44   : > { %6963 = vmatpush3.bf16.msra.mxu0 %v7702_v13  ;;  %v7758_v13 = vld [vmem:[%s9927_s1 + $0x368] sm:$0xff]  }
  0x45   : > { %6985 = vmatpush3.bf16.msra.mxu1 %v7703_v16  ;;  %6992 = vmatprep.subr.bf16.mxu0 %v7705_v18  ;;  %v7761_v16 = vld [vmem:[%s9927_s1 + $0x3a8] sm:$0xff]   ;;  %v7763_v18 = vld [vmem:[%s9927_s1 + $0x3f0] sm:$0xff]  }
  0x46   : > { %7014 = vmatprep.subr.bf16.mxu1 %v7706_v19  ;;  %v7764_v19 = vld [vmem:[%s9927_s1 + $0x330] sm:$0xff]  }
  0x47   : > { %4976 = vmatmul.mubr.bf16.vlgmr.msra.gmra.mrb[4].mxu0 %v1479_v10  ;;  %v7755_v10 = vld [vmem:[%s9927_s1 + $0x3e0] sm:$0xff]  }
  0x48   : > { %5016 = vmatmul.mubr.bf16.vlgmr.msra.gmra.mrb[4].mxu1 %v1486_v15  ;;  %6993 = vmatpush3.bf16.msra.mxu0 %v7707_v20  ;;  %v7760_v15 = vld [vmem:[%s9927_s1 + $0x328] sm:$0xff]   ;;  %v7765_v20 = vld [vmem:[%s9927_s1 + $0x3b0] sm:$0xff]  }
  0x49   : > { %7015 = vmatpush3.bf16.msra.mxu1 %v7708_v21  ;;  %6994 = vmatprep.subr.bf16.mxu0 %v7709_v22  ;;  %v7766_v21 = vld [vmem:[%s9927_s1 + $0x378] sm:$0xff]  }
  0x4a   : > { %7016 = vmatprep.subr.bf16.mxu1 %v7710_v23  ;;  %5055 = vmatprep.mubr.bf16.mxu0 %v1504_v53  ;;  %v395_v22 = vld [vmem:[%s8347_s24 + $0x18] sm:$0xff]  ;;  %v7792_v53 = vld [vmem:[%s9927_s1 + $0x4e8] sm:$0xff]  }
  0x4b   : > { %5095 = vmatprep.mubr.bf16.mxu1 %v1505_v56  ;;  %v7767_v23 = vld [vmem:[%s9927_s1 + $0x3f8] sm:$0xff]   ;;  %v7795_v56 = vld [vmem:[%s9927_s1 + $0x470] sm:$0xff]  }
  0x4c   : > { %6995 = vmatpush3.bf16.msra.mxu0 %v7711_v24  ;;  %v1513_v24 = vrot.slane %v395_v22, %v8362_v41 }
  0x4d   : > { %7017 = vmatpush3.bf16.msra.mxu1 %v7712_v25  ;;  %6996 = vmatprep.subr.bf16.mxu0 %v7713_v26  ;;  %v1506_v25 = vcombine.high %v395_v22, %v395_v22  ;;  %v7768_v26 = vld [vmem:[%s9927_s1 + $0x338] sm:$0xff]   ;;  %v7820_v22 = vld [vmem:[%s9927_s1 + $0x560] sm:$0xff]  }
  0x4e   : > { %7018 = vmatprep.subr.bf16.mxu1 %v7714_v27  ;;  %v7769_v27 = vld [vmem:[%s9927_s1 + $0x3b8] sm:$0xff]  }
  0x50   : > { %6997 = vmatpush3.bf16.msra.mxu0 %v7715_v28  ;;  %v1521_v28 = vcombine.high %v1513_v24, %v1513_v24 }
  0x51   : > { %7019 = vmatpush3.bf16.msra.mxu1 %v7716_v29  ;;  %6998 = vmatprep.subr.bf16.mxu0 %v7717_v30  ;;  %v1520_v29 = vrot.slane %v1506_v25, %v8362_v41  ;;  %v7771_v30 = vld [vmem:[%s9927_s1 + $0x440] sm:$0xff]  }
  0x52   : > { %7020 = vmatprep.subr.bf16.mxu1 %v7718_v31  ;;  %v7823_v25 = vld [vmem:[%s9927_s1 + $0x5a0] sm:$0xff]  }
  0x53   : > { %v1522_v31 = vcombine.high %v1520_v29, %v1520_v29 }
  0x54   : > { %6999 = vmatpush3.bf16.msra.mxu0 %v7719_v32  ;;  %v7772_v32 = vld [vmem:[%s9927_s1 + $0x4c0] sm:$0xff]  }
  0x55   : > { %7021 = vmatpush3.bf16.msra.mxu1 %v7720_v33  ;;  %7000 = vmatprep.subr.bf16.mxu0 %v7721_v34  ;;  %v7773_v33 = vld [vmem:[%s9927_s1 + $0x400] sm:$0xff]  }
  0x56   : > { %7022 = vmatprep.subr.bf16.mxu1 %v7722_v35  ;;  %v7774_v34 = vld [vmem:[%s9927_s1 + $0x480] sm:$0xff]   ;;  %v7775_v35 = vld [vmem:[%s9927_s1 + $0x448] sm:$0xff]  }
  0x58   : > { %7001 = vmatpush3.bf16.msra.mxu0 %v7723_v36  ;;  %v7776_v36 = vld [vmem:[%s9927_s1 + $0x4c8] sm:$0xff]  }
  0x59   : > { %7023 = vmatpush3.bf16.msra.mxu1 %v7724_v37  ;;  %7002 = vmatprep.subr.bf16.mxu0 %v7725_v38  ;;  %v7777_v37 = vld [vmem:[%s9927_s1 + $0x408] sm:$0xff]  }
  0x5a   : > { %7024 = vmatprep.subr.bf16.mxu1 %v7726_v39  ;;  %v7778_v38 = vld [vmem:[%s9927_s1 + $0x488] sm:$0xff]   ;;  %v7779_v39 = vld [vmem:[%s9927_s1 + $0x450] sm:$0xff]  }
  0x5c   : > { %7003 = vmatpush3.bf16.msra.mxu0 %v7727_v40  ;;  %v7780_v40 = vld [vmem:[%s9927_s1 + $0x4d0] sm:$0xff]  }
  0x5d   : > { %7025 = vmatpush3.bf16.msra.mxu1 %v7728_v42  ;;  %7004 = vmatprep.subr.bf16.mxu0 %v7729_v43  ;;  %v7781_v42 = vld [vmem:[%s9927_s1 + $0x410] sm:$0xff]  }
  0x5e   : > { %7026 = vmatprep.subr.bf16.mxu1 %v7730_v44  ;;  %v7782_v43 = vld [vmem:[%s9927_s1 + $0x490] sm:$0xff]   ;;  %v7783_v44 = vld [vmem:[%s9927_s1 + $0x458] sm:$0xff]  }
  0x60   : > { %7005 = vmatpush3.bf16.msra.mxu0 %v7731_v45  ;;  %v7784_v45 = vld [vmem:[%s9927_s1 + $0x4d8] sm:$0xff]  }
  0x61   : > { %7027 = vmatpush3.bf16.msra.mxu1 %v7732_v46  ;;  %7006 = vmatprep.subr.bf16.mxu0 %v7733_v48  ;;  %v7785_v46 = vld [vmem:[%s9927_s1 + $0x418] sm:$0xff]   ;;  %v7787_v48 = vld [vmem:[%s9927_s1 + $0x460] sm:$0xff]  }
  0x62   : > { %7028 = vmatprep.subr.bf16.mxu1 %v7734_v51  ;;  %v7790_v51 = vld [vmem:[%s9927_s1 + $0x4a0] sm:$0xff]  }
  0x64   : > { %7007 = vmatpush3.bf16.msra.mxu0 %v7735_v52  ;;  %v7791_v52 = vld [vmem:[%s9927_s1 + $0x468] sm:$0xff]  }
  0x65   : > { %7029 = vmatpush3.bf16.msra.mxu1 %v7736_v55  ;;  %7036 = vmatprep.subr.bf16.mxu0 %v7738_v57  ;;  %v7794_v55 = vld [vmem:[%s9927_s1 + $0x4a8] sm:$0xff]   ;;  %v7796_v57 = vld [vmem:[%s9927_s1 + $0x4f0] sm:$0xff]  }
  0x66   : > { %7058 = vmatprep.subr.bf16.mxu1 %v7739_v58  ;;  %v7797_v58 = vld [vmem:[%s9927_s1 + $0x430] sm:$0xff]  }
  0x67   : > { %5056 = vmatmul.mubr.bf16.vlgmr.msra.gmra.mrb[8].mxu0 %v1496_v49  ;;  %v7788_v49 = vld [vmem:[%s9927_s1 + $0x4e0] sm:$0xff]  }
  0x68   : > { %5096 = vmatmul.mubr.bf16.vlgmr.msra.gmra.mrb[8].mxu1 %v1503_v54  ;;  %7037 = vmatpush3.bf16.msra.mxu0 %v7740_v59  ;;  %v7793_v54 = vld [vmem:[%s9927_s1 + $0x428] sm:$0xff]   ;;  %v7798_v59 = vld [vmem:[%s9927_s1 + $0x4b0] sm:$0xff]  }
  0x69   : > { %7059 = vmatpush3.bf16.msra.mxu1 %v7741_v60  ;;  %7038 = vmatprep.subr.bf16.mxu0 %v7742_v61  ;;  %v7799_v60 = vld [vmem:[%s9927_s1 + $0x478] sm:$0xff]   ;;  %v396_v61 = vld [vmem:[%s8347_s24 + $0x20] sm:$0xff] }
  0x6a   : > { %7060 = vmatprep.subr.bf16.mxu1 %v7743_v62  ;;  %5135 = vmatprep.mubr.bf16.mxu0 %v1521_v28  ;;  %v7800_v62 = vld [vmem:[%s9927_s1 + $0x4f8] sm:$0xff]   ;;  %v7826_v28 = vld [vmem:[%s9927_s1 + $0x528] sm:$0xff]  }
  0x6b   : > { %5175 = vmatprep.mubr.bf16.mxu1 %v1522_v31  ;;  %v7829_v31 = vld [vmem:[%s9927_s1 + $0x5f0] sm:$0xff]  }
  0x6c   : > { %7039 = vmatpush3.bf16.msra.mxu0 %v7744_v63  ;;  %v1530_v63 = vrot.slane %v396_v61, %v8362_v41 }
  0x6d   : > { %7061 = vmatpush3.bf16.msra.mxu1 %v7745_v0  ;;  %7040 = vmatprep.subr.bf16.mxu0 %v7746_v1  ;;  %v1523_v0 = vcombine.high %v396_v61, %v396_v61  ;;  %v7801_v1 = vld [vmem:[%s9927_s1 + $0x438] sm:$0xff]   ;;  %v7853_v61 = vld [vmem:[%s9927_s1 + $0x660] sm:$0xff]  }
  0x6e   : > { %7062 = vmatprep.subr.bf16.mxu1 %v7747_v2  ;;  %v7802_v2 = vld [vmem:[%s9927_s1 + $0x4b8] sm:$0xff]  }
  0x70   : > { %7041 = vmatpush3.bf16.msra.mxu0 %v7748_v3  ;;  %v1538_v3 = vcombine.high %v1530_v63, %v1530_v63 }
  0x71   : > { %7063 = vmatpush3.bf16.msra.mxu1 %v7749_v4  ;;  %7042 = vmatprep.subr.bf16.mxu0 %v7750_v5  ;;  %v1537_v4 = vrot.slane %v1523_v0, %v8362_v41  ;;  %v7804_v5 = vld [vmem:[%s9927_s1 + $0x540] sm:$0xff]  }
  0x72   : > { %7064 = vmatprep.subr.bf16.mxu1 %v7751_v6  ;;  %v7856_v0 = vld [vmem:[%s9927_s1 + $0x6a0] sm:$0xff]  }
  0x73   : > { %v1539_v6 = vcombine.high %v1537_v4, %v1537_v4 }
  0x74   : > { %7043 = vmatpush3.bf16.msra.mxu0 %v7752_v7  ;;  %v7805_v7 = vld [vmem:[%s9927_s1 + $0x5c0] sm:$0xff]  }
  0x75   : > { %7065 = vmatpush3.bf16.msra.mxu1 %v7753_v8  ;;  %7044 = vmatprep.subr.bf16.mxu0 %v7754_v9  ;;  %v7806_v8 = vld [vmem:[%s9927_s1 + $0x500] sm:$0xff]  }
  0x76   : > { %7066 = vmatprep.subr.bf16.mxu1 %v7755_v10  ;;  %v7807_v9 = vld [vmem:[%s9927_s1 + $0x580] sm:$0xff]   ;;  %v7808_v10 = vld [vmem:[%s9927_s1 + $0x548] sm:$0xff]  }
  0x78   : > { %7045 = vmatpush3.bf16.msra.mxu0 %v7756_v11  ;;  %v7809_v11 = vld [vmem:[%s9927_s1 + $0x5c8] sm:$0xff]  }
  0x79   : > { %7067 = vmatpush3.bf16.msra.mxu1 %v7757_v12  ;;  %7046 = vmatprep.subr.bf16.mxu0 %v7758_v13  ;;  %v7810_v12 = vld [vmem:[%s9927_s1 + $0x508] sm:$0xff]  }
  0x7a   : > { %7068 = vmatprep.subr.bf16.mxu1 %v7759_v14  ;;  %v7811_v13 = vld [vmem:[%s9927_s1 + $0x588] sm:$0xff]   ;;  %v7812_v14 = vld [vmem:[%s9927_s1 + $0x550] sm:$0xff]  }
  0x7c   : > { %7047 = vmatpush3.bf16.msra.mxu0 %v7760_v15  ;;  %v7813_v15 = vld [vmem:[%s9927_s1 + $0x5d0] sm:$0xff]  }
  0x7d   : > { %7069 = vmatpush3.bf16.msra.mxu1 %v7761_v16  ;;  %7048 = vmatprep.subr.bf16.mxu0 %v7762_v17  ;;  %v7814_v16 = vld [vmem:[%s9927_s1 + $0x510] sm:$0xff]  }
  0x7e   : > { %7070 = vmatprep.subr.bf16.mxu1 %v7763_v18  ;;  %v7815_v17 = vld [vmem:[%s9927_s1 + $0x590] sm:$0xff]   ;;  %v7816_v18 = vld [vmem:[%s9927_s1 + $0x558] sm:$0xff]  }
  0x80   : > { %7049 = vmatpush3.bf16.msra.mxu0 %v7764_v19  ;;  %v7817_v19 = vld [vmem:[%s9927_s1 + $0x5d8] sm:$0xff]  }
  0x81   : > { %7071 = vmatpush3.bf16.msra.mxu1 %v7765_v20  ;;  %7050 = vmatprep.subr.bf16.mxu0 %v7766_v21  ;;  %v7818_v20 = vld [vmem:[%s9927_s1 + $0x518] sm:$0xff]  }
  0x82   : > { %7072 = vmatprep.subr.bf16.mxu1 %v7767_v23  ;;  %v7819_v21 = vld [vmem:[%s9927_s1 + $0x598] sm:$0xff]   ;;  %v7821_v23 = vld [vmem:[%s9927_s1 + $0x5e0] sm:$0xff]  }
  0x84   : > { %7051 = vmatpush3.bf16.msra.mxu0 %v7768_v26  ;;  %v7824_v26 = vld [vmem:[%s9927_s1 + $0x568] sm:$0xff]  }
  0x85   : > { %7073 = vmatpush3.bf16.msra.mxu1 %v7769_v27  ;;  %7080 = vmatprep.subr.bf16.mxu0 %v7771_v30  ;;  %v7825_v27 = vld [vmem:[%s9927_s1 + $0x5e8] sm:$0xff]   ;;  %v7828_v30 = vld [vmem:[%s9927_s1 + $0x570] sm:$0xff]  }
  0x86   : > { %7102 = vmatprep.subr.bf16.mxu1 %v7772_v32  ;;  %v7830_v32 = vld [vmem:[%s9927_s1 + $0x530] sm:$0xff]  }
  0x87   : > { %5136 = vmatmul.mubr.bf16.vlgmr.msra.gmra.mrb[12].mxu0 %v1513_v24  ;;  %v7822_v24 = vld [vmem:[%s9927_s1 + $0x520] sm:$0xff]  }
  0x88   : > { %5176 = vmatmul.mubr.bf16.vlgmr.msra.gmra.mrb[12].mxu1 %v1520_v29  ;;  %7081 = vmatpush3.bf16.msra.mxu0 %v7773_v33  ;;  %v7827_v29 = vld [vmem:[%s9927_s1 + $0x5a8] sm:$0xff]   ;;  %v7831_v33 = vld [vmem:[%s9927_s1 + $0x5b0] sm:$0xff]  }
  0x89   : > { %7103 = vmatpush3.bf16.msra.mxu1 %v7774_v34  ;;  %7082 = vmatprep.subr.bf16.mxu0 %v7775_v35  ;;  %v7832_v34 = vld [vmem:[%s9927_s1 + $0x578] sm:$0xff]   ;;  %v397_v35 = vld [vmem:[%s8347_s24 + $0x28] sm:$0xff] }
  0x8a   : > { %7104 = vmatprep.subr.bf16.mxu1 %v7776_v36  ;;  %5215 = vmatprep.mubr.bf16.mxu0 %v1538_v3  ;;  %v7833_v36 = vld [vmem:[%s9927_s1 + $0x5f8] sm:$0xff]   ;;  %v7859_v3 = vld [vmem:[%s9927_s1 + $0x628] sm:$0xff]  }
  0x8b   : > { %5255 = vmatprep.mubr.bf16.mxu1 %v1539_v6  ;;  %v7862_v6 = vld [vmem:[%s9927_s1 + $0x6f0] sm:$0xff]  }
  0x8c   : > { %7083 = vmatpush3.bf16.msra.mxu0 %v7777_v37  ;;  %v1547_v37 = vrot.slane %v397_v35, %v8362_v41 }
  0x8d   : > { %7105 = vmatpush3.bf16.msra.mxu1 %v7778_v38  ;;  %7084 = vmatprep.subr.bf16.mxu0 %v7779_v39  ;;  %v1540_v38 = vcombine.high %v397_v35, %v397_v35  ;;  %v7834_v39 = vld [vmem:[%s9927_s1 + $0x538] sm:$0xff]   ;;  %v7886_v35 = vld [vmem:[%s9927_s1 + $0x760] sm:$0xff]  }
  0x8e   : > { %7106 = vmatprep.subr.bf16.mxu1 %v7780_v40  ;;  %v7835_v40 = vld [vmem:[%s9927_s1 + $0x5b8] sm:$0xff]  }
  0x90   : > { %7085 = vmatpush3.bf16.msra.mxu0 %v7781_v42  ;;  %v1555_v42 = vcombine.high %v1547_v37, %v1547_v37 }
  0x91   : > { %7107 = vmatpush3.bf16.msra.mxu1 %v7782_v43  ;;  %7086 = vmatprep.subr.bf16.mxu0 %v7783_v44  ;;  %v1554_v43 = vrot.slane %v1540_v38, %v8362_v41  ;;  %v7837_v44 = vld [vmem:[%s9927_s1 + $0x640] sm:$0xff]  }
  0x92   : > { %7108 = vmatprep.subr.bf16.mxu1 %v7784_v45  ;;  %v7889_v38 = vld [vmem:[%s9927_s1 + $0x7a0] sm:$0xff]  }
  0x93   : > { %v1556_v45 = vcombine.high %v1554_v43, %v1554_v43 }
  0x94   : > { %7087 = vmatpush3.bf16.msra.mxu0 %v7785_v46  ;;  %v7838_v46 = vld [vmem:[%s9927_s1 + $0x6c0] sm:$0xff]  }
  0x95   : > { %7109 = vmatpush3.bf16.msra.mxu1 %v7786_v47  ;;  %7088 = vmatprep.subr.bf16.mxu0 %v7787_v48  ;;  %v7839_v47 = vld [vmem:[%s9927_s1 + $0x600] sm:$0xff]  }
  0x96   : > { %7110 = vmatprep.subr.bf16.mxu1 %v7788_v49  ;;  %v7840_v48 = vld [vmem:[%s9927_s1 + $0x680] sm:$0xff]   ;;  %v7841_v49 = vld [vmem:[%s9927_s1 + $0x648] sm:$0xff]  }
  0x98   : > { %7089 = vmatpush3.bf16.msra.mxu0 %v7789_v50  ;;  %v7842_v50 = vld [vmem:[%s9927_s1 + $0x6c8] sm:$0xff]  }
  0x99   : > { %7111 = vmatpush3.bf16.msra.mxu1 %v7790_v51  ;;  %7090 = vmatprep.subr.bf16.mxu0 %v7791_v52  ;;  %v7843_v51 = vld [vmem:[%s9927_s1 + $0x608] sm:$0xff]  }
  0x9a   : > { %7112 = vmatprep.subr.bf16.mxu1 %v7792_v53  ;;  %v7844_v52 = vld [vmem:[%s9927_s1 + $0x688] sm:$0xff]   ;;  %v7845_v53 = vld [vmem:[%s9927_s1 + $0x650] sm:$0xff]  }
  0x9c   : > { %7091 = vmatpush3.bf16.msra.mxu0 %v7793_v54  ;;  %v7846_v54 = vld [vmem:[%s9927_s1 + $0x6d0] sm:$0xff]  }
  0x9d   : > { %7113 = vmatpush3.bf16.msra.mxu1 %v7794_v55  ;;  %7092 = vmatprep.subr.bf16.mxu0 %v7795_v56  ;;  %v7847_v55 = vld [vmem:[%s9927_s1 + $0x610] sm:$0xff]  }
  0x9e   : > { %7114 = vmatprep.subr.bf16.mxu1 %v7796_v57  ;;  %v7848_v56 = vld [vmem:[%s9927_s1 + $0x690] sm:$0xff]   ;;  %v7849_v57 = vld [vmem:[%s9927_s1 + $0x658] sm:$0xff]  }
  0xa0   : > { %7093 = vmatpush3.bf16.msra.mxu0 %v7797_v58  ;;  %v7850_v58 = vld [vmem:[%s9927_s1 + $0x6d8] sm:$0xff]  }
  0xa1   : > { %7115 = vmatpush3.bf16.msra.mxu1 %v7798_v59  ;;  %7094 = vmatprep.subr.bf16.mxu0 %v7799_v60  ;;  %v7851_v59 = vld [vmem:[%s9927_s1 + $0x618] sm:$0xff]  }
  0xa2   : > { %7116 = vmatprep.subr.bf16.mxu1 %v7800_v62  ;;  %v7852_v60 = vld [vmem:[%s9927_s1 + $0x698] sm:$0xff]   ;;  %v7854_v62 = vld [vmem:[%s9927_s1 + $0x6e0] sm:$0xff]  }
  0xa4   : > { %7095 = vmatpush3.bf16.msra.mxu0 %v7801_v1  ;;  %v7857_v1 = vld [vmem:[%s9927_s1 + $0x668] sm:$0xff]  }
  0xa5   : > { %7117 = vmatpush3.bf16.msra.mxu1 %v7802_v2  ;;  %7124 = vmatprep.subr.bf16.mxu0 %v7804_v5  ;;  %v7858_v2 = vld [vmem:[%s9927_s1 + $0x6e8] sm:$0xff]   ;;  %v7861_v5 = vld [vmem:[%s9927_s1 + $0x670] sm:$0xff]  }
  0xa6   : > { %7146 = vmatprep.subr.bf16.mxu1 %v7805_v7  ;;  %v7863_v7 = vld [vmem:[%s9927_s1 + $0x630] sm:$0xff]  }
  0xa7   : > { %5216 = vmatmul.mubr.bf16.vlgmr.msra.gmra.mrb[16].mxu0 %v1530_v63  ;;  %v7855_v63 = vld [vmem:[%s9927_s1 + $0x620] sm:$0xff]  }
  0xa8   : > { %5256 = vmatmul.mubr.bf16.vlgmr.msra.gmra.mrb[16].mxu1 %v1537_v4  ;;  %7125 = vmatpush3.bf16.msra.mxu0 %v7806_v8  ;;  %v7860_v4 = vld [vmem:[%s9927_s1 + $0x6a8] sm:$0xff]   ;;  %v7864_v8 = vld [vmem:[%s9927_s1 + $0x6b0] sm:$0xff]  }
  0xa9   : > { %7147 = vmatpush3.bf16.msra.mxu1 %v7807_v9  ;;  %7126 = vmatprep.subr.bf16.mxu0 %v7808_v10  ;;  %v7865_v9 = vld [vmem:[%s9927_s1 + $0x678] sm:$0xff]  }
  0xaa   : > { %7148 = vmatprep.subr.bf16.mxu1 %v7809_v11  ;;  %5295 = vmatprep.mubr.bf16.mxu0 %v1555_v42  ;;  %v7866_v10 = vld [vmem:[%s9927_s1 + $0x6f8] sm:$0xff]   ;;  %v398_v11 = vld [vmem:[%s8347_s24 + $0x30] sm:$0xff]  ;;  %v7892_v42 = vld [vmem:[%s9927_s1 + $0x728] sm:$0xff]  }
  0xab   : > { %5335 = vmatprep.mubr.bf16.mxu1 %v1556_v45  ;;  %v6381_v45 = vld [vmem:[%s9928_s2] ss:$0 sm:$0xff] }
  0xac   : > { %7127 = vmatpush3.bf16.msra.mxu0 %v7810_v12  ;;  %v7867_v12 = vld [vmem:[%s9927_s1 + $0x638] sm:$0xff]  }
  0xad   : > { %7149 = vmatpush3.bf16.msra.mxu1 %v7811_v13  ;;  %7128 = vmatprep.subr.bf16.mxu0 %v7812_v14  ;;  %v1564_v13 = vrot.slane %v398_v11, %v8362_v41  ;;  %v1557_v14 = vcombine.high %v398_v11, %v398_v11  ;;  %v7907_v11 = vld [vmem:[%s9927_s1 + $0x848] sm:$0xff]  }
  0xae   : > { %7150 = vmatprep.subr.bf16.mxu1 %v7813_v15  ;;  %v7868_v15 = vld [vmem:[%s9927_s1 + $0x6b8] sm:$0xff]  }
  0xb0   : > { %7129 = vmatpush3.bf16.msra.mxu0 %v7814_v16  ;;  %v1572_v16 = vcombine.high %v1564_v13, %v1564_v13 }
  0xb1   : > { %7151 = vmatpush3.bf16.msra.mxu1 %v7815_v17  ;;  %7130 = vmatprep.subr.bf16.mxu0 %v7816_v18  ;;  %v1571_v17 = vrot.slane %v1557_v14, %v8362_v41  ;;  %v7870_v18 = vld [vmem:[%s9927_s1 + $0x740] sm:$0xff]   ;;  %v7910_v14 = vld [vmem:[%s9927_s1 + $0x888] sm:$0xff]  }
  0xb2   : > { %7152 = vmatprep.subr.bf16.mxu1 %v7817_v19  ;;  %v7871_v19 = vld [vmem:[%s9927_s1 + $0x7c0] sm:$0xff]  }
  0xb4   : > { %7131 = vmatpush3.bf16.msra.mxu0 %v7818_v20  ;;  %v1573_v20 = vcombine.high %v1571_v17, %v1571_v17 }
  0xb5   : > { %7153 = vmatpush3.bf16.msra.mxu1 %v7819_v21  ;;  %7132 = vmatprep.subr.bf16.mxu0 %v7820_v22  ;;  %v7872_v21 = vld [vmem:[%s9927_s1 + $0x700] sm:$0xff]  }
  0xb6   : > { %7154 = vmatprep.subr.bf16.mxu1 %v7821_v23  ;;  %v7873_v22 = vld [vmem:[%s9927_s1 + $0x780] sm:$0xff]   ;;  %v7874_v23 = vld [vmem:[%s9927_s1 + $0x748] sm:$0xff]  }
  0xb8   : > { %7133 = vmatpush3.bf16.msra.mxu0 %v7822_v24  ;;  %v7875_v24 = vld [vmem:[%s9927_s1 + $0x7c8] sm:$0xff]  }
  0xb9   : > { %7155 = vmatpush3.bf16.msra.mxu1 %v7823_v25  ;;  %7134 = vmatprep.subr.bf16.mxu0 %v7824_v26  ;;  %v7876_v25 = vld [vmem:[%s9927_s1 + $0x708] sm:$0xff]  }
  0xba   : > { %7156 = vmatprep.subr.bf16.mxu1 %v7825_v27  ;;  %v7877_v26 = vld [vmem:[%s9927_s1 + $0x788] sm:$0xff]   ;;  %v7878_v27 = vld [vmem:[%s9927_s1 + $0x750] sm:$0xff]  }
  0xbc   : > { %7135 = vmatpush3.bf16.msra.mxu0 %v7826_v28  ;;  %v7879_v28 = vld [vmem:[%s9927_s1 + $0x7d0] sm:$0xff]  }
  0xbd   : > { %7157 = vmatpush3.bf16.msra.mxu1 %v7827_v29  ;;  %7136 = vmatprep.subr.bf16.mxu0 %v7828_v30  ;;  %v7880_v29 = vld [vmem:[%s9927_s1 + $0x710] sm:$0xff]  }
  0xbe   : > { %7158 = vmatprep.subr.bf16.mxu1 %v7829_v31  ;;  %v7881_v30 = vld [vmem:[%s9927_s1 + $0x790] sm:$0xff]   ;;  %v7882_v31 = vld [vmem:[%s9927_s1 + $0x758] sm:$0xff]  }
  0xc0   : > { %7137 = vmatpush3.bf16.msra.mxu0 %v7830_v32  ;;  %v7883_v32 = vld [vmem:[%s9927_s1 + $0x7d8] sm:$0xff]  }
  0xc1   : > { %7159 = vmatpush3.bf16.msra.mxu1 %v7831_v33  ;;  %7138 = vmatprep.subr.bf16.mxu0 %v7832_v34  ;;  %v7884_v33 = vld [vmem:[%s9927_s1 + $0x718] sm:$0xff]  }
  0xc2   : > { %7160 = vmatprep.subr.bf16.mxu1 %v7833_v36  ;;  %v7885_v34 = vld [vmem:[%s9927_s1 + $0x798] sm:$0xff]   ;;  %v7887_v36 = vld [vmem:[%s9927_s1 + $0x7e0] sm:$0xff]  }
  0xc4   : > { %7139 = vmatpush3.bf16.msra.mxu0 %v7834_v39  ;;  %v7890_v39 = vld [vmem:[%s9927_s1 + $0x768] sm:$0xff]  }
  0xc5   : > { %7161 = vmatpush3.bf16.msra.mxu1 %v7835_v40  ;;  %7168 = vmatprep.subr.bf16.mxu0 %v7837_v44  ;;  %v7891_v40 = vld [vmem:[%s9927_s1 + $0x7e8] sm:$0xff]   ;;  %v7894_v44 = vld [vmem:[%s9927_s1 + $0x770] sm:$0xff]  }
  0xc6   : > { %7190 = vmatprep.subr.bf16.mxu1 %v7838_v46  ;;  %v7895_v46 = vld [vmem:[%s9927_s1 + $0x7f0] sm:$0xff]  }
  0xc7   : > { %5296 = vmatmul.mubr.bf16.vlgmr.msra.gmra.mrb[20].mxu0 %v1547_v37  ;;  %v7888_v37 = vld [vmem:[%s9927_s1 + $0x720] sm:$0xff]  }
  0xc8   : > { %5336 = vmatmul.mubr.bf16.vlgmr.msra.gmra.mrb[20].mxu1 %v1554_v43  ;;  %7169 = vmatpush3.bf16.msra.mxu0 %v7839_v47  ;;  %v7893_v43 = vld [vmem:[%s9927_s1 + $0x7a8] sm:$0xff]  }
  0xc9   : > { %7191 = vmatpush3.bf16.msra.mxu1 %v7840_v48  ;;  %7170 = vmatprep.subr.bf16.mxu0 %v7841_v49  ;;  %v7896_v49 = vld [vmem:[%s9927_s1 + $0x730] sm:$0xff]  }
  0xca   : > { %7192 = vmatprep.subr.bf16.mxu1 %v7842_v50  ;;  %5375 = vmatprep.mubr.bf16.mxu0 %v1572_v16  ;;  %v7897_v50 = vld [vmem:[%s9927_s1 + $0x7b0] sm:$0xff]  }
  0xcb   : > { %5415 = vmatprep.mubr.bf16.mxu1 %v1573_v20  ;;  %v7912_v16 = vld [vmem:[%s9927_s1 + $0x8d0] sm:$0xff]   ;;  %v7916_v20 = vld [vmem:[%s9927_s1 + $0x8d8] sm:$0xff]  }
  0xcc   : > { %7171 = vmatpush3.bf16.msra.mxu0 %v7843_v51 }
  0xcd   : > { %7193 = vmatpush3.bf16.msra.mxu1 %v7844_v52  ;;  %7172 = vmatprep.subr.bf16.mxu0 %v7845_v53 }
  0xce   : > { %7194 = vmatprep.subr.bf16.mxu1 %v7846_v54 }
  0xd0   : > { %7173 = vmatpush3.bf16.msra.mxu0 %v7847_v55 }
  0xd1   : > { %7195 = vmatpush3.bf16.msra.mxu1 %v7848_v56  ;;  %7174 = vmatprep.subr.bf16.mxu0 %v7849_v57  ;;  %v7898_v56 = vld [vmem:[%s9927_s1 + $0x778] sm:$0xff]  }
  0xd2   : > { %7196 = vmatprep.subr.bf16.mxu1 %v7850_v58  ;;  %v7899_v58 = vld [vmem:[%s9927_s1 + $0x7f8] sm:$0xff]  }
  0xd4   : > { %7175 = vmatpush3.bf16.msra.mxu0 %v7851_v59 }
  0xd5   : > { %7197 = vmatpush3.bf16.msra.mxu1 %v7852_v60  ;;  %7176 = vmatprep.subr.bf16.mxu0 %v7853_v61  ;;  %v7900_v60 = vld [vmem:[%s9927_s1 + $0x738] sm:$0xff]  }
  0xd6   : > { %7198 = vmatprep.subr.bf16.mxu1 %v7854_v62  ;;  %v399_v61 = vld [vmem:[%s8347_s24 + $0x38] sm:$0xff] }
  0xd8   : > { %7177 = vmatpush3.bf16.msra.mxu0 %v7855_v63  ;;  %v7901_v63 = vld [vmem:[%s9927_s1 + $0x7b8] sm:$0xff]  }
  0xd9   : > { %7199 = vmatpush3.bf16.msra.mxu1 %v7856_v0  ;;  %7178 = vmatprep.subr.bf16.mxu0 %v7857_v1  ;;  %v1581_v0 = vrot.slane %v399_v61, %v8362_v41  ;;  %v1574_v1 = vcombine.high %v399_v61, %v399_v61  ;;  %v7939_v61 = vld [vmem:[%s9927_s1 + $0x980] sm:$0xff]  }
  0xda   : > { %7200 = vmatprep.subr.bf16.mxu1 %v7858_v2 }
  0xdc   : > { %7179 = vmatpush3.bf16.msra.mxu0 %v7859_v3 }
  0xdd   : > { %7201 = vmatpush3.bf16.msra.mxu1 %v7860_v4  ;;  %7180 = vmatprep.subr.bf16.mxu0 %v7861_v5  ;;  %v7903_v4 = vld [vmem:[%s9927_s1 + $0x840] sm:$0xff]   ;;  %v1589_v5 = vcombine.high %v1581_v0, %v1581_v0 }
  0xde   : > { %7202 = vmatprep.subr.bf16.mxu1 %v7862_v6  ;;  %v1588_v6 = vrot.slane %v1574_v1, %v8362_v41  ;;  %v7943_v1 = vld [vmem:[%s9927_s1 + $0x988] sm:$0xff]  }
  0xe0   : > { %7181 = vmatpush3.bf16.msra.mxu0 %v7863_v7  ;;  %v7904_v7 = vld [vmem:[%s9927_s1 + $0x8c0] sm:$0xff]  }
  0xe1   : > { %7203 = vmatpush3.bf16.msra.mxu1 %v7864_v8  ;;  %7182 = vmatprep.subr.bf16.mxu0 %v7865_v9  ;;  %v7905_v8 = vld [vmem:[%s9927_s1 + $0x800] sm:$0xff]   ;;  %v1590_v9 = vcombine.high %v1588_v6, %v1588_v6 }
  0xe2   : > { %7204 = vmatprep.subr.bf16.mxu1 %v7866_v10  ;;  %v7906_v10 = vld [vmem:[%s9927_s1 + $0x880] sm:$0xff]  }
  0xe4   : > { %7183 = vmatpush3.bf16.msra.mxu0 %v7867_v12  ;;  %v7908_v12 = vld [vmem:[%s9927_s1 + $0x8c8] sm:$0xff]  }
  0xe5   : > { %7205 = vmatpush3.bf16.msra.mxu1 %v7868_v15  ;;  %7212 = vmatprep.subr.bf16.mxu0 %v7870_v18  ;;  %v7911_v15 = vld [vmem:[%s9927_s1 + $0x850] sm:$0xff]  }
  0xe6   : > { %7234 = vmatprep.subr.bf16.mxu1 %v7871_v19  ;;  %v7914_v18 = vld [vmem:[%s9927_s1 + $0x890] sm:$0xff]   ;;  %v7915_v19 = vld [vmem:[%s9927_s1 + $0x858] sm:$0xff]  }
  0xe7   : > { %5376 = vmatmul.mubr.bf16.vlgmr.msra.gmra.mrb[24].mxu0 %v1564_v13  ;;  %v7909_v13 = vld [vmem:[%s9927_s1 + $0x808] sm:$0xff]  }
  0xe8   : > { %5416 = vmatmul.mubr.bf16.vlgmr.msra.gmra.mrb[24].mxu1 %v1571_v17  ;;  %7213 = vmatpush3.bf16.msra.mxu0 %v7872_v21  ;;  %v7913_v17 = vld [vmem:[%s9927_s1 + $0x810] sm:$0xff]   ;;  %v7917_v21 = vld [vmem:[%s9927_s1 + $0x818] sm:$0xff]  }
  0xe9   : > { %7235 = vmatpush3.bf16.msra.mxu1 %v7873_v22  ;;  %7214 = vmatprep.subr.bf16.mxu0 %v7874_v23  ;;  %v7918_v22 = vld [vmem:[%s9927_s1 + $0x898] sm:$0xff]   ;;  %v7919_v23 = vld [vmem:[%s9927_s1 + $0x860] sm:$0xff]  }
  0xea   : > { %7236 = vmatprep.subr.bf16.mxu1 %v7875_v24  ;;  %5455 = vmatprep.mubr.bf16.mxu0 %v1589_v5  ;;  %v7920_v24 = vld [vmem:[%s9927_s1 + $0x8e0] sm:$0xff]   ;;  %v7947_v5 = vld [vmem:[%s9927_s1 + $0x990] sm:$0xff]  }
  0xeb   : > { %5495 = vmatprep.mubr.bf16.mxu1 %v1590_v9  ;;  %v7951_v9 = vld [vmem:[%s9927_s1 + $0x998] sm:$0xff]  }
  0xec   : > { %7215 = vmatpush3.bf16.msra.mxu0 %v7876_v25  ;;  %v7921_v25 = vld [vmem:[%s9927_s1 + $0x820] sm:$0xff]  }
  0xed   : > { %7237 = vmatpush3.bf16.msra.mxu1 %v7877_v26  ;;  %7216 = vmatprep.subr.bf16.mxu0 %v7878_v27  ;;  %v7922_v26 = vld [vmem:[%s9927_s1 + $0x8a0] sm:$0xff]   ;;  %v7923_v27 = vld [vmem:[%s9927_s1 + $0x868] sm:$0xff]  }
  0xee   : > { %7238 = vmatprep.subr.bf16.mxu1 %v7879_v28  ;;  %v7924_v28 = vld [vmem:[%s9927_s1 + $0x8e8] sm:$0xff]  }
  0xf0   : > { %7217 = vmatpush3.bf16.msra.mxu0 %v7880_v29  ;;  %v7925_v29 = vld [vmem:[%s9927_s1 + $0x828] sm:$0xff]  }
  0xf1   : > { %7239 = vmatpush3.bf16.msra.mxu1 %v7881_v30  ;;  %7218 = vmatprep.subr.bf16.mxu0 %v7882_v31  ;;  %v7926_v30 = vld [vmem:[%s9927_s1 + $0x8a8] sm:$0xff]   ;;  %v7927_v31 = vld [vmem:[%s9927_s1 + $0x870] sm:$0xff]  }
  0xf2   : > { %7240 = vmatprep.subr.bf16.mxu1 %v7883_v32  ;;  %v7928_v32 = vld [vmem:[%s9927_s1 + $0x8f0] sm:$0xff]  }
  0xf4   : > { %7219 = vmatpush3.bf16.msra.mxu0 %v7884_v33 }
  0xf5   : > { %7241 = vmatpush3.bf16.msra.mxu1 %v7885_v34  ;;  %7220 = vmatprep.subr.bf16.mxu0 %v7886_v35  ;;  %v7929_v35 = vld [vmem:[%s9927_s1 + $0x830] sm:$0xff]  }
  0xf6   : > { %7242 = vmatprep.subr.bf16.mxu1 %v7887_v36  ;;  %v7930_v36 = vld [vmem:[%s9927_s1 + $0x8b0] sm:$0xff]  }
  0xf8   : > { %7221 = vmatpush3.bf16.msra.mxu0 %v7888_v37 }
  0xf9   : > { %7243 = vmatpush3.bf16.msra.mxu1 %v7889_v38  ;;  %7222 = vmatprep.subr.bf16.mxu0 %v7890_v39 }
  0xfa   : > { %7244 = vmatprep.subr.bf16.mxu1 %v7891_v40  ;;  %v6920_v47 = vpop.f32.mrb[0].mxu0 }
  0xfb   : > { %v6942_v48 = vpop.f32.mrb[0].mxu1  ;;  %v6921_v51 = vpop.f32.mrb[1].mxu0 }
  0xfc   : > { %v6943_v52 = vpop.f32.mrb[1].mxu1  ;;  %v6922_v53 = vadd.f32 %v6921_v51, %v6920_v47  ;;  %7223 = vmatpush3.bf16.msra.mxu0 %v7892_v42  ;;  %v6923_v62 = vpop.f32.mrb[2].mxu0  ;;  %v7933_v47 = vld [vmem:[%s9927_s1 + $0x838] sm:$0xff]  }
  0xfd   : > { %v6944_v54 = vadd.f32 %v6943_v52, %v6942_v48  ;;  %v6945_v55 = vpop.f32.mrb[2].mxu1  ;;  %7245 = vmatpush3.bf16.msra.mxu1 %v7893_v43  ;;  %7224 = vmatprep.subr.bf16.mxu0 %v7894_v44  ;;  %v6924_v2 = vpop.f32.mrb[3].mxu0  ;;  %v7931_v43 = vld [vmem:[%s9927_s1 + $0x878] sm:$0xff]   ;;  %v400_v48 = vld [vmem:[%s8347_s24 + $0x40] sm:$0xff]  ;;  %v7940_v62 = vld [vmem:[%s9927_s1 + $0x948] sm:$0xff]  }
  0xfe   : > { %v6946_v57 = vpop.f32.mrb[3].mxu1  ;;  %7246 = vmatprep.subr.bf16.mxu1 %v7895_v46  ;;  %v4898_v59 = vadd.f32 %v6922_v53, %v6381_v45  ;;  %v7932_v45 = vld [vmem:[%s9927_s1 + $0x8f8] sm:$0xff]   ;;  %v1598_v51 = vrot.slane %v400_v48, %v8362_v41  ;;  %v1591_v52 = vcombine.high %v400_v48, %v400_v48  ;;  %v7936_v55 = vld [vmem:[%s9927_s1 + $0x940] sm:$0xff]   ;;  %v7944_v2 = vld [vmem:[%s9927_s1 + $0x950] sm:$0xff]  }
 0x100   : > { %v9055_v3 = vadd.f32 %v6944_v54, %v4898_v59  ;;  %7225 = vmatpush3.bf16.msra.mxu0 %v7896_v49  ;;  %v1605_v57 = vrot.slane %v1591_v52, %v8362_v41  ;;  %v7938_v59 = vld [vmem:[%s9927_s1 + $0x900] sm:$0xff]   ;;  %v7976_v52 = vld [vmem:[%s9927_s1 + $0xa88] sm:$0xff]  }
 0x101   : > { %7247 = vmatpush3.bf16.msra.mxu1 %v7897_v50  ;;  %7226 = vmatprep.subr.bf16.mxu0 %v7898_v56  ;;  %v7934_v50 = vld [vmem:[%s9927_s1 + $0x8b8] sm:$0xff]   ;;  %v1606_v56 = vcombine.high %v1598_v51, %v1598_v51 }
 0x102   : > { %7248 = vmatprep.subr.bf16.mxu1 %v7899_v58  ;;  %v7937_v58 = vld [vmem:[%s9927_s1 + $0x9c0] sm:$0xff]  }
 0x104   : > { %7227 = vmatpush3.bf16.msra.mxu0 %v7900_v60  ;;  %v1607_v60 = vcombine.high %v1605_v57, %v1605_v57 }
 0x105   : > { %7249 = vmatpush3.bf16.msra.mxu1 %v7901_v63  ;;  %7256 = vmatprep.subr.bf16.mxu0 %v7903_v4  ;;  %v7941_v63 = vld [vmem:[%s9927_s1 + $0x9c8] sm:$0xff]   ;;  %v7946_v4 = vld [vmem:[%s9927_s1 + $0x910] sm:$0xff]  }
 0x106   : > { %7278 = vmatprep.subr.bf16.mxu1 %v7904_v7  ;;  %v7949_v7 = vld [vmem:[%s9927_s1 + $0x9d8] sm:$0xff]  }
 0x107   : > { %5456 = vmatmul.mubr.bf16.vlgmr.msra.gmra.mrb[28].mxu0 %v1581_v0  ;;  %v7942_v0 = vld [vmem:[%s9927_s1 + $0x908] sm:$0xff]  }
 0x108   : > { %5496 = vmatmul.mubr.bf16.vlgmr.msra.gmra.mrb[28].mxu1 %v1588_v6  ;;  %7257 = vmatpush3.bf16.msra.mxu0 %v7905_v8  ;;  %v7948_v6 = vld [vmem:[%s9927_s1 + $0x958] sm:$0xff]  }
 0x109   : > { %7279 = vmatpush3.bf16.msra.mxu1 %v7906_v10  ;;  %7258 = vmatprep.subr.bf16.mxu0 %v7907_v11  ;;  %v7950_v8 = vld [vmem:[%s9927_s1 + $0x918] sm:$0xff]   ;;  %v7952_v10 = vld [vmem:[%s9927_s1 + $0x960] sm:$0xff]  }
 0x10a   : > { %7280 = vmatprep.subr.bf16.mxu1 %v7908_v12  ;;  %5535 = vmatprep.mubr.bf16.mxu0 %v1606_v56  ;;  %v7953_v11 = vld [vmem:[%s9927_s1 + $0x9e0] sm:$0xff]   ;;  %v7980_v56 = vld [vmem:[%s9927_s1 + $0xa90] sm:$0xff]  }
 0x10b   : > { %5575 = vmatprep.mubr.bf16.mxu1 %v1607_v60  ;;  %v7954_v12 = vld [vmem:[%s9927_s1 + $0x920] sm:$0xff]   ;;  %v7984_v60 = vld [vmem:[%s9927_s1 + $0xa98] sm:$0xff]  }
 0x10c   : > { %7259 = vmatpush3.bf16.msra.mxu0 %v7909_v13  ;;  %v7955_v13 = vld [vmem:[%s9927_s1 + $0x9a0] sm:$0xff]  }
 0x10d   : > { %7281 = vmatpush3.bf16.msra.mxu1 %v7910_v14  ;;  %7260 = vmatprep.subr.bf16.mxu0 %v7911_v15  ;;  %v7956_v14 = vld [vmem:[%s9927_s1 + $0x968] sm:$0xff]  }
 0x10e   : > { %7282 = vmatprep.subr.bf16.mxu1 %v7912_v16  ;;  %v7957_v15 = vld [vmem:[%s9927_s1 + $0x9e8] sm:$0xff]  }
 0x10f   : > { %v7958_v16 = vld [vmem:[%s9927_s1 + $0x928] sm:$0xff]  }
 0x110   : > { %7261 = vmatpush3.bf16.msra.mxu0 %v7913_v17  ;;  %v7959_v17 = vld [vmem:[%s9927_s1 + $0x9a8] sm:$0xff]  }
 0x111   : > { %7283 = vmatpush3.bf16.msra.mxu1 %v7914_v18  ;;  %7262 = vmatprep.subr.bf16.mxu0 %v7915_v19  ;;  %v7960_v18 = vld [vmem:[%s9927_s1 + $0x970] sm:$0xff]  }
 0x112   : > { %7284 = vmatprep.subr.bf16.mxu1 %v7916_v20  ;;  %v7961_v19 = vld [vmem:[%s9927_s1 + $0x9f0] sm:$0xff]  }
 0x114   : > { %7263 = vmatpush3.bf16.msra.mxu0 %v7917_v21 }
 0x115   : > { %7285 = vmatpush3.bf16.msra.mxu1 %v7918_v22  ;;  %7264 = vmatprep.subr.bf16.mxu0 %v7919_v23 }
 0x116   : > { %7286 = vmatprep.subr.bf16.mxu1 %v7920_v24  ;;  %v7962_v24 = vld [vmem:[%s9927_s1 + $0x930] sm:$0xff]  }
 0x118   : > { %7265 = vmatpush3.bf16.msra.mxu0 %v7921_v25  ;;  %v7963_v25 = vld [vmem:[%s9927_s1 + $0x9b0] sm:$0xff]  }
 0x119   : > { %7287 = vmatpush3.bf16.msra.mxu1 %v7922_v26  ;;  %7266 = vmatprep.subr.bf16.mxu0 %v7923_v27 }
 0x11a   : > { %7288 = vmatprep.subr.bf16.mxu1 %v7924_v28  ;;  %v6964_v33 = vpop.f32.mrb[4].mxu0 }
 0x11b   : > { %v6986_v34 = vpop.f32.mrb[4].mxu1  ;;  %v6965_v37 = vpop.f32.mrb[5].mxu0 }
 0x11c   : > { %v6987_v38 = vpop.f32.mrb[5].mxu1  ;;  %v6966_v39 = vadd.f32 %v6965_v37, %v6964_v33  ;;  %7267 = vmatpush3.bf16.msra.mxu0 %v7925_v29  ;;  %v6967_v49 = vpop.f32.mrb[6].mxu0  ;;  %v7964_v29 = vld [vmem:[%s9927_s1 + $0x978] sm:$0xff]  }
 0x11d   : > { %v6988_v40 = vadd.f32 %v6987_v38, %v6986_v34  ;;  %v6989_v42 = vpop.f32.mrb[6].mxu1  ;;  %7289 = vmatpush3.bf16.msra.mxu1 %v7926_v30  ;;  %7268 = vmatprep.subr.bf16.mxu0 %v7927_v31  ;;  %v6968_v53 = vpop.f32.mrb[7].mxu0  ;;  %v7965_v31 = vld [vmem:[%s9927_s1 + $0x9f8] sm:$0xff]   ;;  %v7973_v49 = vld [vmem:[%s9927_s1 + $0xa48] sm:$0xff]  }
 0x11e   : > { %v6990_v44 = vpop.f32.mrb[7].mxu1  ;;  %7290 = vmatprep.subr.bf16.mxu1 %v7928_v32  ;;  %v4978_v46 = vadd.f32 %v6966_v39, %v9055_v3  ;;  %v7945_v3 = vld [vmem:[%s9927_s1 + $0x9d0] sm:$0xff]   ;;  %v7966_v33 = vld [vmem:[%s9927_s1 + $0x938] sm:$0xff]  }
 0x11f   : > { %v7967_v34 = vld [vmem:[%s9927_s1 + $0x9b8] sm:$0xff]   ;;  %v7977_v53 = vld [vmem:[%s9927_s1 + $0xa50] sm:$0xff]  }
 0x120   : > { %v9157_v54 = vadd.f32 %v6988_v40, %v4978_v46  ;;  %7269 = vmatpush3.bf16.msra.mxu0 %v7929_v35  ;;  %v401_v35 = vld [vmem:[%s8347_s24 + $0x48] sm:$0xff]  ;;  %v7969_v40 = vld [vmem:[%s9927_s1 + $0xa40] sm:$0xff]  }
 0x121   : > { %7291 = vmatpush3.bf16.msra.mxu1 %v7930_v36  ;;  %7270 = vmatprep.subr.bf16.mxu0 %v7931_v43  ;;  %v1615_v38 = vrot.slane %v401_v35, %v8362_v41  ;;  %v1608_v39 = vcombine.high %v401_v35, %v401_v35  ;;  %v7970_v43 = vld [vmem:[%s9927_s1 + $0xac0] sm:$0xff]   ;;  %v8006_v35 = vld [vmem:[%s9927_s1 + $0xb48] sm:$0xff]  }
 0x122   : > { %7292 = vmatprep.subr.bf16.mxu1 %v7932_v45  ;;  %v7971_v46 = vld [vmem:[%s9927_s1 + $0xa00] sm:$0xff]  }
 0x123   : > { %v1623_v44 = vcombine.high %v1615_v38, %v1615_v38  ;;  %v1622_v45 = vrot.slane %v1608_v39, %v8362_v41  ;;  %v8010_v39 = vld [vmem:[%s9927_s1 + $0xb50] sm:$0xff]  }
 0x124   : > { %7271 = vmatpush3.bf16.msra.mxu0 %v7933_v47  ;;  %v7972_v47 = vld [vmem:[%s9927_s1 + $0xa80] sm:$0xff]  }
 0x125   : > { %7293 = vmatpush3.bf16.msra.mxu1 %v7934_v50  ;;  %7300 = vmatprep.subr.bf16.mxu0 %v7936_v55  ;;  %v1624_v48 = vcombine.high %v1622_v45, %v1622_v45  ;;  %v7974_v50 = vld [vmem:[%s9927_s1 + $0xac8] sm:$0xff]   ;;  %v7979_v55 = vld [vmem:[%s9927_s1 + $0xa10] sm:$0xff]  }
 0x126   : > { %7322 = vmatprep.subr.bf16.mxu1 %v7937_v58  ;;  %v7982_v58 = vld [vmem:[%s9927_s1 + $0xad8] sm:$0xff]  }
 0x127   : > { %5536 = vmatmul.mubr.bf16.vlgmr.msra.gmra.mrb[32].mxu0 %v1598_v51  ;;  %v7975_v51 = vld [vmem:[%s9927_s1 + $0xa08] sm:$0xff]  }
 0x128   : > { %5576 = vmatmul.mubr.bf16.vlgmr.msra.gmra.mrb[32].mxu1 %v1605_v57  ;;  %7301 = vmatpush3.bf16.msra.mxu0 %v7938_v59  ;;  %v7981_v57 = vld [vmem:[%s9927_s1 + $0xa58] sm:$0xff]  }
 0x129   : > { %7323 = vmatpush3.bf16.msra.mxu1 %v7939_v61  ;;  %7302 = vmatprep.subr.bf16.mxu0 %v7940_v62  ;;  %v7983_v59 = vld [vmem:[%s9927_s1 + $0xa18] sm:$0xff]   ;;  %v7985_v61 = vld [vmem:[%s9927_s1 + $0xa60] sm:$0xff]  }
 0x12a   : > { %7324 = vmatprep.subr.bf16.mxu1 %v7941_v63  ;;  %5615 = vmatprep.mubr.bf16.mxu0 %v1623_v44  ;;  %v7986_v62 = vld [vmem:[%s9927_s1 + $0xae0] sm:$0xff]   ;;  %v8014_v44 = vld [vmem:[%s9927_s1 + $0xb58] sm:$0xff]  }
 0x12b   : > { %5655 = vmatprep.mubr.bf16.mxu1 %v1624_v48  ;;  %v7987_v63 = vld [vmem:[%s9927_s1 + $0xa20] sm:$0xff]  }
 0x12c   : > { %7303 = vmatpush3.bf16.msra.mxu0 %v7942_v0  ;;  %v7988_v0 = vld [vmem:[%s9927_s1 + $0xaa0] sm:$0xff]  }
 0x12d   : > { %7325 = vmatpush3.bf16.msra.mxu1 %v7943_v1  ;;  %7304 = vmatprep.subr.bf16.mxu0 %v7944_v2  ;;  %v7989_v1 = vld [vmem:[%s9927_s1 + $0xa68] sm:$0xff]   ;;  %v8018_v48 = vld [vmem:[%s9927_s1 + $0xb60] sm:$0xff]  }
 0x12e   : > { %7326 = vmatprep.subr.bf16.mxu1 %v7945_v3  ;;  %v7990_v2 = vld [vmem:[%s9927_s1 + $0xae8] sm:$0xff]  }
 0x12f   : > { %v7991_v3 = vld [vmem:[%s9927_s1 + $0xa28] sm:$0xff]  }
 0x130   : > { %7305 = vmatpush3.bf16.msra.mxu0 %v7946_v4  ;;  %v7992_v4 = vld [vmem:[%s9927_s1 + $0xaa8] sm:$0xff]  }
 0x131   : > { %7327 = vmatpush3.bf16.msra.mxu1 %v7947_v5  ;;  %7306 = vmatprep.subr.bf16.mxu0 %v7948_v6  ;;  %v7993_v5 = vld [vmem:[%s9927_s1 + $0xa70] sm:$0xff]  }
 0x132   : > { %7328 = vmatprep.subr.bf16.mxu1 %v7949_v7  ;;  %v7994_v6 = vld [vmem:[%s9927_s1 + $0xaf0] sm:$0xff]  }
 0x134   : > { %7307 = vmatpush3.bf16.msra.mxu0 %v7950_v8 }
 0x135   : > { %7329 = vmatpush3.bf16.msra.mxu1 %v7951_v9  ;;  %7308 = vmatprep.subr.bf16.mxu0 %v7952_v10  ;;  %v7995_v9 = vld [vmem:[%s9927_s1 + $0xa30] sm:$0xff]  }
 0x136   : > { %7330 = vmatprep.subr.bf16.mxu1 %v7953_v11  ;;  %v7996_v10 = vld [vmem:[%s9927_s1 + $0xab0] sm:$0xff]  }
 0x138   : > { %7309 = vmatpush3.bf16.msra.mxu0 %v7954_v12 }
 0x139   : > { %7331 = vmatpush3.bf16.msra.mxu1 %v7955_v13  ;;  %7310 = vmatprep.subr.bf16.mxu0 %v7956_v14 }
 0x13a   : > { %7332 = vmatprep.subr.bf16.mxu1 %v7957_v15  ;;  %v7008_v20 = vpop.f32.mrb[8].mxu0 }
 0x13b   : > { %v7030_v21 = vpop.f32.mrb[8].mxu1  ;;  %v7009_v22 = vpop.f32.mrb[9].mxu0 }
 0x13c   : > { %v7031_v23 = vpop.f32.mrb[9].mxu1  ;;  %v7010_v26 = vadd.f32 %v7009_v22, %v7008_v20  ;;  %7311 = vmatpush3.bf16.msra.mxu0 %v7958_v16  ;;  %v7011_v36 = vpop.f32.mrb[10].mxu0  ;;  %v7997_v16 = vld [vmem:[%s9927_s1 + $0xa78] sm:$0xff]  }
 0x13d   : > { %v7032_v27 = vadd.f32 %v7031_v23, %v7030_v21  ;;  %v7033_v28 = vpop.f32.mrb[10].mxu1  ;;  %7333 = vmatpush3.bf16.msra.mxu1 %v7959_v17  ;;  %7312 = vmatprep.subr.bf16.mxu0 %v7960_v18  ;;  %v7012_v42 = vpop.f32.mrb[11].mxu0  ;;  %v7998_v18 = vld [vmem:[%s9927_s1 + $0xaf8] sm:$0xff]   ;;  %v8007_v36 = vld [vmem:[%s9927_s1 + $0xbc8] sm:$0xff]  }
 0x13e   : > { %v7034_v30 = vpop.f32.mrb[11].mxu1  ;;  %7334 = vmatprep.subr.bf16.mxu1 %v7961_v19  ;;  %v5058_v32 = vadd.f32 %v7010_v26, %v9157_v54  ;;  %v7978_v54 = vld [vmem:[%s9927_s1 + $0xad0] sm:$0xff]   ;;  %v7999_v20 = vld [vmem:[%s9927_s1 + $0xa38] sm:$0xff]   ;;  %v8002_v28 = vld [vmem:[%s9927_s1 + $0xb40] sm:$0xff]  }
 0x13f   : > { %v8000_v22 = vld [vmem:[%s9927_s1 + $0xab8] sm:$0xff]   ;;  %v8012_v42 = vld [vmem:[%s9927_s1 + $0xb10] sm:$0xff]  }
 0x140   : > { %v9258_v37 = vadd.f32 %v7032_v27, %v5058_v32  ;;  %7313 = vmatpush3.bf16.msra.mxu0 %v7962_v24  ;;  %v8004_v32 = vld [vmem:[%s9927_s1 + $0xb00] sm:$0xff]  }
 0x141   : > { %7335 = vmatpush3.bf16.msra.mxu1 %v7963_v25  ;;  %7314 = vmatprep.subr.bf16.mxu0 %v7964_v29  ;;  %v402_v25 = vld [vmem:[%s8347_s24 + $0x50] sm:$0xff]  ;;  %v8003_v29 = vld [vmem:[%s9927_s1 + $0xbc0] sm:$0xff]  }
 0x142   : > { %7336 = vmatprep.subr.bf16.mxu1 %v7965_v31  ;;  %v1632_v26 = vrot.slane %v402_v25, %v8362_v41  ;;  %v1625_v27 = vcombine.high %v402_v25, %v402_v25  ;;  %v8042_v25 = vld [vmem:[%s9927_s1 + $0xc88] sm:$0xff]  }
 0x144   : > { %7315 = vmatpush3.bf16.msra.mxu0 %v7966_v33  ;;  %v1640_v30 = vcombine.high %v1632_v26, %v1632_v26  ;;  %v1639_v31 = vrot.slane %v1625_v27, %v8362_v41  ;;  %v8005_v33 = vld [vmem:[%s9927_s1 + $0xb80] sm:$0xff]   ;;  %v8044_v27 = vld [vmem:[%s9927_s1 + $0xcd0] sm:$0xff]  }
 0x145   : > { %7337 = vmatpush3.bf16.msra.mxu1 %v7967_v34  ;;  %7344 = vmatprep.subr.bf16.mxu0 %v7969_v40  ;;  %v8011_v40 = vld [vmem:[%s9927_s1 + $0xbd0] sm:$0xff]  }
 0x146   : > { %7366 = vmatprep.subr.bf16.mxu1 %v7970_v43  ;;  %v1641_v34 = vcombine.high %v1639_v31, %v1639_v31  ;;  %v8013_v43 = vld [vmem:[%s9927_s1 + $0xb90] sm:$0xff]  }
 0x147   : > { %5616 = vmatmul.mubr.bf16.vlgmr.msra.gmra.mrb[36].mxu0 %v1615_v38  ;;  %v8009_v38 = vld [vmem:[%s9927_s1 + $0xb88] sm:$0xff]  }
 0x148   : > { %5656 = vmatmul.mubr.bf16.vlgmr.msra.gmra.mrb[36].mxu1 %v1622_v45  ;;  %7345 = vmatpush3.bf16.msra.mxu0 %v7971_v46  ;;  %v8015_v45 = vld [vmem:[%s9927_s1 + $0xbd8] sm:$0xff]  }
 0x149   : > { %7367 = vmatpush3.bf16.msra.mxu1 %v7972_v47  ;;  %7346 = vmatprep.subr.bf16.mxu0 %v7973_v49  ;;  %v8016_v46 = vld [vmem:[%s9927_s1 + $0xb18] sm:$0xff]   ;;  %v8019_v49 = vld [vmem:[%s9927_s1 + $0xbe0] sm:$0xff]  }
 0x14a   : > { %7368 = vmatprep.subr.bf16.mxu1 %v7974_v50  ;;  %5695 = vmatprep.mubr.bf16.mxu0 %v1640_v30  ;;  %v8017_v47 = vld [vmem:[%s9927_s1 + $0xb98] sm:$0xff]   ;;  %v8020_v50 = vld [vmem:[%s9927_s1 + $0xb20] sm:$0xff]  }
 0x14b   : > { %5735 = vmatprep.mubr.bf16.mxu1 %v1641_v34  ;;  %v8047_v30 = vld [vmem:[%s9927_s1 + $0xc58] sm:$0xff]   ;;  %v8051_v34 = vld [vmem:[%s9927_s1 + $0xc60] sm:$0xff]  }
 0x14c   : > { %7347 = vmatpush3.bf16.msra.mxu0 %v7975_v51  ;;  %v8021_v51 = vld [vmem:[%s9927_s1 + $0xba0] sm:$0xff]  }
 0x14d   : > { %7369 = vmatpush3.bf16.msra.mxu1 %v7976_v52  ;;  %7348 = vmatprep.subr.bf16.mxu0 %v7977_v53  ;;  %v8022_v52 = vld [vmem:[%s9927_s1 + $0xb68] sm:$0xff]  }
 0x14e   : > { %7370 = vmatprep.subr.bf16.mxu1 %v7978_v54  ;;  %v8023_v53 = vld [vmem:[%s9927_s1 + $0xbe8] sm:$0xff]  }
 0x14f   : > { %v8024_v54 = vld [vmem:[%s9927_s1 + $0xb28] sm:$0xff]  }
 0x150   : > { %7349 = vmatpush3.bf16.msra.mxu0 %v7979_v55  ;;  %v8025_v55 = vld [vmem:[%s9927_s1 + $0xba8] sm:$0xff]  }
 0x151   : > { %7371 = vmatpush3.bf16.msra.mxu1 %v7980_v56  ;;  %7350 = vmatprep.subr.bf16.mxu0 %v7981_v57  ;;  %v8026_v56 = vld [vmem:[%s9927_s1 + $0xb70] sm:$0xff]  }
 0x152   : > { %7372 = vmatprep.subr.bf16.mxu1 %v7982_v58 }
 0x154   : > { %7351 = vmatpush3.bf16.msra.mxu0 %v7983_v59  ;;  %v8027_v59 = vld [vmem:[%s9927_s1 + $0xbf0] sm:$0xff]  }
 0x155   : > { %7373 = vmatpush3.bf16.msra.mxu1 %v7984_v60  ;;  %7352 = vmatprep.subr.bf16.mxu0 %v7985_v61  ;;  %v8028_v60 = vld [vmem:[%s9927_s1 + $0xb30] sm:$0xff]  }
 0x156   : > { %7374 = vmatprep.subr.bf16.mxu1 %v7986_v62 }
 0x158   : > { %7353 = vmatpush3.bf16.msra.mxu0 %v7987_v63 }
 0x159   : > { %7375 = vmatpush3.bf16.msra.mxu1 %v7988_v0  ;;  %7354 = vmatprep.subr.bf16.mxu0 %v7989_v1 }
 0x15a   : > { %7376 = vmatprep.subr.bf16.mxu1 %v7990_v2  ;;  %v7052_v7 = vpop.f32.mrb[12].mxu0  ;;  %v8029_v2 = vld [vmem:[%s9927_s1 + $0xbb0] sm:$0xff]  }
 0x15b   : > { %v7074_v8 = vpop.f32.mrb[12].mxu1  ;;  %v7053_v11 = vpop.f32.mrb[13].mxu0 }
 0x15c   : > { %v7075_v12 = vpop.f32.mrb[13].mxu1  ;;  %v7054_v13 = vadd.f32 %v7053_v11, %v7052_v7  ;;  %7355 = vmatpush3.bf16.msra.mxu0 %v7991_v3  ;;  %v7055_v21 = vpop.f32.mrb[14].mxu0  ;;  %v8033_v11 = vld [vmem:[%s9927_s1 + $0xbb8] sm:$0xff]  }
 0x15d   : > { %v7076_v14 = vadd.f32 %v7075_v12, %v7074_v8  ;;  %v7077_v15 = vpop.f32.mrb[14].mxu1  ;;  %7377 = vmatpush3.bf16.msra.mxu1 %v7992_v4  ;;  %7356 = vmatprep.subr.bf16.mxu0 %v7993_v5  ;;  %v7056_v23 = vpop.f32.mrb[15].mxu0  ;;  %v8030_v4 = vld [vmem:[%s9927_s1 + $0xb78] sm:$0xff]  }
 0x15e   : > { %v7078_v17 = vpop.f32.mrb[15].mxu1  ;;  %7378 = vmatprep.subr.bf16.mxu1 %v7994_v6  ;;  %v5138_v19 = vadd.f32 %v7054_v13, %v9258_v37  ;;  %v8008_v37 = vld [vmem:[%s9927_s1 + $0xb08] sm:$0xff]   ;;  %v8031_v6 = vld [vmem:[%s9927_s1 + $0xbf8] sm:$0xff]   ;;  %v8035_v15 = vld [vmem:[%s9927_s1 + $0xc40] sm:$0xff]  }
 0x15f   : > { %v8032_v8 = vld [vmem:[%s9927_s1 + $0xb38] sm:$0xff]   ;;  %v8040_v23 = vld [vmem:[%s9927_s1 + $0xcc8] sm:$0xff]  }
 0x160   : > { %v9359_v24 = vadd.f32 %v7076_v14, %v5138_v19  ;;  %7357 = vmatpush3.bf16.msra.mxu0 %v7995_v9  ;;  %v403_v12 = vld [vmem:[%s8347_s24 + $0x58] sm:$0xff]  ;;  %v8037_v19 = vld [vmem:[%s9927_s1 + $0xc00] sm:$0xff]  }
 0x161   : > { %7379 = vmatpush3.bf16.msra.mxu1 %v7996_v10  ;;  %7358 = vmatprep.subr.bf16.mxu0 %v7997_v16  ;;  %v1649_v13 = vrot.slane %v403_v12, %v8362_v41  ;;  %v1642_v14 = vcombine.high %v403_v12, %v403_v12  ;;  %v8036_v16 = vld [vmem:[%s9927_s1 + $0xcc0] sm:$0xff]   ;;  %v8075_v12 = vld [vmem:[%s9927_s1 + $0xd88] sm:$0xff]  }
 0x162   : > { %7380 = vmatprep.subr.bf16.mxu1 %v7998_v18 }
 0x163   : > { %v1657_v17 = vcombine.high %v1649_v13, %v1649_v13  ;;  %v1656_v18 = vrot.slane %v1642_v14, %v8362_v41  ;;  %v8077_v14 = vld [vmem:[%s9927_s1 + $0xdd0] sm:$0xff]  }
 0x164   : > { %7359 = vmatpush3.bf16.msra.mxu0 %v7999_v20  ;;  %v8038_v20 = vld [vmem:[%s9927_s1 + $0xc80] sm:$0xff]  }
 0x165   : > { %7381 = vmatpush3.bf16.msra.mxu1 %v8000_v22  ;;  %7388 = vmatprep.subr.bf16.mxu0 %v8002_v28  ;;  %v1658_v21 = vcombine.high %v1656_v18, %v1656_v18  ;;  %v8039_v22 = vld [vmem:[%s9927_s1 + $0xc48] sm:$0xff]   ;;  %v8045_v28 = vld [vmem:[%s9927_s1 + $0xc10] sm:$0xff]  }
 0x166   : > { %7410 = vmatprep.subr.bf16.mxu1 %v8003_v29  ;;  %v8046_v29 = vld [vmem:[%s9927_s1 + $0xc90] sm:$0xff]  }
 0x167   : > { %5696 = vmatmul.mubr.bf16.vlgmr.msra.gmra.mrb[40].mxu0 %v1632_v26  ;;  %v8043_v26 = vld [vmem:[%s9927_s1 + $0xc50] sm:$0xff]  }
 0x168   : > { %5736 = vmatmul.mubr.bf16.vlgmr.msra.gmra.mrb[40].mxu1 %v1639_v31  ;;  %7389 = vmatpush3.bf16.msra.mxu0 %v8004_v32  ;;  %v8048_v31 = vld [vmem:[%s9927_s1 + $0xcd8] sm:$0xff]  }
 0x169   : > { %7411 = vmatpush3.bf16.msra.mxu1 %v8005_v33  ;;  %7390 = vmatprep.subr.bf16.mxu0 %v8006_v35  ;;  %v8049_v32 = vld [vmem:[%s9927_s1 + $0xc18] sm:$0xff]   ;;  %v8052_v35 = vld [vmem:[%s9927_s1 + $0xce0] sm:$0xff]  }
 0x16a   : > { %7412 = vmatprep.subr.bf16.mxu1 %v8007_v36  ;;  %5775 = vmatprep.mubr.bf16.mxu0 %v1657_v17  ;;  %v8050_v33 = vld [vmem:[%s9927_s1 + $0xc98] sm:$0xff]   ;;  %v8053_v36 = vld [vmem:[%s9927_s1 + $0xc20] sm:$0xff]  }
 0x16b   : > { %5815 = vmatprep.mubr.bf16.mxu1 %v1658_v21  ;;  %v8080_v17 = vld [vmem:[%s9927_s1 + $0xd58] sm:$0xff]   ;;  %v8084_v21 = vld [vmem:[%s9927_s1 + $0xd60] sm:$0xff]  }
 0x16c   : > { %7391 = vmatpush3.bf16.msra.mxu0 %v8008_v37  ;;  %v8054_v37 = vld [vmem:[%s9927_s1 + $0xca0] sm:$0xff]  }
 0x16d   : > { %7413 = vmatpush3.bf16.msra.mxu1 %v8009_v38  ;;  %7392 = vmatprep.subr.bf16.mxu0 %v8010_v39  ;;  %v8055_v38 = vld [vmem:[%s9927_s1 + $0xc68] sm:$0xff]  }
 0x16e   : > { %7414 = vmatprep.subr.bf16.mxu1 %v8011_v40  ;;  %v8056_v39 = vld [vmem:[%s9927_s1 + $0xce8] sm:$0xff]  }
 0x16f   : > { %v8057_v40 = vld [vmem:[%s9927_s1 + $0xc28] sm:$0xff]  }
 0x170   : > { %7393 = vmatpush3.bf16.msra.mxu0 %v8012_v42  ;;  %v8058_v42 = vld [vmem:[%s9927_s1 + $0xca8] sm:$0xff]  }
 0x171   : > { %7415 = vmatpush3.bf16.msra.mxu1 %v8013_v43  ;;  %7394 = vmatprep.subr.bf16.mxu0 %v8014_v44  ;;  %v8059_v43 = vld [vmem:[%s9927_s1 + $0xc70] sm:$0xff]  }
 0x172   : > { %7416 = vmatprep.subr.bf16.mxu1 %v8015_v45 }
 0x174   : > { %7395 = vmatpush3.bf16.msra.mxu0 %v8016_v46 }
 0x175   : > { %7417 = vmatpush3.bf16.msra.mxu1 %v8017_v47  ;;  %7396 = vmatprep.subr.bf16.mxu0 %v8018_v48  ;;  %v8060_v48 = vld [vmem:[%s9927_s1 + $0xcf0] sm:$0xff]  }
 0x176   : > { %7418 = vmatprep.subr.bf16.mxu1 %v8019_v49  ;;  %v8061_v49 = vld [vmem:[%s9927_s1 + $0xc30] sm:$0xff]  }
 0x178   : > { %7397 = vmatpush3.bf16.msra.mxu0 %v8020_v50 }
 0x179   : > { %7419 = vmatpush3.bf16.msra.mxu1 %v8021_v51  ;;  %7398 = vmatprep.subr.bf16.mxu0 %v8022_v52 }
 0x17a   : > { %v7096_v57 = vpop.f32.mrb[16].mxu0  ;;  %7420 = vmatprep.subr.bf16.mxu1 %v8023_v53  ;;  %v8062_v53 = vld [vmem:[%s9927_s1 + $0xcb0] sm:$0xff]  }
 0x17b   : > { %v7118_v58 = vpop.f32.mrb[16].mxu1  ;;  %v7097_v61 = vpop.f32.mrb[17].mxu0 }
 0x17c   : > { %v7119_v62 = vpop.f32.mrb[17].mxu1  ;;  %v7098_v63 = vadd.f32 %v7097_v61, %v7096_v57  ;;  %7399 = vmatpush3.bf16.msra.mxu0 %v8024_v54  ;;  %v7099_v7 = vpop.f32.mrb[18].mxu0  ;;  %v8064_v57 = vld [vmem:[%s9927_s1 + $0xcf8] sm:$0xff]  }
 0x17d   : > { %v7120_v0 = vadd.f32 %v7119_v62, %v7118_v58  ;;  %v7121_v1 = vpop.f32.mrb[18].mxu1  ;;  %7421 = vmatpush3.bf16.msra.mxu1 %v8025_v55  ;;  %7400 = vmatprep.subr.bf16.mxu0 %v8026_v56  ;;  %v7100_v9 = vpop.f32.mrb[19].mxu0  ;;  %v8063_v55 = vld [vmem:[%s9927_s1 + $0xc78] sm:$0xff]   ;;  %v8071_v7 = vld [vmem:[%s9927_s1 + $0xd80] sm:$0xff]  }
 0x17e   : > { %v7122_v3 = vpop.f32.mrb[19].mxu1  ;;  %v5218_v5 = vadd.f32 %v7098_v63, %v9359_v24  ;;  %7422 = vmatprep.subr.bf16.mxu1 %v8027_v59  ;;  %v8041_v24 = vld [vmem:[%s9927_s1 + $0xc08] sm:$0xff]   ;;  %v8066_v62 = vld [vmem:[%s9927_s1 + $0xcb8] sm:$0xff]   ;;  %v404_v63 = vld [vmem:[%s8347_s24 + $0x60] sm:$0xff] }
 0x17f   : > { %v1659_v1 = vcombine.high %v404_v63, %v404_v63  ;;  %v8069_v3 = vld [vmem:[%s9927_s1 + $0xdc0] sm:$0xff]   ;;  %v8072_v9 = vld [vmem:[%s9927_s1 + $0xd48] sm:$0xff]  }
 0x180   : > { %v9458_v10 = vadd.f32 %v7120_v0, %v5218_v5  ;;  %7401 = vmatpush3.bf16.msra.mxu0 %v8028_v60  ;;  %v8065_v60 = vld [vmem:[%s9927_s1 + $0xc38] sm:$0xff]   ;;  %v1666_v0 = vrot.slane %v404_v63, %v8362_v41  ;;  %v8108_v63 = vld [vmem:[%s9927_s1 + $0xe88] sm:$0xff]  }
 0x181   : > { %7423 = vmatpush3.bf16.msra.mxu1 %v8029_v2  ;;  %7402 = vmatprep.subr.bf16.mxu0 %v8030_v4  ;;  %v8068_v2 = vld [vmem:[%s9927_s1 + $0xd40] sm:$0xff]   ;;  %v1673_v5 = vrot.slane %v1659_v1, %v8362_v41  ;;  %v8110_v1 = vld [vmem:[%s9927_s1 + $0xed0] sm:$0xff]  }
 0x182   : > { %7424 = vmatprep.subr.bf16.mxu1 %v8031_v6  ;;  %v1674_v4 = vcombine.high %v1666_v0, %v1666_v0  ;;  %v8070_v6 = vld [vmem:[%s9927_s1 + $0xd00] sm:$0xff]  }
 0x184   : > { %7403 = vmatpush3.bf16.msra.mxu0 %v8032_v8  ;;  %v1675_v8 = vcombine.high %v1673_v5, %v1673_v5 }
 0x185   : > { %7425 = vmatpush3.bf16.msra.mxu1 %v8033_v11  ;;  %7432 = vmatprep.subr.bf16.mxu0 %v8035_v15  ;;  %v8074_v11 = vld [vmem:[%s9927_s1 + $0xd08] sm:$0xff]   ;;  %v8078_v15 = vld [vmem:[%s9927_s1 + $0xd10] sm:$0xff]  }
 0x186   : > { %7454 = vmatprep.subr.bf16.mxu1 %v8036_v16  ;;  %v8079_v16 = vld [vmem:[%s9927_s1 + $0xd90] sm:$0xff]  }
 0x187   : > { %5776 = vmatmul.mubr.bf16.vlgmr.msra.gmra.mrb[44].mxu0 %v1649_v13  ;;  %v8076_v13 = vld [vmem:[%s9927_s1 + $0xd50] sm:$0xff]  }
 0x188   : > { %5816 = vmatmul.mubr.bf16.vlgmr.msra.gmra.mrb[44].mxu1 %v1656_v18  ;;  %7433 = vmatpush3.bf16.msra.mxu0 %v8037_v19  ;;  %v8081_v18 = vld [vmem:[%s9927_s1 + $0xdd8] sm:$0xff]  }
 0x189   : > { %7455 = vmatpush3.bf16.msra.mxu1 %v8038_v20  ;;  %7434 = vmatprep.subr.bf16.mxu0 %v8039_v22  ;;  %v8082_v19 = vld [vmem:[%s9927_s1 + $0xd18] sm:$0xff]   ;;  %v8085_v22 = vld [vmem:[%s9927_s1 + $0xde0] sm:$0xff]  }
 0x18a   : > { %7456 = vmatprep.subr.bf16.mxu1 %v8040_v23  ;;  %5855 = vmatprep.mubr.bf16.mxu0 %v1674_v4  ;;  %v8083_v20 = vld [vmem:[%s9927_s1 + $0xd98] sm:$0xff]   ;;  %v8086_v23 = vld [vmem:[%s9927_s1 + $0xd20] sm:$0xff]  }
 0x18b   : > { %5895 = vmatprep.mubr.bf16.mxu1 %v1675_v8  ;;  %v8113_v4 = vld [vmem:[%s9927_s1 + $0xe58] sm:$0xff]   ;;  %v8117_v8 = vld [vmem:[%s9927_s1 + $0xe60] sm:$0xff]  }
 0x18c   : > { %7435 = vmatpush3.bf16.msra.mxu0 %v8041_v24  ;;  %v8087_v24 = vld [vmem:[%s9927_s1 + $0xda0] sm:$0xff]  }
 0x18d   : > { %7457 = vmatpush3.bf16.msra.mxu1 %v8042_v25  ;;  %7436 = vmatprep.subr.bf16.mxu0 %v8043_v26  ;;  %v8088_v25 = vld [vmem:[%s9927_s1 + $0xd68] sm:$0xff]  }
 0x18e   : > { %7458 = vmatprep.subr.bf16.mxu1 %v8044_v27  ;;  %v8089_v26 = vld [vmem:[%s9927_s1 + $0xde8] sm:$0xff]  }
 0x18f   : > { %v8090_v27 = vld [vmem:[%s9927_s1 + $0xd28] sm:$0xff]  }
 0x190   : > { %7437 = vmatpush3.bf16.msra.mxu0 %v8045_v28  ;;  %v8091_v28 = vld [vmem:[%s9927_s1 + $0xda8] sm:$0xff]  }
 0x191   : > { %7459 = vmatpush3.bf16.msra.mxu1 %v8046_v29  ;;  %7438 = vmatprep.subr.bf16.mxu0 %v8047_v30 }
 0x192   : > { %7460 = vmatprep.subr.bf16.mxu1 %v8048_v31  ;;  %v8092_v31 = vld [vmem:[%s9927_s1 + $0xd70] sm:$0xff]  }
 0x194   : > { %7439 = vmatpush3.bf16.msra.mxu0 %v8049_v32  ;;  %v8093_v32 = vld [vmem:[%s9927_s1 + $0xdf0] sm:$0xff]  }
 0x195   : > { %7461 = vmatpush3.bf16.msra.mxu1 %v8050_v33  ;;  %7440 = vmatprep.subr.bf16.mxu0 %v8051_v34 }
 0x196   : > { %7462 = vmatprep.subr.bf16.mxu1 %v8052_v35 }
 0x198   : > { %7441 = vmatpush3.bf16.msra.mxu0 %v8053_v36 }
 0x199   : > { %7463 = vmatpush3.bf16.msra.mxu1 %v8054_v37  ;;  %7442 = vmatprep.subr.bf16.mxu0 %v8055_v38  ;;  %v8094_v38 = vld [vmem:[%s9927_s1 + $0xd30] sm:$0xff]  }
 0x19a   : > { %v7140_v44 = vpop.f32.mrb[20].mxu0  ;;  %7464 = vmatprep.subr.bf16.mxu1 %v8056_v39 }
 0x19b   : > { %v7162_v45 = vpop.f32.mrb[20].mxu1  ;;  %v7141_v46 = vpop.f32.mrb[21].mxu0 }
 0x19c   : > { %v7163_v47 = vpop.f32.mrb[21].mxu1  ;;  %v7142_v50 = vadd.f32 %v7141_v46, %v7140_v44  ;;  %7443 = vmatpush3.bf16.msra.mxu0 %v8057_v40  ;;  %v7143_v58 = vpop.f32.mrb[22].mxu0  ;;  %v8095_v40 = vld [vmem:[%s9927_s1 + $0xdb0] sm:$0xff]  }
 0x19d   : > { %v7164_v51 = vadd.f32 %v7163_v47, %v7162_v45  ;;  %v7165_v52 = vpop.f32.mrb[22].mxu1  ;;  %7465 = vmatpush3.bf16.msra.mxu1 %v8058_v42  ;;  %7444 = vmatprep.subr.bf16.mxu0 %v8059_v43  ;;  %v7144_v61 = vpop.f32.mrb[23].mxu0  ;;  %v8096_v43 = vld [vmem:[%s9927_s1 + $0xd78] sm:$0xff]   ;;  %v8104_v58 = vld [vmem:[%s9927_s1 + $0xe80] sm:$0xff]  }
 0x19e   : > { %v7166_v54 = vpop.f32.mrb[23].mxu1  ;;  %v5298_v56 = vadd.f32 %v7142_v50, %v9458_v10  ;;  %7466 = vmatprep.subr.bf16.mxu1 %v8060_v48  ;;  %v8073_v10 = vld [vmem:[%s9927_s1 + $0xdc8] sm:$0xff]   ;;  %v8097_v45 = vld [vmem:[%s9927_s1 + $0xdf8] sm:$0xff]  }
 0x19f   : > { %v8098_v48 = vld [vmem:[%s9927_s1 + $0xd38] sm:$0xff]   ;;  %v405_v50 = vld [vmem:[%s8347_s24 + $0x68] sm:$0xff]  ;;  %v8102_v54 = vld [vmem:[%s9927_s1 + $0xec0] sm:$0xff]  }
 0x1a0   : > { %v9557_v59 = vadd.f32 %v7164_v51, %v5298_v56  ;;  %7445 = vmatpush3.bf16.msra.mxu0 %v8061_v49  ;;  %v8099_v49 = vld [vmem:[%s9927_s1 + $0xdb8] sm:$0xff]   ;;  %v1683_v51 = vrot.slane %v405_v50, %v8362_v41  ;;  %v1676_v52 = vcombine.high %v405_v50, %v405_v50  ;;  %v8106_v61 = vld [vmem:[%s9927_s1 + $0xec8] sm:$0xff]  }
 0x1a1   : > { %7467 = vmatpush3.bf16.msra.mxu1 %v8062_v53  ;;  %7446 = vmatprep.subr.bf16.mxu0 %v8063_v55  ;;  %v8101_v53 = vld [vmem:[%s9927_s1 + $0xe40] sm:$0xff]   ;;  %v8141_v50 = vld [vmem:[%s9927_s1 + $0xf88] sm:$0xff]  }
 0x1a2   : > { %7468 = vmatprep.subr.bf16.mxu1 %v8064_v57  ;;  %v1691_v55 = vcombine.high %v1683_v51, %v1683_v51  ;;  %v1690_v56 = vrot.slane %v1676_v52, %v8362_v41  ;;  %v8103_v57 = vld [vmem:[%s9927_s1 + $0xe00] sm:$0xff]   ;;  %v8143_v52 = vld [vmem:[%s9927_s1 + $0xfd0] sm:$0xff]  }
 0x1a4   : > { %7447 = vmatpush3.bf16.msra.mxu0 %v8065_v60  ;;  %v8105_v60 = vld [vmem:[%s9927_s1 + $0xe48] sm:$0xff]  }
 0x1a5   : > { %7469 = vmatpush3.bf16.msra.mxu1 %v8066_v62  ;;  %7476 = vmatprep.subr.bf16.mxu0 %v8068_v2  ;;  %v8107_v62 = vld [vmem:[%s9927_s1 + $0xe08] sm:$0xff]   ;;  %v8111_v2 = vld [vmem:[%s9927_s1 + $0xe10] sm:$0xff]  }
 0x1a6   : > { %7498 = vmatprep.subr.bf16.mxu1 %v8069_v3  ;;  %v8112_v3 = vld [vmem:[%s9927_s1 + $0xe90] sm:$0xff]  }
 0x1a7   : > { %5856 = vmatmul.mubr.bf16.vlgmr.msra.gmra.mrb[48].mxu0 %v1666_v0  ;;  %v8109_v0 = vld [vmem:[%s9927_s1 + $0xe50] sm:$0xff]  }
 0x1a8   : > { %7477 = vmatpush3.bf16.msra.mxu0 %v8070_v6  ;;  %5896 = vmatmul.mubr.bf16.vlgmr.msra.gmra.mrb[48].mxu1 %v1673_v5  ;;  %v8114_v5 = vld [vmem:[%s9927_s1 + $0xed8] sm:$0xff]  }
 0x1a9   : > { %7478 = vmatprep.subr.bf16.mxu0 %v8072_v9  ;;  %7499 = vmatpush3.bf16.msra.mxu1 %v8071_v7  ;;  %v8115_v6 = vld [vmem:[%s9927_s1 + $0xe18] sm:$0xff]   ;;  %v8118_v9 = vld [vmem:[%s9927_s1 + $0xee0] sm:$0xff]  }
 0x1aa   : > { %7500 = vmatprep.subr.bf16.mxu1 %v8073_v10  ;;  %5935 = vmatprep.mubr.bf16.mxu0 %v1691_v55  ;;  %v8116_v7 = vld [vmem:[%s9927_s1 + $0xe98] sm:$0xff]   ;;  %v8119_v10 = vld [vmem:[%s9927_s1 + $0xe20] sm:$0xff]  }
 0x1ab   : > { %v8146_v55 = vld [vmem:[%s9927_s1 + $0xf58] sm:$0xff]  }
 0x1ac   : > { %7479 = vmatpush3.bf16.msra.mxu0 %v8074_v11  ;;  %v8120_v11 = vld [vmem:[%s9927_s1 + $0xea0] sm:$0xff]  }
 0x1ad   : > { %7480 = vmatprep.subr.bf16.mxu0 %v8076_v13  ;;  %7501 = vmatpush3.bf16.msra.mxu1 %v8075_v12  ;;  %v8121_v12 = vld [vmem:[%s9927_s1 + $0xe68] sm:$0xff]  }
 0x1ae   : > { %7502 = vmatprep.subr.bf16.mxu1 %v8077_v14  ;;  %v8122_v13 = vld [vmem:[%s9927_s1 + $0xee8] sm:$0xff]  }
 0x1af   : > { %v8123_v14 = vld [vmem:[%s9927_s1 + $0xe28] sm:$0xff]  }
 0x1b0   : > { %7481 = vmatpush3.bf16.msra.mxu0 %v8078_v15 }
 0x1b1   : > { %7482 = vmatprep.subr.bf16.mxu0 %v8080_v17  ;;  %7503 = vmatpush3.bf16.msra.mxu1 %v8079_v16  ;;  %v8124_v17 = vld [vmem:[%s9927_s1 + $0xea8] sm:$0xff]  }
 0x1b2   : > { %7504 = vmatprep.subr.bf16.mxu1 %v8081_v18  ;;  %v8125_v18 = vld [vmem:[%s9927_s1 + $0xe70] sm:$0xff]  }
 0x1b4   : > { %7483 = vmatpush3.bf16.msra.mxu0 %v8082_v19 }
 0x1b5   : > { %7484 = vmatprep.subr.bf16.mxu0 %v8084_v21  ;;  %7505 = vmatpush3.bf16.msra.mxu1 %v8083_v20 }
 0x1b6   : > { %7506 = vmatprep.subr.bf16.mxu1 %v8085_v22 }
 0x1b8   : > { %7485 = vmatpush3.bf16.msra.mxu0 %v8086_v23 }
 0x1b9   : > { %7486 = vmatprep.subr.bf16.mxu0 %v8088_v25  ;;  %7507 = vmatpush3.bf16.msra.mxu1 %v8087_v24  ;;  %v8126_v24 = vld [vmem:[%s9927_s1 + $0xef0] sm:$0xff]  }
 0x1ba   : > { %v7184_v29 = vpop.f32.mrb[24].mxu0  ;;  %7508 = vmatprep.subr.bf16.mxu1 %v8089_v26  ;;  %v8127_v26 = vld [vmem:[%s9927_s1 + $0xe30] sm:$0xff]  }
 0x1bb   : > { %v7206_v30 = vpop.f32.mrb[24].mxu1  ;;  %v7185_v33 = vpop.f32.mrb[25].mxu0 }
 0x1bc   : > { %v7207_v34 = vpop.f32.mrb[25].mxu1  ;;  %v7186_v35 = vadd.f32 %v7185_v33, %v7184_v29  ;;  %7487 = vmatpush3.bf16.msra.mxu0 %v8090_v27  ;;  %v7187_v44 = vpop.f32.mrb[26].mxu0  ;;  %v8130_v33 = vld [vmem:[%s9927_s1 + $0xef8] sm:$0xff]  }
 0x1bd   : > { %v7208_v36 = vadd.f32 %v7207_v34, %v7206_v30  ;;  %v7209_v37 = vpop.f32.mrb[26].mxu1  ;;  %7488 = vmatprep.subr.bf16.mxu0 %v8092_v31  ;;  %7509 = vmatpush3.bf16.msra.mxu1 %v8091_v28  ;;  %v7188_v46 = vpop.f32.mrb[27].mxu0  ;;  %v8128_v28 = vld [vmem:[%s9927_s1 + $0xeb0] sm:$0xff]   ;;  %v8129_v30 = vld [vmem:[%s9927_s1 + $0xe78] sm:$0xff]   ;;  %v8136_v44 = vld [vmem:[%s9927_s1 + $0xf00] sm:$0xff]  }
 0x1be   : > { %v7210_v39 = vpop.f32.mrb[27].mxu1  ;;  %v5378_v42 = vadd.f32 %v7186_v35, %v9557_v59  ;;  %7510 = vmatprep.subr.bf16.mxu1 %v8093_v32  ;;  %v1692_v59 = vcombine.high %v1690_v56, %v1690_v56  ;;  %v8131_v34 = vld [vmem:[%s9927_s1 + $0xe38] sm:$0xff]  }
 0x1bf   : > { %v8132_v35 = vld [vmem:[%s9927_s1 + $0xeb8] sm:$0xff]   ;;  %v8134_v39 = vld [vmem:[%s9927_s1 + $0xf40] sm:$0xff]  }
 0x1c0   : > { %v9659_v47 = vadd.f32 %v7208_v36, %v5378_v42  ;;  %7489 = vmatpush3.bf16.msra.mxu0 %v8094_v38  ;;  %5975 = vmatprep.mubr.bf16.mxu1 %v1692_v59  ;;  %v406_v36 = vld [vmem:[%s8347_s24 + $0x70] sm:$0xff]  ;;  %v8150_v59 = vld [vmem:[%s9927_s1 + $0xf60] sm:$0xff]  }
 0x1c1   : > { %7490 = vmatprep.subr.bf16.mxu0 %v8096_v43  ;;  %7511 = vmatpush3.bf16.msra.mxu1 %v8095_v40  ;;  %v1700_v37 = vrot.slane %v406_v36, %v8362_v41  ;;  %v1693_v38 = vcombine.high %v406_v36, %v406_v36  ;;  %v8135_v40 = vld [vmem:[%s9927_s1 + $0xfc0] sm:$0xff]   ;;  %v8168_v36 = vld [vmem:[%s9933_s7 + $0x8] sm:$0xff]  }
 0x1c2   : > { %7512 = vmatprep.subr.bf16.mxu1 %v8097_v45  ;;  %v8137_v45 = vld [vmem:[%s9927_s1 + $0xf80] sm:$0xff]  }
 0x1c3   : > { %v1708_v42 = vcombine.high %v1700_v37, %v1700_v37  ;;  %v1707_v43 = vrot.slane %v1693_v38, %v8362_v41 }
 0x1c4   : > { %7491 = vmatpush3.bf16.msra.mxu0 %v8098_v48  ;;  %v8139_v48 = vld [vmem:[%s9927_s1 + $0xfc8] sm:$0xff]  }
 0x1c5   : > { %7520 = vmatprep.subr.bf16.mxu0 %v8101_v53  ;;  %7513 = vmatpush3.bf16.msra.mxu1 %v8099_v49  ;;  %v1709_v46 = vcombine.high %v1707_v43, %v1707_v43  ;;  %v8140_v49 = vld [vmem:[%s9927_s1 + $0xf08] sm:$0xff]   ;;  %v8144_v53 = vld [vmem:[%s9927_s1 + $0xf10] sm:$0xff]  }
 0x1c6   : > { %7542 = vmatprep.subr.bf16.mxu1 %v8102_v54  ;;  %v8145_v54 = vld [vmem:[%s9927_s1 + $0xf90] sm:$0xff]  }
 0x1c7   : > { %5936 = vmatmul.mubr.bf16.vlgmr.msra.gmra.mrb[52].mxu0 %v1683_v51  ;;  %v8142_v51 = vld [vmem:[%s9927_s1 + $0xf50] sm:$0xff]  }
 0x1c8   : > { %7521 = vmatpush3.bf16.msra.mxu0 %v8103_v57  ;;  %5976 = vmatmul.mubr.bf16.vlgmr.msra.gmra.mrb[52].mxu1 %v1690_v56  ;;  %v8147_v56 = vld [vmem:[%s9927_s1 + $0xfd8] sm:$0xff]  }
 0x1c9   : > { %7522 = vmatprep.subr.bf16.mxu0 %v8105_v60  ;;  %7543 = vmatpush3.bf16.msra.mxu1 %v8104_v58  ;;  %v8148_v57 = vld [vmem:[%s9927_s1 + $0xf18] sm:$0xff]   ;;  %v8151_v60 = vld [vmem:[%s9927_s1 + $0xfe0] sm:$0xff]  }
 0x1ca   : > { %7544 = vmatprep.subr.bf16.mxu1 %v8106_v61  ;;  %6015 = vmatprep.mubr.bf16.mxu0 %v1708_v42  ;;  %v8149_v58 = vld [vmem:[%s9927_s1 + $0xf98] sm:$0xff]   ;;  %v8152_v61 = vld [vmem:[%s9927_s1 + $0xf20] sm:$0xff]  }
 0x1cb   : > { %6055 = vmatprep.mubr.bf16.mxu1 %v1709_v46 }
 0x1cc   : > { %7523 = vmatpush3.bf16.msra.mxu0 %v8107_v62  ;;  %v8153_v62 = vld [vmem:[%s9927_s1 + $0xfa0] sm:$0xff]  }
 0x1cd   : > { %7524 = vmatprep.subr.bf16.mxu0 %v8109_v0  ;;  %7545 = vmatpush3.bf16.msra.mxu1 %v8108_v63  ;;  %v8154_v63 = vld [vmem:[%s9927_s1 + $0xf68] sm:$0xff]  }
 0x1ce   : > { %7546 = vmatprep.subr.bf16.mxu1 %v8110_v1  ;;  %v8155_v0 = vld [vmem:[%s9927_s1 + $0xfe8] sm:$0xff]  }
 0x1cf   : > { %v8156_v1 = vld [vmem:[%s9927_s1 + $0xf28] sm:$0xff]  }
 0x1d0   : > { %7525 = vmatpush3.bf16.msra.mxu0 %v8111_v2 }
 0x1d1   : > { %7526 = vmatprep.subr.bf16.mxu0 %v8113_v4  ;;  %7547 = vmatpush3.bf16.msra.mxu1 %v8112_v3 }
 0x1d2   : > { %7548 = vmatprep.subr.bf16.mxu1 %v8114_v5 }
 0x1d4   : > { %7527 = vmatpush3.bf16.msra.mxu0 %v8115_v6  ;;  %v8157_v6 = vld [vmem:[%s9927_s1 + $0xfa8] sm:$0xff]  }
 0x1d5   : > { %7528 = vmatprep.subr.bf16.mxu0 %v8117_v8  ;;  %7549 = vmatpush3.bf16.msra.mxu1 %v8116_v7  ;;  %v8158_v7 = vld [vmem:[%s9927_s1 + $0xf70] sm:$0xff]  }
 0x1d6   : > { %7550 = vmatprep.subr.bf16.mxu1 %v8118_v9 }
 0x1d8   : > { %7529 = vmatpush3.bf16.msra.mxu0 %v8119_v10 }
 0x1d9   : > { %7530 = vmatprep.subr.bf16.mxu0 %v8121_v12  ;;  %7551 = vmatpush3.bf16.msra.mxu1 %v8120_v11  ;;  %v8159_v11 = vld [vmem:[%s9927_s1 + $0xff0] sm:$0xff]  }
 0x1da   : > { %v7228_v15 = vpop.f32.mrb[28].mxu0  ;;  %7552 = vmatprep.subr.bf16.mxu1 %v8122_v13  ;;  %v8160_v13 = vld [vmem:[%s9927_s1 + $0xf30] sm:$0xff]  }
 0x1db   : > { %v7250_v16 = vpop.f32.mrb[28].mxu1  ;;  %v7229_v19 = vpop.f32.mrb[29].mxu0 }
 0x1dc   : > { %v7251_v20 = vpop.f32.mrb[29].mxu1  ;;  %v7230_v21 = vadd.f32 %v7229_v19, %v7228_v15  ;;  %7531 = vmatpush3.bf16.msra.mxu0 %v8123_v14  ;;  %v7231_v29 = vpop.f32.mrb[30].mxu0  ;;  %v8161_v15 = vld [vmem:[%s9927_s1 + $0xfb0] sm:$0xff]  }
 0x1dd   : > { %v7252_v22 = vadd.f32 %v7251_v20, %v7250_v16  ;;  %v7253_v23 = vpop.f32.mrb[30].mxu1  ;;  %7532 = vmatprep.subr.bf16.mxu0 %v8125_v18  ;;  %7553 = vmatpush3.bf16.msra.mxu1 %v8124_v17  ;;  %v7232_v31 = vpop.f32.mrb[31].mxu0  ;;  %v8162_v18 = vld [vmem:[%s9927_s1 + $0xf78] sm:$0xff]  }
 0x1de   : > { %v7254_v25 = vpop.f32.mrb[31].mxu1  ;;  %v5458_v27 = vadd.f32 %v7230_v21, %v9659_v47  ;;  %7554 = vmatprep.subr.bf16.mxu1 %v8126_v24  ;;  %v8138_v47 = vld [vmem:[%s9927_s1 + $0xf48] sm:$0xff]   ;;  %v8163_v20 = vld [vmem:[%s9927_s1 + $0xff8] sm:$0xff]   ;;  %v8182_v31 = vmov 0.0  }
 0x1df   : > { %v8164_v21 = vld [vmem:[%s9927_s1 + $0xf38] sm:$0xff]   ;;  %6294 = vst.msk [vmem:[%s9900_s19 + $0xd] sm:$0x7] %vm6293_vm5, %v8182_v31 }
 0x1e0   : > { %v9758_v32 = vadd.f32 %v7252_v22, %v5458_v27  ;;  %7533 = vmatpush3.bf16.msra.mxu0 %v8127_v26  ;;  %v8181_v22 = vmov 65535   ;;  %v8165_v24 = vld [vmem:[%s9927_s1 + $0xfb8] sm:$0xff]  }
 0x1e1   : > { %7534 = vmatprep.subr.bf16.mxu0 %v8129_v30  ;;  %7555 = vmatpush3.bf16.msra.mxu1 %v8128_v28  ;;  %v6165_v23 = vsel %vm6163_vm0, 4294967295, %v8181_v22  ;;  %v407_v25 = vld [vmem:[%s8347_s24 + $0x78] sm:$0xff] }
 0x1e2   : > { %7556 = vmatprep.subr.bf16.mxu1 %v8130_v33  ;;  %v1717_v26 = vrot.slane %v407_v25, %v8362_v41  ;;  %v1710_v27 = vcombine.high %v407_v25, %v407_v25  ;;  %v6166_v28 = vsel %vm6164_vm1, %v6165_v23, 0 }
 0x1e4   : > { %7535 = vmatpush3.bf16.msra.mxu0 %v8131_v34  ;;  %v1725_v29 = vcombine.high %v1717_v26, %v1717_v26  ;;  %v1724_v30 = vrot.slane %v1710_v27, %v8362_v41  ;;  %v8167_v41 = vld [vmem:[%s9933_s7] sm:$0xff]  }
 0x1e5   : > { %7564 = vmatprep.subr.bf16.mxu0 %v8134_v39  ;;  %7557 = vmatpush3.bf16.msra.mxu1 %v8132_v35  ;;  %v6143_v35 = vld [vmem:[%s382_s26] sm:$0xff] }
 0x1e6   : > { %7586 = vmatprep.subr.bf16.mxu1 %v8135_v40  ;;  %v1726_v33 = vcombine.high %v1724_v30, %v1724_v30  ;;  %v6144_v38 = vpack.c.bf16 %v6143_v35, %v6143_v35 }
 0x1e7   : > { %6016 = vmatmul.mubr.bf16.vlgmr.msra.gmra.mrb[56].mxu0 %v1700_v37  ;;  %v6210_v37 = vld [vmem:[%s385_s11] sm:$0x1] }
 0x1e8   : > { %7565 = vmatpush3.bf16.msra.mxu0 %v8136_v44  ;;  %6056 = vmatmul.mubr.bf16.vlgmr.msra.gmra.mrb[56].mxu1 %v1707_v43  ;;  %v6211_v39 = vpack.c.bf16 %v6210_v37, %v6210_v37 }
 0x1e9   : > { %7566 = vmatprep.subr.bf16.mxu0 %v8138_v47  ;;  %7587 = vmatpush3.bf16.msra.mxu1 %v8137_v45 }
 0x1ea   : > { %7588 = vmatprep.subr.bf16.mxu1 %v8139_v48  ;;  %6095 = vmatprep.mubr.bf16.mxu0 %v1725_v29 }
 0x1eb   : > { %6135 = vmatprep.mubr.bf16.mxu1 %v1726_v33 }
 0x1ec   : > { %7567 = vmatpush3.bf16.msra.mxu0 %v8140_v49 }
 0x1ed   : > { %7568 = vmatprep.subr.bf16.mxu0 %v8142_v51  ;;  %7589 = vmatpush3.bf16.msra.mxu1 %v8141_v50 }
 0x1ee   : > { %7590 = vmatprep.subr.bf16.mxu1 %v8143_v52 }
 0x1f0   : > { %7569 = vmatpush3.bf16.msra.mxu0 %v8144_v53 }
 0x1f1   : > { %7570 = vmatprep.subr.bf16.mxu0 %v8146_v55  ;;  %7591 = vmatpush3.bf16.msra.mxu1 %v8145_v54 }
 0x1f2   : > { %7592 = vmatprep.subr.bf16.mxu1 %v8147_v56 }
 0x1f4   : > { %7571 = vmatpush3.bf16.msra.mxu0 %v8148_v57 }
 0x1f5   : > { %7572 = vmatprep.subr.bf16.mxu0 %v8150_v59  ;;  %7593 = vmatpush3.bf16.msra.mxu1 %v8149_v58 }
 0x1f6   : > { %7594 = vmatprep.subr.bf16.mxu1 %v8151_v60 }
 0x1f8   : > { %7573 = vmatpush3.bf16.msra.mxu0 %v8152_v61 }
 0x1f9   : > { %7574 = vmatprep.subr.bf16.mxu0 %v8154_v63  ;;  %7595 = vmatpush3.bf16.msra.mxu1 %v8153_v62 }
 0x1fa   : > { %v7272_v2 = vpop.f32.mrb[32].mxu0  ;;  %7596 = vmatprep.subr.bf16.mxu1 %v8155_v0 }
 0x1fb   : > { %v7294_v3 = vpop.f32.mrb[32].mxu1  ;;  %v7273_v4 = vpop.f32.mrb[33].mxu0 }
 0x1fc   : > { %v7295_v5 = vpop.f32.mrb[33].mxu1  ;;  %v7274_v8 = vadd.f32 %v7273_v4, %v7272_v2  ;;  %7575 = vmatpush3.bf16.msra.mxu0 %v8156_v1  ;;  %v7275_v16 = vpop.f32.mrb[34].mxu0 }
 0x1fd   : > { %v7296_v9 = vadd.f32 %v7295_v5, %v7294_v3  ;;  %v7297_v10 = vpop.f32.mrb[34].mxu1  ;;  %7576 = vmatprep.subr.bf16.mxu0 %v8158_v7  ;;  %7597 = vmatpush3.bf16.msra.mxu1 %v8157_v6  ;;  %v7276_v19 = vpop.f32.mrb[35].mxu0 }
 0x1fe   : > { %v7298_v12 = vpop.f32.mrb[35].mxu1  ;;  %v5538_v14 = vadd.f32 %v7274_v8, %v9758_v32  ;;  %7598 = vmatprep.subr.bf16.mxu1 %v8159_v11  ;;  %v8169_v32 = vld [vmem:[%s9930_s4] sm:$0x1f]  }
 0x1ff   : > { %v6168_v34 = vand.u32 %v8169_v32, %v6166_v28 }
 0x200   : > { %v5578_v17 = vadd.f32 %v7296_v9, %v5538_v14  ;;  %7577 = vmatpush3.bf16.msra.mxu0 %v8160_v13 }
 0x201   : > { %7578 = vmatprep.subr.bf16.mxu0 %v8162_v18  ;;  %7599 = vmatpush3.bf16.msra.mxu1 %v8161_v15 }
 0x202   : > { %7600 = vmatprep.subr.bf16.mxu1 %v8163_v20 }
 0x204   : > { %7579 = vmatpush3.bf16.msra.mxu0 %v8164_v21 }
 0x205   : > { %7613 = vmatprep.subr.bf16.mxu0 %v8182_v31  ;;  %7601 = vmatpush3.bf16.msra.mxu1 %v8165_v24 }
 0x206   : > { %7619 = vmatprep.subr.bf16.mxu1 %v8182_v31 }
 0x207   : > { %6096 = vmatmul.mubr.bf16.vlgmr.msra.gmra.mrb[60].mxu0 %v1717_v26 }
 0x208   : > { %7614 = vmatpush3.bf16.msra.mxu0 %v6168_v34  ;;  %6136 = vmatmul.mubr.bf16.vlgmr.msra.gmra.mrb[60].mxu1 %v1724_v30 }
 0x209   : > { %7615 = vmatprep.mubr.msk.bf16.mxu0 %vm8183_vm2, %v8182_v31  ;;  %7620 = vmatpush3.bf16.msra.mxu1 %v8167_v41 }
 0x20a   : > { %7623 = vmatprep.mubr.msk.bf16.mxu1 %vm8183_vm2, %v8182_v31  ;;  %7621 = vmatprep.subr.bf16.mxu1 %v8182_v31 }
 0x20d   : > { %7622 = vmatpush3.bf16.msra.mxu1 %v8168_v36 }
 0x20f   : > { %7616 = vmatmul.mubr.msk.bf16.vlgmr.msra.gmra.mrb[64].mxu0 %vm6159_vm3, %v6144_v38 }
 0x210   : > { %7624 = vmatmul.mubr.msk.bf16.vlgmr.msra.gmra.mrb[64].mxu1 %vm6229_vm4, %v6211_v39 }
 0x21a   : > { %v7316_v40 = vpop.f32.mrb[36].mxu0 }
 0x21b   : > { %v7338_v42 = vpop.f32.mrb[36].mxu1  ;;  %v7317_v43 = vpop.f32.mrb[37].mxu0 }
 0x21c   : > { %v7339_v44 = vpop.f32.mrb[37].mxu1  ;;  %v7318_v45 = vadd.f32 %v7317_v43, %v7316_v40  ;;  %v7319_v48 = vpop.f32.mrb[38].mxu0 }
 0x21d   : > { %v7340_v46 = vadd.f32 %v7339_v44, %v7338_v42  ;;  %v7341_v47 = vpop.f32.mrb[38].mxu1  ;;  %v7320_v50 = vpop.f32.mrb[39].mxu0 }
 0x21e   : > { %v7342_v49 = vpop.f32.mrb[39].mxu1  ;;  %v5618_v51 = vadd.f32 %v7318_v45, %v5578_v17 }
 0x220   : > { %v5658_v52 = vadd.f32 %v7340_v46, %v5618_v51 }
 0x23a   : > { %v7360_v53 = vpop.f32.mrb[40].mxu0 }
 0x23b   : > { %v7382_v54 = vpop.f32.mrb[40].mxu1  ;;  %v7361_v55 = vpop.f32.mrb[41].mxu0 }
 0x23c   : > { %v7362_v56 = vadd.f32 %v7361_v55, %v7360_v53  ;;  %v7383_v57 = vpop.f32.mrb[41].mxu1  ;;  %v7363_v58 = vpop.f32.mrb[42].mxu0 }
 0x23d   : > { %v7384_v59 = vadd.f32 %v7383_v57, %v7382_v54  ;;  %v7385_v60 = vpop.f32.mrb[42].mxu1  ;;  %v7364_v61 = vpop.f32.mrb[43].mxu0 }
 0x23e   : > { %v5698_v62 = vadd.f32 %v7362_v56, %v5658_v52  ;;  %v7386_v63 = vpop.f32.mrb[43].mxu1 }
 0x240   : > { %v5738_v0 = vadd.f32 %v7384_v59, %v5698_v62  ;;  %v6289_v59 = vld [vmem:[%s9935_s9] sm:$0xf] }
 0x241   : > { %v6894_v62 = vld [vmem:[%s9931_s5] ss:$0 sm:$0xff] }
 0x25a   : > { %v7404_v1 = vpop.f32.mrb[44].mxu0 }
 0x25b   : > { %v7426_v2 = vpop.f32.mrb[44].mxu1  ;;  %v7405_v3 = vpop.f32.mrb[45].mxu0 }
 0x25c   : > { %v7406_v4 = vadd.f32 %v7405_v3, %v7404_v1  ;;  %v7427_v5 = vpop.f32.mrb[45].mxu1  ;;  %v7407_v6 = vpop.f32.mrb[46].mxu0 }
 0x25d   : > { %v7428_v7 = vadd.f32 %v7427_v5, %v7426_v2  ;;  %v7429_v8 = vpop.f32.mrb[46].mxu1  ;;  %v7408_v9 = vpop.f32.mrb[47].mxu0  ;;  %v6282_v2 = vld [vmem:[%s9935_s9] sm:$0xff] }
 0x25e   : > { %v5778_v10 = vadd.f32 %v7406_v4, %v5738_v0  ;;  %v7430_v11 = vpop.f32.mrb[47].mxu1  ;;  %v6216_v0 = vld [vmem:[%s9934_s8] sm:$0x1] }
 0x260   : > { %v5818_v12 = vadd.f32 %v7428_v7, %v5778_v10 }
 0x27a   : > { %v7448_v13 = vpop.f32.mrb[48].mxu0 }
 0x27b   : > { %v7449_v14 = vpop.f32.mrb[49].mxu0  ;;  %v7470_v15 = vpop.f32.mrb[48].mxu1 }
 0x27c   : > { %v7450_v16 = vadd.f32 %v7449_v14, %v7448_v13  ;;  %v7451_v17 = vpop.f32.mrb[50].mxu0  ;;  %v7471_v18 = vpop.f32.mrb[49].mxu1 }
 0x27d   : > { %v7452_v19 = vpop.f32.mrb[51].mxu0  ;;  %v7472_v21 = vadd.f32 %v7471_v18, %v7470_v15  ;;  %v7473_v22 = vpop.f32.mrb[50].mxu1 }
 0x27e   : > { %v5858_v20 = vadd.f32 %v7450_v16, %v5818_v12  ;;  %v7474_v23 = vpop.f32.mrb[51].mxu1 }
 0x280   : > { %v5898_v24 = vadd.f32 %v7472_v21, %v5858_v20  ;;  %v6285_v21 = vld [vmem:[%s9935_s9 + $0x8] sm:$0x1] }
 0x29a   : > { %v7492_v25 = vpop.f32.mrb[52].mxu0 }
 0x29b   : > { %v7493_v26 = vpop.f32.mrb[53].mxu0  ;;  %v7514_v27 = vpop.f32.mrb[52].mxu1 }
 0x29c   : > { %v7494_v28 = vadd.f32 %v7493_v26, %v7492_v25  ;;  %v7495_v29 = vpop.f32.mrb[54].mxu0  ;;  %v7515_v30 = vpop.f32.mrb[53].mxu1 }
 0x29d   : > { %v7496_v32 = vpop.f32.mrb[55].mxu0  ;;  %v7516_v33 = vadd.f32 %v7515_v30, %v7514_v27  ;;  %v7517_v41 = vpop.f32.mrb[54].mxu1 }
 0x29e   : > { %v5938_v31 = vadd.f32 %v7494_v28, %v5898_v24  ;;  %v7518_v34 = vpop.f32.mrb[55].mxu1 }
 0x2a0   : > { %v5978_v35 = vadd.f32 %v7516_v33, %v5938_v31 }
 0x2ba   : > { %v7536_v36 = vpop.f32.mrb[56].mxu0 }
 0x2bb   : > { %v7537_v37 = vpop.f32.mrb[57].mxu0  ;;  %v7558_v38 = vpop.f32.mrb[56].mxu1 }
 0x2bc   : > { %v7538_v39 = vadd.f32 %v7537_v37, %v7536_v36  ;;  %v7539_v40 = vpop.f32.mrb[58].mxu0  ;;  %v7559_v42 = vpop.f32.mrb[57].mxu1 }
 0x2bd   : > { %v7540_v43 = vpop.f32.mrb[59].mxu0  ;;  %v7560_v45 = vadd.f32 %v7559_v42, %v7558_v38  ;;  %v7561_v46 = vpop.f32.mrb[58].mxu1 }
 0x2be   : > { %v6018_v44 = vadd.f32 %v7538_v39, %v5978_v35  ;;  %v7562_v47 = vpop.f32.mrb[59].mxu1 }
 0x2c0   : > { %v6058_v48 = vadd.f32 %v7560_v45, %v6018_v44 }
 0x2da   : > { %v7580_v49 = vpop.f32.mrb[60].mxu0 }
 0x2db   : > { %v7581_v50 = vpop.f32.mrb[61].mxu0  ;;  %v7602_v51 = vpop.f32.mrb[60].mxu1 }
 0x2dc   : > { %v7582_v52 = vadd.f32 %v7581_v50, %v7580_v49  ;;  %v7583_v53 = vpop.f32.mrb[62].mxu0  ;;  %v7603_v54 = vpop.f32.mrb[61].mxu1 }
 0x2dd   : > { %v7584_v55 = vpop.f32.mrb[63].mxu0  ;;  %v7604_v57 = vadd.f32 %v7603_v54, %v7602_v51  ;;  %v7605_v58 = vpop.f32.mrb[62].mxu1 }
 0x2de   : > { %v6098_v56 = vadd.f32 %v7582_v52, %v6058_v48  ;;  %v7606_v60 = vpop.f32.mrb[63].mxu1 }
 0x2e0   : > { %v6138_v61 = vadd.f32 %v7604_v57, %v6098_v56 }
 0x2e2   : > { %v6290_v63 = vadd.f32 %v6289_v59, %v6138_v61  ;;  %v6204_v1 = vpop.f32.mrb[64].mxu0 }
 0x2e3   : > { %v6205_v3 = vadd.f32 %v6894_v62, %v6204_v1  ;;  %v7617_v4 = vpop.f32.mrb[65].mxu0  ;;  %v6267_v5 = vpop.f32.mrb[64].mxu1 }
 0x2e4   : > { %6292 = vst.msk [vmem:[%s9900_s19 + $0x9] sm:$0xf] %vm6291_vm6, %v6290_v63  ;;  %v6207_v6 = vpop.f32.mrb[66].mxu0  ;;  %v6268_v7 = vadd.f32 %v6267_v5, %v6216_v0  ;;  %v7625_v8 = vpop.f32.mrb[65].mxu1 }
 0x2e5   : > { %v6283_v9 = vadd.f32 %v6282_v2, %v6205_v3  ;;  %v7618_v10 = vpop.f32.mrb[67].mxu0  ;;  %v6270_v11 = vpop.f32.mrb[66].mxu1 }
 0x2e6   : > { %v6273_v12 = vmul.f32 %v6268_v7, %v6268_v7  ;;  %v7626_v13 = vpop.f32.mrb[67].mxu1 }
 0x2e7   : > { %6284 = vst.msk [vmem:[%s9900_s19] sm:$0xff] %vm6229_vm4, %v6283_v9 }
 0x2e8   : > { %v6274_v14 = vmul.f32 %v6273_v12, %v6268_v7 }
 0x2ea   : > { %v6275_v15 = vmul.f32 0.044715, %v6274_v14 }
 0x2ec   : > { %v6276_v16 = vadd.f32 %v6275_v15, %v6268_v7 }
 0x2ee   : > { %v6277_v17 = vmul.f32 0.7978846, %v6276_v16 }
 0x2f0   : > { %8170 = vtanh.f32 %v6277_v17 }
 0x2fa   : > { %v8171_v18 = vpop.eup %8170 }
 0x2fb   : > { %v6279_v19 = vadd.f32 1.0, %v8171_v18 }
 0x2fd   : > { %v6280_v20 = vmul.f32 0.5, %v6279_v19 }
 0x2ff   : > { %v6281_v22 = vmul.f32 %v6280_v20, %v6268_v7 }
 0x301   : > { %v6286_v23 = vadd.f32 %v6285_v21, %v6281_v22 }
 0x303   : > { %6288 = vst.msk [vmem:[%s9900_s19 + $0x8] sm:$0x1] %vm6287_vm7, %v6286_v23 }
 0x304 PF: > { %s20_s13 = sadd.s32 1, %s8178_s13  }
 0x305   : > { %p17_p4 = scmp.ge.s32.totalorder %s20_s13, 4  }
 0x307   :  { %19 = sbr.rel (!%p17_p4) target bundleno = 1 (0x1), region = 96 }

// kernel: convpool_forward.5
= control target key start
LH: loop header
LB: loop body
LE: loop exit
PB: predicated region body
PF: predicated region fallthrough
CT: control target
= control target key end

     0   :  { %s2667_s0 = inlined_call_operand.vmem [shape: f32[2,16,32], index: 0, kind: input, shape index: {}]   ;;  %s2668_s1 = inlined_call_operand.vmem [shape: bf16[2,32,96], index: 1, kind: input, shape index: {}]   ;;  %s2669_s2 = inlined_call_operand.vmem [shape: f32[2,1,96], index: 2, kind: input, shape index: {}]   ;;  %s2670_s3 = inlined_call_operand.vmem [shape: bf16[2,32,32], index: 3, kind: input, shape index: {}]   ;;  %s2671_s4 = inlined_call_operand.vmem [shape: f32[2,1,32], index: 4, kind: input, shape index: {}, may-alias: {4,6,10,12}]   ;;  %s2672_s5 = inlined_call_operand.vmem [shape: f32[2,1,32], index: 5, kind: input, shape index: {}, may-alias: {5,11}]   ;;  %s2673_s6 = inlined_call_operand.vmem [shape: f32[2,1,32], index: 6, kind: input, shape index: {}, may-alias: {4,6,10,12}]   ;;  %s2674_s7 = inlined_call_operand.vmem [shape: bf16[2,32,64], index: 7, kind: input, shape index: {}]   ;;  %s2675_s8 = inlined_call_operand.vmem [shape: f32[2,1,64], index: 8, kind: input, shape index: {}]   ;;  %s2676_s9 = inlined_call_operand.vmem [shape: bf16[2,64,32], index: 9, kind: input, shape index: {}]   ;;  %s2677_s10 = inlined_call_operand.vmem [shape: f32[2,1,32], index: 10, kind: input, shape index: {}, may-alias: {4,6,10,12}]   ;;  %s2678_s11 = inlined_call_operand.vmem [shape: f32[2,1,32], index: 11, kind: input, shape index: {}, may-alias: {5,11}]   ;;  %s2679_s12 = inlined_call_operand.vmem [shape: f32[2,1,32], index: 12, kind: input, shape index: {}, may-alias: {4,6,10,12}]   ;;  %s2680_s13 = inlined_call_operand.vmem [shape: bf16[32,32], index: 13, kind: input, shape index: {}]   ;;  %s2681_s14 = inlined_call_operand.vmem [shape: f32[1,32], index: 14, kind: input, shape index: {}, may-alias: {14,16}]   ;;  %s2682_s15 = inlined_call_operand.vmem [shape: bf16[32,32], index: 15, kind: input, shape index: {}]   ;;  %s2683_s16 = inlined_call_operand.vmem [shape: f32[1,32], index: 16, kind: input, shape index: {}, may-alias: {14,16}]   ;;  %s2684_s17 = inlined_call_operand.vmem [shape: bf16[32,9], index: 17, kind: input, shape index: {}]   ;;  %s2685_s18 = inlined_call_operand.vmem [shape: f32[1,9], index: 18, kind: input, shape index: {}]   ;;  %s2686_s19 = inlined_call_operand.vmem [shape: f32[2,8,9], index: 19, kind: input, shape index: {}]   ;;  %s2687_s20 = inlined_call_operand.vmem [shape: f32[2,8,9], index: 20, kind: output, shape index: {}]  }
   0x1   :  { %2688 = sst [smem:[#allocation3_spill]] %s2667_s0 }
   0x2   :  { %2689 = sst [smem:[#allocation4_spill]] %s2668_s1  ;;  %s2416_s1 = smov 0  }
   0x3   :  { %2690 = sst [smem:[#allocation5_spill]] %s2669_s2 }
   0x4   :  { %2691 = sst [smem:[#allocation6_spill]] %s2670_s3 }
   0x5   :  { %2692 = sst [smem:[#allocation7_spill]] %s2671_s4 }
   0x6   :  { %2693 = sst [smem:[#allocation8_spill]] %s2686_s19 }
   0x7 LB: > { %s1934_s22 = sadd.s32 4294967295, %s2278_s1   ;;  %p1938_p0 = scmp.ge.s32.totalorder %s2278_s1, 1  ;;  %s2278_s1 = sphi %s2416_s1, %s30_s1  }
   0x8   : > { %p571_p1 = scmp.lt.s32.totalorder %s2278_s1, 3 }
   0xa   : > { %p572_p2 = pnand %p1938_p0, %p571_p1 }
   0xb   : > { %p632_p3 = scmp.lt.s32.totalorder (!%p572_p2), %s1934_s22, 1  ;;  %v646_v0 = vlaneseq (!%p572_p2)  ;;  %s2694_s3 = sld [smem:[#allocation3_spill]] (!%p572_p2)  ;;  %v2292_v2 = vmov (!%p572_p2), -1e+09  }
   0xc   : > { %575 = sbr.rel (%p572_p2) target bundleno = 3333 (0xd05), region = 100  ;;  %s2695_s19 = sld [smem:[#allocation8_spill]] (!%p572_p2) }
   0xd   : > { %v647_v1 = vand.u32 (!%p572_p2), 127, %v646_v0  ;;  %s2443_s21 = smov (!%p572_p2), 0  }
   0xf   : > { %vm648_vm0 = vcmp.lt.s32.totalorder (!%p572_p2), %v647_v1, 13 }
  0x10   : > { %v2432_v3 = vsel (!%p572_p2), %vm648_vm0, 0.0, %v2292_v2 }
  0x13   : > { %s2702_s22 = smov (!%p632_p3, %s1934_s22), 1 }
  0x14   : > { %s1993_s23 = sshll.u32 %s2702_s22, 4  ;;  %s1941_s24 = sshll.u32 %s2702_s22, 3 }
  0x15   : > { %s636_s26 = scalar_lea.vmem %s2694_s3, %s1993_s23  ;;  %s2430_s4 = scalar_lea.vmem %s2695_s19, %s1941_s24 }
  0x16   : > { %s2437_s0 = scalar_lea.vmem %s2687_s20, %s1941_s24  ;;  %v650_v4 = vld [vmem:[%s636_s26] sm:$0xff]   ;;  %v651_v5 = vld [vmem:[%s636_s26 + $0x8] sm:$0xff]  }
  0x17 LB: >> { %v2293_v6 = vmov 0.0   ;;  %vm2294_vm1 = vmmov 0   ;;  %s1994_s22 = sshll.u32 %s2290_s21, 4  ;;  %s2696_s2 = sld [smem:[#allocation4_spill]]  ;;  %v660_v9 = vpack.c.bf16 %v2282_v5, %v2286_v4  ;;  %vm688_vm2 = vcmask 261120   ;;  %s2290_s21 = sphi %s2443_s21, %s657_s21   ;;  %v2286_v4 = vphi %v650_v4, %v2700_v4   ;;  %v2282_v5 = vphi %v651_v5, %v1617_v5  }
  0x18   : >> { %2037 = vmatprep.subr.bf16.mxu0 %v2293_v6  ;;  %2041 = vmatprep.mubr.msk.bf16.mxu0 %vm2294_vm1, %v2293_v6  ;;  %s2697_s27 = sld [smem:[#allocation6_spill]]  ;;  %s2472_s19 = scalar_lea.vmem %s2674_s7, %s1994_s22  ;;  %vm737_vm3 = vcmask 64512   ;;  %vm789_vm4 = vcmask 130048   ;;  %vm995_vm5 = vcmask 130112   ;;  %vm1131_vm6 = vcmask 195712  }
  0x19   : >> { %2045 = vmatprep.subr.bf16.mxu1 %v2293_v6  ;;  %2047 = vmatprep.mubr.msk.bf16.mxu1 %vm2294_vm1, %v2293_v6  ;;  %s2296_s3 = smov 96   ;;  %s2297_s26 = smov 80   ;;  %vm1267_vm7 = vcmask 261312   ;;  %vm1525_vm8 = vcmask 523264  }
  0x1a   : >> { %s2299_s29 = smov 72   ;;  %s2300_s30 = smov 112  }
  0x1b   : >> { %s2301_s23 = smov 104   ;;  %s2302_s24 = smov 56  }
  0x1d   : >> { %s663_s25 = scalar_lea.vmem %s2696_s2, %s1994_s22  ;;  %s2698_s2 = sld [smem:[#allocation5_spill]] }
  0x1e   : >> { %v2196_v7 = vld [vmem:[%s663_s25] sm:$0xff]   ;;  %s2467_s28 = scalar_lea.vmem %s2697_s27, %s1994_s22  ;;  %v2197_v8 = vld [vmem:[%s663_s25 + $0x8] sm:$0xff]   ;;  %s2295_s22 = smov 120  }
  0x1f   : >> { %2038 = vmatpush3.bf16.msra.mxu0 %v2196_v7  ;;  %s2298_s27 = smov 88  }
  0x20   : >> { %2039 = vmatprep.subr.bf16.mxu0 %v2293_v6 }
  0x23   : >> { %2040 = vmatpush3.bf16.msra.mxu0 %v2197_v8  ;;  %s668_s25 = scalar_lea.vmem %s2698_s2, %s2290_s21  ;;  %s2303_s2 = smov 64  }
  0x24   : >> { %2051 = vmatprep.subr.bf16.mxu0 %v2293_v6  ;;  %v1945_v10 = vld [vmem:[%s668_s25] ss:$0 sm:$0xff]  ;;  %s2304_s25 = smov 48  }
  0x26   : >> { %2042 = vmatmul.mubr.msk.bf16.vlgmr.msra.gmra.mrb[0].mxu0 %vm688_vm2, %v660_v9 }
  0x27   : >> { %2053 = vmatprep.mubr.msk.bf16.mxu0 %vm2294_vm1, %v2293_v6 }
  0xf9   : >> { %v726_v11 = vpop.f32.mrb[0].mxu0 }
  0xfa   : >> { %v2043_v12 = vpop.f32.mrb[1].mxu0  ;;  %v727_v14 = vadd.f32 %v1945_v10, %v726_v11 }
  0xfb   : >> { %v729_v13 = vpop.f32.mrb[2].mxu0 }
  0xfc   : >> { %v730_v15 = vadd.f32 %v1945_v10, %v729_v13  ;;  %v2044_v16 = vpop.f32.mrb[3].mxu0 }
  0xfe   : >> { %v2485_v17 = vpack.c.bf16 %v730_v15, %v727_v14 }
 0x100   : >> { %862 = vrot.lane.b32.xlu1 %v2485_v17, %s2295_s22  ;;  %735 = vrot.lane.b32.xlu0 %v2485_v17, %s2296_s3  ;;  %s2305_s22 = smov 40   ;;  %s2306_s3 = smov 8  }
 0x104   : >> { %1000 = vrot.lane.b32.xlu1 %v2485_v17, %s2297_s26  ;;  %864 = vrot.lane.b32.xlu0 %v2485_v17, %s2298_s27  ;;  %s2307_s26 = smov 16   ;;  %s2308_s27 = smov 24  }
 0x108   : >> { %1136 = vrot.lane.b32.xlu1 %v2485_v17, %s2299_s29  ;;  %998 = vrot.lane.b32.xlu0 %v2485_v17, %s2300_s30  ;;  %s2699_s30 = sld [smem:[#allocation7_spill]] }
 0x10c   : >> { %1134 = vrot.lane.b32.xlu0 %v2485_v17, %s2301_s23 }
 0x10e   : >> { %s1279_s23 = scalar_lea.vmem %s2699_s30, %s2290_s21 }
 0x172   : >> { %v736_v18 = vpop.permute.xlu0 %735  ;;  %v863_v21 = vpop.permute.xlu1 %862 }
 0x173   : >> { %v742_v19 = vsel %vm737_vm3, %v736_v18, 0 }
 0x174   : >> { %2046 = vmatpush3.bf16.xpose.msra.mxu1 %v742_v19 }
 0x175   : >> { %2057 = vmatprep.subr.bf16.mxu1 %v2293_v6 }
 0x176   : >> { %v865_v20 = vpop.permute.xlu0 %864  ;;  %v1001_v23 = vpop.permute.xlu1 %1000 }
 0x177   : >> { %v870_v22 = vsel %vm737_vm3, %v865_v20, 0  ;;  %v1006_v24 = vsel %vm737_vm3, %v1001_v23, 0 }
 0x17a   : >> { %v1137_v25 = vpop.permute.xlu1 %1136  ;;  %v999_v26 = vpop.permute.xlu0 %998 }
 0x17b   : >> { %2048 = vmatmul.mubr.msk.bf16.vlgmr.msra.gmra.mrb[0].mxu1 %vm737_vm3, %v2485_v17  ;;  %v1142_v27 = vsel %vm737_vm3, %v1137_v25, 0 }
 0x17c   : >> { %2058 = vmatpush3.bf16.xpose.msra.mxu1 %v870_v22  ;;  %2059 = vmatprep.mubr.msk.bf16.mxu1 %vm2294_vm1, %v2293_v6 }
 0x17d   : >> { %2069 = vmatprep.subr.bf16.mxu1 %v2293_v6 }
 0x17e   : >> { %v1135_v28 = vpop.permute.xlu0 %1134 }
 0x183   : >> { %2060 = vmatmul.mubr.msk.bf16.vlgmr.msra.gmra.mrb[4].mxu1 %vm737_vm3, %v863_v21 }
 0x184   : >> { %2070 = vmatpush3.bf16.xpose.msra.mxu1 %v1006_v24  ;;  %2071 = vmatprep.mubr.msk.bf16.mxu1 %vm2294_vm1, %v2293_v6 }
 0x185   : >> { %2081 = vmatprep.subr.bf16.mxu1 %v2293_v6 }
 0x18b   : >> { %2072 = vmatmul.mubr.msk.bf16.vlgmr.msra.gmra.mrb[8].mxu1 %vm737_vm3, %v999_v26 }
 0x18c   : >> { %2082 = vmatpush3.bf16.xpose.msra.mxu1 %v1142_v27  ;;  %2083 = vmatprep.mubr.msk.bf16.mxu1 %vm2294_vm1, %v2293_v6 }
 0x18d   : >> { %2093 = vmatprep.subr.bf16.mxu1 %v2293_v6 }
 0x193   : >> { %2084 = vmatmul.mubr.msk.bf16.vlgmr.msra.gmra.mrb[12].mxu1 %vm737_vm3, %v1135_v28 }
 0x194   : >> { %2097 = vmatprep.mubr.msk.bf16.mxu1 %vm2294_vm1, %v2293_v6 }
 0x24e   : >> { %v778_v29 = vpop.f32.mrb[0].mxu1 }
 0x24f   : >> { %v785_v30 = vmul.f32 0.35355338, %v778_v29  ;;  %v2049_v31 = vpop.f32.mrb[1].mxu1 }
 0x250   : >> { %v781_v32 = vpop.f32.mrb[2].mxu1 }
 0x251   : >> { %v787_v33 = vadd.f32 %v785_v30, %v2432_v3  ;;  %v786_v34 = vmul.f32 0.35355338, %v781_v32  ;;  %v2050_v35 = vpop.f32.mrb[3].mxu1 }
 0x253   : >> { %v788_v36 = vadd.f32 %v786_v34, %v2432_v3  ;;  %v790_v37 = vsel %vm789_vm4, %v787_v33, -inf }
 0x254   : >> { %791 = vmax.xlane.f32.xlu1 %v790_v37 }
 0x255   : >> { %v793_v38 = vsel %vm789_vm4, %v788_v36, -inf }
 0x256   : >> { %794 = vmax.xlane.f32.xlu0 %v793_v38  ;;  %v906_v39 = vpop.f32.mrb[4].mxu1 }
 0x257   : >> { %v913_v40 = vmul.f32 0.35355338, %v906_v39  ;;  %v2061_v41 = vpop.f32.mrb[5].mxu1 }
 0x258   : >> { %v909_v42 = vpop.f32.mrb[6].mxu1 }
 0x259   : >> { %v915_v43 = vadd.f32 %v913_v40, %v2432_v3  ;;  %v914_v44 = vmul.f32 0.35355338, %v909_v42  ;;  %v2062_v45 = vpop.f32.mrb[7].mxu1 }
 0x25b   : >> { %v916_v46 = vadd.f32 %v914_v44, %v2432_v3  ;;  %v917_v47 = vsel %vm789_vm4, %v915_v43, -inf }
 0x25c   : >> { %918 = vmax.xlane.f32.xlu0 %v917_v47 }
 0x25d   : >> { %v920_v48 = vsel %vm789_vm4, %v916_v46, -inf }
 0x25e   : >> { %921 = vmax.xlane.f32.xlu1 %v920_v48  ;;  %v1042_v49 = vpop.f32.mrb[8].mxu1 }
 0x25f   : >> { %v1049_v50 = vmul.f32 0.35355338, %v1042_v49  ;;  %v2073_v51 = vpop.f32.mrb[9].mxu1 }
 0x260   : >> { %v1045_v52 = vpop.f32.mrb[10].mxu1 }
 0x261   : >> { %v1051_v53 = vadd.f32 %v1049_v50, %v2432_v3  ;;  %v1050_v54 = vmul.f32 0.35355338, %v1045_v52  ;;  %v2074_v55 = vpop.f32.mrb[11].mxu1 }
 0x263   : >> { %v1052_v56 = vadd.f32 %v1050_v54, %v2432_v3  ;;  %v1053_v57 = vsel %vm789_vm4, %v1051_v53, -inf }
 0x264   : >> { %1054 = vmax.xlane.f32.xlu0 %v1053_v57 }
 0x265   : >> { %v1056_v58 = vsel %vm789_vm4, %v1052_v56, -inf }
 0x266   : >> { %1057 = vmax.xlane.f32.xlu1 %v1056_v58  ;;  %v1178_v59 = vpop.f32.mrb[12].mxu1 }
 0x267   : >> { %v1185_v60 = vmul.f32 0.35355338, %v1178_v59  ;;  %v2085_v61 = vpop.f32.mrb[13].mxu1 }
 0x268   : >> { %v1181_v62 = vpop.f32.mrb[14].mxu1 }
 0x269   : >> { %v1187_v63 = vadd.f32 %v1185_v60, %v2432_v3  ;;  %v1186_v0 = vmul.f32 0.35355338, %v1181_v62  ;;  %v2086_v1 = vpop.f32.mrb[15].mxu1 }
 0x26b   : >> { %v1188_v2 = vadd.f32 %v1186_v0, %v2432_v3  ;;  %v1189_v7 = vsel %vm789_vm4, %v1187_v63, -inf }
 0x26c   : >> { %1190 = vmax.xlane.f32.xlu0 %v1189_v7 }
 0x26d   : >> { %v1192_v8 = vsel %vm789_vm4, %v1188_v2, -inf }
 0x26e   : >> { %1193 = vmax.xlane.f32.xlu1 %v1192_v8 }
 0x2e1   : >> { %v792_v9 = vpop.xlane.xlu1 %791 }
 0x2e2   : >> { %v796_v10 = vsub.f32 %v787_v33, %v792_v9 }
 0x2e3   : >> { %v795_v11 = vpop.xlane.xlu0 %794 }
 0x2e4   : >> { %v798_v12 = vmul.f32 1.442695, %v796_v10  ;;  %v797_v13 = vsub.f32 %v788_v36, %v795_v11 }
 0x2e6   : >> { %2206 = vpow2.f32 %v798_v12  ;;  %v800_v14 = vmul.f32 1.442695, %v797_v13 }
 0x2e8   : >> { %2208 = vpow2.f32 %v800_v14 }
 0x2e9   : >> { %v919_v15 = vpop.xlane.xlu0 %918 }
 0x2ea   : >> { %v923_v16 = vsub.f32 %v915_v43, %v919_v15 }
 0x2eb   : >> { %v922_v25 = vpop.xlane.xlu1 %921 }
 0x2ec   : >> { %v925_v18 = vmul.f32 1.442695, %v923_v16  ;;  %v924_v26 = vsub.f32 %v916_v46, %v922_v25 }
 0x2ee   : >> { %2210 = vpow2.f32 %v925_v18  ;;  %v927_v29 = vmul.f32 1.442695, %v924_v26 }
 0x2f0   : >> { %v2207_v19 = vpop.eup %2206  ;;  %2212 = vpow2.f32 %v927_v29 }
 0x2f1   : >> { %v802_v20 = vsel %vm789_vm4, %v2207_v19, 0.0  ;;  %v1055_v28 = vpop.xlane.xlu0 %1054 }
 0x2f2   : >> { %v2209_v21 = vpop.eup %2208  ;;  %803 = vadd.xlane.f32.xlu0 %v802_v20  ;;  %v1059_v32 = vsub.f32 %v1051_v53, %v1055_v28 }
 0x2f3   : >> { %v805_v22 = vsel %vm789_vm4, %v2209_v21, 0.0  ;;  %v1058_v27 = vpop.xlane.xlu1 %1057 }
 0x2f4   : >> { %806 = vadd.xlane.f32.xlu1 %v805_v22  ;;  %v1060_v30 = vsub.f32 %v1052_v56, %v1058_v27  ;;  %v1061_v36 = vmul.f32 1.442695, %v1059_v32  ;;  %v2199_v32 = vld [vmem:[%s2467_s28 + $0x8] sm:$0xff]  }
 0x2f6   : >> { %v1063_v34 = vmul.f32 1.442695, %v1060_v30  ;;  %v2198_v30 = vld [vmem:[%s2467_s28] sm:$0xff]  }
 0x2f7   : >> { %2094 = vmatpush3.bf16.msra.mxu1 %v2198_v30 }
 0x2f8   : >> { %v2533_v23 = vpop.eup %2210  ;;  %2214 = vpow2.f32 %v1063_v34  ;;  %2095 = vmatprep.subr.bf16.mxu1 %v2293_v6 }
 0x2f9   : >> { %v929_v24 = vsel %vm789_vm4, %v2533_v23, 0.0  ;;  %v1191_v33 = vpop.xlane.xlu0 %1190  ;;  %2216 = vpow2.f32 %v1061_v36 }
 0x2fa   : >> { %930 = vadd.xlane.f32.xlu0 %v929_v24  ;;  %v1195_v37 = vsub.f32 %v1187_v63, %v1191_v33  ;;  %v2213_v40 = vpop.eup %2212 }
 0x2fb   : >> { %v1194_v31 = vpop.xlane.xlu1 %1193  ;;  %v932_v41 = vsel %vm789_vm4, %v2213_v40, 0.0  ;;  %2096 = vmatpush3.bf16.msra.mxu1 %v2199_v32 }
 0x2fc   : >> { %v1196_v35 = vsub.f32 %v1188_v2, %v1194_v31  ;;  %v1197_v39 = vmul.f32 1.442695, %v1195_v37  ;;  %2109 = vmatprep.subr.bf16.mxu1 %v2293_v6 }
 0x2fe   : >> { %v1199_v38 = vmul.f32 1.442695, %v1196_v35 }
 0x300   : >> { %2218 = vpow2.f32 %v1199_v38 }
 0x301   : >> { %2220 = vpow2.f32 %v1197_v39 }
 0x302   : >> { %v2215_v42 = vpop.eup %2214 }
 0x303   : >> { %v2217_v43 = vpop.eup %2216  ;;  %v1068_v44 = vsel %vm789_vm4, %v2215_v42, 0.0 }
 0x304   : >> { %v1065_v46 = vsel %vm789_vm4, %v2217_v43, 0.0 }
 0x305   : >> { %940 = vrot.lane.b32.xlu1 %v2485_v17, %s2302_s24  ;;  %s1399_s24 = scalar_lea.vmem %s2675_s8, %s2290_s21 }
 0x30a   : >> { %v2541_v45 = vpop.eup %2218 }
 0x30b   : >> { %v2221_v47 = vpop.eup %2220  ;;  %v1204_v48 = vsel %vm789_vm4, %v2541_v45, 0.0 }
 0x30c   : >> { %v1201_v49 = vsel %vm789_vm4, %v2221_v47, 0.0 }
 0x310   : >> { %813 = vrot.lane.b32.xlu0 %v2485_v17, %s2303_s2 }
 0x329   : >> { %933 = vadd.xlane.f32.xlu1 %v932_v41 }
 0x32d   : >> { %1069 = vadd.xlane.f32.xlu1 %v1068_v44 }
 0x32f   : >> { %1066 = vadd.xlane.f32.xlu0 %v1065_v46 }
 0x331   : >> { %1205 = vadd.xlane.f32.xlu1 %v1204_v48 }
 0x333   : >> { %1202 = vadd.xlane.f32.xlu0 %v1201_v49  ;;  %v1958_v49 = vld [vmem:[%s1279_s23] ss:$0 sm:$0xff] }
 0x342   : >> { %1076 = vrot.lane.b32.xlu1 %v2485_v17, %s2304_s25  ;;  %s1345_s25 = scalar_lea.vmem %s2672_s5, %s2290_s21 }
 0x349   : >> { %1212 = vrot.lane.b32.xlu0 %v2485_v17, %s2305_s22 }
 0x37f   : >> { %v804_v50 = vpop.xlane.xlu0 %803 }
 0x380   : >> { %2222 = vrcp.f32 %v804_v50 }
 0x381   : >> { %v807_v51 = vpop.xlane.xlu1 %806 }
 0x382   : >> { %2224 = vrcp.f32 %v807_v51 }
 0x385   : >> { %v941_v59 = vpop.permute.xlu1 %940 }
 0x387   : >> { %v931_v52 = vpop.xlane.xlu0 %930 }
 0x388   : >> { %2226 = vrcp.f32 %v931_v52 }
 0x38a   : >> { %v2223_v53 = vpop.eup %2222 }
 0x38b   : >> { %v814_v54 = vpop.permute.xlu0 %813  ;;  %v809_v56 = vmul.f32 %v2223_v53, %v2207_v19 }
 0x38c   : >> { %v2225_v55 = vpop.eup %2224  ;;  %2052 = vmatpush3.bf16.msra.mxu0 %v814_v54 }
 0x38d   : >> { %v811_v57 = vmul.f32 %v2225_v55, %v2209_v21  ;;  %2063 = vmatprep.subr.bf16.mxu0 %v2293_v6 }
 0x38f   : >> { %v812_v58 = vpack.c.bf16 %v811_v57, %v809_v56 }
 0x391   : >> { %2054 = vmatmul.mubr.msk.bf16.vlgmr.msra.gmra.mrb[4].mxu0 %vm789_vm4, %v812_v58 }
 0x392   : >> { %2064 = vmatpush3.bf16.msra.mxu0 %v941_v59  ;;  %2065 = vmatprep.mubr.msk.bf16.mxu0 %vm2294_vm1, %v2293_v6  ;;  %v2227_v62 = vpop.eup %2226 }
 0x393   : >> { %2075 = vmatprep.subr.bf16.mxu0 %v2293_v6  ;;  %v936_v2 = vmul.f32 %v2227_v62, %v2533_v23 }
 0x3b6   : >> { %v934_v17 = vpop.xlane.xlu1 %933 }
 0x3b7   : >> { %2228 = vrcp.f32 %v934_v17 }
 0x3ba   : >> { %v1070_v60 = vpop.xlane.xlu1 %1069 }
 0x3bb   : >> { %2230 = vrcp.f32 %v1070_v60 }
 0x3bc   : >> { %v1067_v61 = vpop.xlane.xlu0 %1066 }
 0x3bd   : >> { %2232 = vrcp.f32 %v1067_v61 }
 0x3be   : >> { %v1206_v63 = vpop.xlane.xlu1 %1205 }
 0x3c0   : >> { %v1203_v0 = vpop.xlane.xlu0 %1202 }
 0x3c1   : >> { %v2229_v1 = vpop.eup %2228  ;;  %2234 = vrcp.f32 %v1203_v0 }
 0x3c2   : >> { %v938_v7 = vmul.f32 %v2229_v1, %v2213_v40  ;;  %2236 = vrcp.f32 %v1206_v63  ;;  %v1077_v10 = vpop.permute.xlu1 %1076 }
 0x3c4   : >> { %v939_v8 = vpack.c.bf16 %v938_v7, %v936_v2  ;;  %v1213_v16 = vpop.permute.xlu0 %1212  ;;  %v2200_v7 = vld [vmem:[%s2472_s19] sm:$0xff]  }
 0x3c5   : >> { %v2231_v9 = vpop.eup %2230 }
 0x3c6   : >> { %2066 = vmatmul.mubr.msk.bf16.vlgmr.msra.gmra.mrb[8].mxu0 %vm789_vm4, %v939_v8  ;;  %v1074_v13 = vmul.f32 %v2231_v9, %v2215_v42  ;;  %v2201_v8 = vld [vmem:[%s2472_s19 + $0x8] sm:$0xff]   ;;  %s1493_s19 = scalar_lea.vmem %s2677_s10, %s2290_s21 }
 0x3c7   : >> { %v2233_v11 = vpop.eup %2232  ;;  %2076 = vmatpush3.bf16.msra.mxu0 %v1077_v10  ;;  %2077 = vmatprep.mubr.msk.bf16.mxu0 %vm2294_vm1, %v2293_v6 }
 0x3c8   : >> { %v1072_v12 = vmul.f32 %v2233_v11, %v2217_v43  ;;  %2087 = vmatprep.subr.bf16.mxu0 %v2293_v6 }
 0x3ca   : >> { %v1075_v14 = vpack.c.bf16 %v1074_v13, %v1072_v12 }
 0x3cb   : >> { %v2235_v15 = vpop.eup %2234 }
 0x3cc   : >> { %v2237_v18 = vpop.eup %2236  ;;  %v1208_v19 = vmul.f32 %v2235_v15, %v2221_v47 }
 0x3cd   : >> { %v1210_v20 = vmul.f32 %v2237_v18, %v2541_v45 }
 0x3ce   : >> { %2078 = vmatmul.mubr.msk.bf16.vlgmr.msra.gmra.mrb[12].mxu0 %vm789_vm4, %v1075_v14 }
 0x3cf   : >> { %2088 = vmatpush3.bf16.msra.mxu0 %v1213_v16  ;;  %2089 = vmatprep.mubr.msk.bf16.mxu0 %vm2294_vm1, %v2293_v6  ;;  %v1211_v21 = vpack.c.bf16 %v1210_v20, %v1208_v19  ;;  %v1962_v16 = vld [vmem:[%s1345_s25] ss:$0 sm:$0xff] }
 0x3d0   : >> { %2101 = vmatprep.subr.bf16.mxu0 %v2293_v6 }
 0x3d6   : >> { %2090 = vmatmul.mubr.msk.bf16.vlgmr.msra.gmra.mrb[16].mxu0 %vm789_vm4, %v1211_v21 }
 0x3d7   : >> { %2105 = vmatprep.mubr.msk.bf16.mxu0 %vm2294_vm1, %v2293_v6  ;;  %2102 = vmatpush3.bf16.msra.mxu0 %v2200_v7 }
 0x3d8   : >> { %2103 = vmatprep.subr.bf16.mxu0 %v2293_v6 }
 0x3db   : >> { %2104 = vmatpush3.bf16.msra.mxu0 %v2201_v8 }
 0x464   : >> { %v853_v22 = vpop.f32.mrb[4].mxu0 }
 0x465   : >> { %860 = vst.msk [vmem:[#allocation2] sm:$0xff] %vm737_vm3, %v853_v22  ;;  %v2055_v23 = vpop.f32.mrb[5].mxu0 }
 0x466   : >> { %v856_v24 = vpop.f32.mrb[6].mxu0 }
 0x467   : >> { %861 = vst.msk [vmem:[#allocation2 + $0x8] sm:$0xff] %vm737_vm3, %v856_v24  ;;  %v2056_v25 = vpop.f32.mrb[7].mxu0 }
 0x499   : >> { %v980_v26 = vpop.f32.mrb[8].mxu0 }
 0x49a   : >> { %989 = vrot.lane.b32.xlu1 %v980_v26, %s2306_s3  ;;  %v2067_v27 = vpop.f32.mrb[9].mxu0 }
 0x49b   : >> { %v983_v28 = vpop.f32.mrb[10].mxu0 }
 0x49c   : >> { %991 = vrot.lane.b32.xlu0 %v983_v28, %s2306_s3  ;;  %v2068_v29 = vpop.f32.mrb[11].mxu0  ;;  %s1347_s3 = scalar_lea.vmem %s2673_s6, %s2290_s21 }
 0x49d   : >> { %v1963_v22 = vld [vmem:[%s1347_s3] ss:$0 sm:$0xff] }
 0x4a1   : >> { %v1116_v31 = vpop.f32.mrb[12].mxu0 }
 0x4a2   : >> { %1125 = vrot.lane.b32.xlu1 %v1116_v31, %s2307_s26  ;;  %v2079_v33 = vpop.f32.mrb[13].mxu0  ;;  %v1965_v31 = vld [vmem:[%s1399_s24] ss:$0 sm:$0xff] }
 0x4a3   : >> { %v1119_v34 = vpop.f32.mrb[14].mxu0 }
 0x4a4   : >> { %1127 = vrot.lane.b32.xlu0 %v1119_v34, %s2307_s26  ;;  %v2080_v35 = vpop.f32.mrb[15].mxu0  ;;  %s1997_s26 = sshll.u32 %s2290_s21, 5 }
 0x4a5   : >> { %s1484_s29 = scalar_lea.vmem %s2676_s9, %s1997_s26  ;;  %s1572_s26 = scalar_lea.vmem %s2678_s11, %s2290_s21 }
 0x4a6   : >> { %v2202_v27 = vld [vmem:[%s1484_s29] sm:$0xff]   ;;  %v2203_v28 = vld [vmem:[%s1484_s29 + $0x8] sm:$0xff]   ;;  %v2204_v29 = vld [vmem:[%s1484_s29 + $0x10] sm:$0xff]  }
 0x4a7   : >> { %v2205_v30 = vld [vmem:[%s1484_s29 + $0x18] sm:$0xff]   ;;  %s1574_s29 = scalar_lea.vmem %s2679_s12, %s2290_s21  ;;  %s657_s21 = sadd.s32 1, %s2290_s21  }
 0x4a8   : >> { %p654_p4 = scmp.ge.s32.totalorder %s657_s21, 2  }
 0x4a9   : >> { %v1252_v36 = vpop.f32.mrb[16].mxu0  ;;  %vm2310_vm9 = vmmov (%p654_p4), 0   ;;  %v2252_v3 = vld [vmem:[%s2682_s15] sm:$0xff] (%p654_p4)   ;;  %vm1840_vm10 = vcmask (%p654_p4), 72704  }
 0x4aa   : >> { %1261 = vrot.lane.b32.xlu1 %v1252_v36, %s2308_s27  ;;  %v2091_v37 = vpop.f32.mrb[17].mxu0 }
 0x4ab   : >> { %v1255_v38 = vpop.f32.mrb[18].mxu0 }
 0x4ac   : >> { %1263 = vrot.lane.b32.xlu0 %v1255_v38, %s2308_s27  ;;  %v2092_v39 = vpop.f32.mrb[19].mxu0 }
 0x50c   : >> { %v990_v40 = vpop.permute.xlu1 %989 }
 0x50d   : >> { %996 = vst.msk [vmem:[#allocation2] sm:$0xff] %vm995_vm5, %v990_v40 }
 0x50e   : >> { %v992_v41 = vpop.permute.xlu0 %991 }
 0x50f   : >> { %997 = vst.msk [vmem:[#allocation2 + $0x8] sm:$0xff] %vm995_vm5, %v992_v41 }
 0x514   : >> { %v1126_v42 = vpop.permute.xlu1 %1125 }
 0x515   : >> { %1132 = vst.msk [vmem:[#allocation2] sm:$0xff] %vm1131_vm6, %v1126_v42 }
 0x516   : >> { %v1128_v43 = vpop.permute.xlu0 %1127 }
 0x517   : >> { %1133 = vst.msk [vmem:[#allocation2 + $0x8] sm:$0xff] %vm1131_vm6, %v1128_v43 }
 0x51c   : >> { %v1262_v44 = vpop.permute.xlu1 %1261 }
 0x51d   : >> { %1268 = vst.msk [vmem:[#allocation2] sm:$0xff] %vm1267_vm7, %v1262_v44 }
 0x51e   : >> { %v1264_v45 = vpop.permute.xlu0 %1263 }
 0x51f   : >> { %1269 = vst.msk [vmem:[#allocation2 + $0x8] sm:$0xff] %vm1267_vm7, %v1264_v45 }
 0x524   : >> { %v1270_v46 = vld [vmem:[#allocation2] sm:$0xff] }
 0x526   : >> { %v1271_v47 = vld [vmem:[#allocation2 + $0x8] sm:$0xff] }
 0x527   : >> { %v1272_v48 = vpack.c.bf16 %v1271_v47, %v1270_v46 }
 0x529   : >> { %2098 = vmatmul.mubr.msk.bf16.vlgmr.msra.gmra.mrb[16].mxu1 %vm688_vm2, %v1272_v48 }
 0x52a   : >> { %2117 = vmatprep.mubr.msk.bf16.mxu1 %vm2294_vm1, %v2293_v6  ;;  %2110 = vmatpush3.bf16.msra.mxu1 %v2202_v27 }
 0x52b   : >> { %2111 = vmatprep.subr.bf16.mxu1 %v2293_v6 }
 0x52e   : >> { %2112 = vmatpush3.bf16.msra.mxu1 %v2203_v28 }
 0x52f   : >> { %2113 = vmatprep.subr.bf16.mxu1 %v2293_v6 }
 0x532   : >> { %2114 = vmatpush3.bf16.msra.mxu1 %v2204_v29 }
 0x533   : >> { %2115 = vmatprep.subr.bf16.mxu1 %v2293_v6 }
 0x536   : >> { %2116 = vmatpush3.bf16.msra.mxu1 %v2205_v30  ;;  %v2250_v30 = vld [vmem:[%s2680_s13] sm:$0xff] (%p654_p4)  }
 0x5fc   : >> { %v1336_v50 = vpop.f32.mrb[16].mxu1 }
 0x5fd   : >> { %v1337_v51 = vadd.f32 %v1958_v49, %v1336_v50  ;;  %v2099_v52 = vpop.f32.mrb[17].mxu1 }
 0x5fe   : >> { %v1339_v53 = vpop.f32.mrb[18].mxu1 }
 0x5ff   : >> { %v1340_v54 = vadd.f32 %v1958_v49, %v1339_v53  ;;  %v2100_v55 = vpop.f32.mrb[19].mxu1  ;;  %v1343_v56 = vadd.f32 %v2286_v4, %v1337_v51 }
 0x601   : >> { %v1349_v57 = vsel %vm688_vm2, %v1343_v56, 0.0  ;;  %v1344_v58 = vadd.f32 %v2282_v5, %v1340_v54 }
 0x602   : >> { %1350 = vadd.xlane.f32.xlu1 %v1349_v57 }
 0x603   : >> { %v1352_v59 = vsel %vm688_vm2, %v1344_v58, 0.0 }
 0x604   : >> { %1353 = vadd.xlane.f32.xlu0 %v1352_v59 }
 0x68f   : >> { %v1351_v17 = vpop.xlane.xlu1 %1350 }
 0x690   : >> { %v1356_v60 = vmul.f32 0.03125, %v1351_v17 }
 0x691   : >> { %v1354_v61 = vpop.xlane.xlu0 %1353 }
 0x692   : >> { %v1358_v62 = vsub.f32 %v1343_v56, %v1356_v60  ;;  %v1357_v63 = vmul.f32 0.03125, %v1354_v61  ;;  %v1971_v56 = vld [vmem:[%s1493_s19] ss:$0 sm:$0xff] }
 0x694   : >> { %v1359_v0 = vsub.f32 %v1344_v58, %v1357_v63  ;;  %v1360_v1 = vmul.f32 %v1358_v62, %v1358_v62 }
 0x696   : >> { %v1362_v2 = vsel %vm688_vm2, %v1360_v1, 0.0  ;;  %v1361_v4 = vmul.f32 %v1359_v0, %v1359_v0 }
 0x697   : >> { %1363 = vadd.xlane.f32.xlu0 %v1362_v2 }
 0x698   : >> { %v1365_v5 = vsel %vm688_vm2, %v1361_v4, 0.0 }
 0x699   : >> { %1366 = vadd.xlane.f32.xlu1 %v1365_v5 }
 0x724   : >> { %v1364_v9 = vpop.xlane.xlu0 %1363 }
 0x725   : >> { %v1368_v10 = vmul.f32 0.03125, %v1364_v9 }
 0x726   : >> { %v1367_v11 = vpop.xlane.xlu1 %1366 }
 0x727   : >> { %v1370_v12 = vadd.f32 1e-05, %v1368_v10  ;;  %v1369_v13 = vmul.f32 0.03125, %v1367_v11 }
 0x729   : >> { %2238 = vrsqrt.f32 %v1370_v12  ;;  %v1371_v14 = vadd.f32 1e-05, %v1369_v13 }
 0x72b   : >> { %2240 = vrsqrt.f32 %v1371_v14 }
 0x733   : >> { %v2239_v15 = vpop.eup %2238 }
 0x734   : >> { %v1374_v18 = vmul.f32 %v2239_v15, %v1358_v62 }
 0x735   : >> { %v2241_v19 = vpop.eup %2240 }
 0x736   : >> { %v1382_v20 = vmul.f32 %v1962_v16, %v1374_v18  ;;  %v1375_v21 = vmul.f32 %v2241_v19, %v1359_v0 }
 0x738   : >> { %v1383_v23 = vmul.f32 %v1962_v16, %v1375_v21  ;;  %v1390_v24 = vadd.f32 %v1963_v22, %v1382_v20 }
 0x73a   : >> { %v1391_v25 = vadd.f32 %v1963_v22, %v1383_v23  ;;  %v1977_v22 = vld [vmem:[%s1572_s26] ss:$0 sm:$0xff] }
 0x73c   : >> { %v1392_v26 = vpack.c.bf16 %v1391_v25, %v1390_v24 }
 0x73e   : >> { %2106 = vmatmul.mubr.msk.bf16.vlgmr.msra.gmra.mrb[20].mxu0 %vm688_vm2, %v1392_v26 }
 0x811   : >> { %v1456_v32 = vpop.f32.mrb[20].mxu0 }
 0x812   : >> { %v1457_v33 = vadd.f32 %v1965_v31, %v1456_v32  ;;  %v2107_v34 = vpop.f32.mrb[21].mxu0  ;;  %v2251_v32 = vld [vmem:[%s2680_s13 + $0x8] sm:$0xff] (%p654_p4)  }
 0x813   : >> { %v1459_v35 = vpop.f32.mrb[22].mxu0  ;;  %v2253_v34 = vld [vmem:[%s2682_s15 + $0x8] sm:$0xff] (%p654_p4)  }
 0x814   : >> { %v1463_v36 = vmul.f32 %v1457_v33, %v1457_v33  ;;  %v1460_v37 = vadd.f32 %v1965_v31, %v1459_v35  ;;  %v2108_v38 = vpop.f32.mrb[23].mxu0  ;;  %v2309_v31 = vmov (%p654_p4), 0.0   ;;  %v1979_v35 = vld [vmem:[%s2681_s14] ss:$0 sm:$0xff] (%p654_p4) }
 0x815   : > { %2121 = vmatprep.subr.bf16.mxu0 (%p654_p4), %v2309_v31  ;;  %2129 = vmatprep.subr.bf16.mxu1 (%p654_p4), %v2309_v31 }
 0x816   : >> { %v1465_v39 = vmul.f32 %v1463_v36, %v1457_v33  ;;  %v1464_v40 = vmul.f32 %v1460_v37, %v1460_v37  ;;  %2122 = vmatpush3.bf16.msra.mxu0 (%p654_p4), %v2250_v30  ;;  %2125 = vmatprep.mubr.msk.bf16.mxu0 (%p654_p4), %vm2310_vm9, %v2309_v31 }
 0x817   : > { %2123 = vmatprep.subr.bf16.mxu0 (%p654_p4), %v2309_v31 }
 0x818   : >> { %v1467_v41 = vmul.f32 0.044715, %v1465_v39  ;;  %v1466_v42 = vmul.f32 %v1464_v40, %v1460_v37 }
 0x81a   : >> { %v1469_v43 = vadd.f32 %v1467_v41, %v1457_v33  ;;  %v1468_v6 = vmul.f32 0.044715, %v1466_v42  ;;  %2124 = vmatpush3.bf16.msra.mxu0 (%p654_p4), %v2251_v32 }
 0x81b   : > { %2137 = vmatprep.subr.bf16.mxu0 (%p654_p4), %v2309_v31 }
 0x81c   : >> { %v1471_v44 = vmul.f32 0.7978846, %v1469_v43  ;;  %v1470_v45 = vadd.f32 %v1468_v6, %v1460_v37 }
 0x81e   : >> { %2242 = vtanh.f32 %v1471_v44  ;;  %v1472_v46 = vmul.f32 0.7978846, %v1470_v45 }
 0x820   : >> { %2244 = vtanh.f32 %v1472_v46 }
 0x828   : >> { %v2243_v47 = vpop.eup %2242 }
 0x829   : >> { %v1475_v48 = vadd.f32 1.0, %v2243_v47 }
 0x82a   : >> { %v2245_v49 = vpop.eup %2244 }
 0x82b   : >> { %v1477_v50 = vmul.f32 0.5, %v1475_v48  ;;  %v1476_v51 = vadd.f32 1.0, %v2245_v49 }
 0x82d   : >> { %v1478_v52 = vmul.f32 0.5, %v1476_v51  ;;  %v1479_v53 = vmul.f32 %v1477_v50, %v1457_v33  ;;  %v2254_v50 = vld [vmem:[%s2684_s17] sm:$0xff] (%p654_p4)   ;;  %v2255_v51 = vld [vmem:[%s2684_s17 + $0x8] sm:$0xff] (%p654_p4)  }
 0x82f   : >> { %v1480_v54 = vmul.f32 %v1478_v52, %v1460_v37  ;;  %v1983_v52 = vld [vmem:[%s2683_s16] ss:$0 sm:$0xff] (%p654_p4) }
 0x831   : >> { %v1481_v55 = vpack.c.bf16 %v1480_v54, %v1479_v53 }
 0x833   : >> { %2118 = vmatmul.mubr.msk.bf16.vlgmr.msra.gmra.mrb[20].mxu1 %vm1525_vm8, %v1481_v55 }
 0x834   : > { %2133 = vmatprep.mubr.msk.bf16.mxu1 (%p654_p4), %vm2310_vm9, %v2309_v31  ;;  %2130 = vmatpush3.bf16.msra.mxu1 (%p654_p4), %v2252_v3 }
 0x835   : > { %2131 = vmatprep.subr.bf16.mxu1 (%p654_p4), %v2309_v31 }
 0x838   : > { %2132 = vmatpush3.bf16.msra.mxu1 (%p654_p4), %v2253_v34 }
 0x906   : >> { %v1563_v57 = vpop.f32.mrb[20].mxu1 }
 0x907   : >> { %v1564_v58 = vadd.f32 %v1971_v56, %v1563_v57  ;;  %v2119_v59 = vpop.f32.mrb[21].mxu1 }
 0x908   : >> { %v1566_v17 = vpop.f32.mrb[22].mxu1 }
 0x909   : >> { %v1567_v60 = vadd.f32 %v1971_v56, %v1566_v17  ;;  %v2120_v61 = vpop.f32.mrb[23].mxu1  ;;  %v1570_v62 = vadd.f32 %v1564_v58, %v1390_v24 }
 0x90b   : >> { %v1576_v63 = vsel %vm688_vm2, %v1570_v62, 0.0  ;;  %v1571_v0 = vadd.f32 %v1567_v60, %v1391_v25  ;;  %v1978_v25 = vld [vmem:[%s1574_s29] ss:$0 sm:$0xff] }
 0x90c   : >> { %1577 = vadd.xlane.f32.xlu0 %v1576_v63 }
 0x90d   : >> { %v1579_v1 = vsel %vm688_vm2, %v1571_v0, 0.0 }
 0x90e   : >> { %1580 = vadd.xlane.f32.xlu1 %v1579_v1 }
 0x999   : >> { %v1578_v2 = vpop.xlane.xlu0 %1577 }
 0x99a   : >> { %v1582_v4 = vmul.f32 0.03125, %v1578_v2 }
 0x99b   : >> { %v1581_v5 = vpop.xlane.xlu1 %1580 }
 0x99c   : >> { %v1584_v7 = vsub.f32 %v1570_v62, %v1582_v4  ;;  %v1583_v8 = vmul.f32 0.03125, %v1581_v5 }
 0x99e   : >> { %v1585_v9 = vsub.f32 %v1571_v0, %v1583_v8  ;;  %v1586_v10 = vmul.f32 %v1584_v7, %v1584_v7 }
 0x9a0   : >> { %v1588_v11 = vsel %vm688_vm2, %v1586_v10, 0.0  ;;  %v1587_v12 = vmul.f32 %v1585_v9, %v1585_v9 }
 0x9a1   : >> { %1589 = vadd.xlane.f32.xlu0 %v1588_v11 }
 0x9a2   : >> { %v1591_v13 = vsel %vm688_vm2, %v1587_v12, 0.0 }
 0x9a3   : >> { %1592 = vadd.xlane.f32.xlu1 %v1591_v13 }
 0xa2e   : >> { %v1590_v14 = vpop.xlane.xlu0 %1589 }
 0xa2f   : >> { %v1594_v15 = vmul.f32 0.03125, %v1590_v14 }
 0xa30   : >> { %v1593_v16 = vpop.xlane.xlu1 %1592 }
 0xa31   : >> { %v1596_v18 = vadd.f32 1e-05, %v1594_v15  ;;  %v1595_v19 = vmul.f32 0.03125, %v1593_v16 }
 0xa33   : >> { %2246 = vrsqrt.f32 %v1596_v18  ;;  %v1597_v20 = vadd.f32 1e-05, %v1595_v19 }
 0xa35   : >> { %2248 = vrsqrt.f32 %v1597_v20 }
 0xa3d   : >> { %v2247_v21 = vpop.eup %2246 }
 0xa3e   : >> { %v1600_v23 = vmul.f32 %v2247_v21, %v1584_v7  ;;  %656 = sbr.rel (!%p654_p4) target bundleno = 23 (0x17), region = 152  ;;  %v1838_v7 = vld [vmem:[%s2430_s4] sm:$0xff] (%p654_p4) }
 0xa3f   : >> { %v2249_v24 = vpop.eup %2248 }
 0xa40   : >> { %v1608_v26 = vmul.f32 %v1977_v22, %v1600_v23  ;;  %v1601_v27 = vmul.f32 %v2249_v24, %v1585_v9 }
 0xa42   : >> { %v1616_v28 = vadd.f32 %v1978_v25, %v1608_v26   ;;  %v1609_v29 = vmul.f32 %v1977_v22, %v1601_v27 }
 0xa44   : >> { %v1617_v5 = vadd.f32 %v1978_v25, %v1609_v29   ;;  %v2700_v4 = vmov %v1616_v28  ;;  %v1618_v33 = vpack.c.bf16 (%p654_p4), %v1616_v28, %v1616_v28 }
 0xa45   : > { %v1987_v4 = vld [vmem:[%s2685_s18] ss:$0 sm:$0xff] }
 0xa46   : > { %2126 = vmatmul.mubr.msk.bf16.vlgmr.msra.gmra.mrb[0].mxu0 %vm688_vm2, %v1618_v33 }
 0xa47   : > { %2141 = vmatprep.mubr.msk.bf16.mxu0 %vm2310_vm9, %v2309_v31  ;;  %2138 = vmatpush3.bf16.msra.mxu0 %v2254_v50 }
 0xa48   : > { %2139 = vmatprep.subr.bf16.mxu0 %v2309_v31 }
 0xa4b   : > { %2140 = vmatpush3.bf16.msra.mxu0 %v2255_v51 }
 0xb19   : > { %v1680_v36 = vpop.f32.mrb[0].mxu0 }
 0xb1a   : > { %v1681_v37 = vadd.f32 %v1979_v35, %v1680_v36  ;;  %v2127_v38 = vpop.f32.mrb[1].mxu0 }
 0xb1b   : > { %v1683_v39 = vpop.f32.mrb[2].mxu0 }
 0xb1c   : > { %v1686_v40 = vmul.f32 %v1681_v37, %v1681_v37  ;;  %v2128_v41 = vpop.f32.mrb[3].mxu0 }
 0xb1e   : > { %v1687_v42 = vmul.f32 %v1686_v40, %v1681_v37 }
 0xb20   : > { %v1688_v43 = vmul.f32 0.044715, %v1687_v42 }
 0xb22   : > { %v1689_v6 = vadd.f32 %v1688_v43, %v1681_v37 }
 0xb24   : > { %v1690_v44 = vmul.f32 0.7978846, %v1689_v6 }
 0xb26   : > { %2256 = vtanh.f32 %v1690_v44 }
 0xb30   : > { %v2257_v45 = vpop.eup %2256 }
 0xb31   : > { %v1692_v46 = vadd.f32 1.0, %v2257_v45 }
 0xb33   : > { %v1693_v47 = vmul.f32 0.5, %v1692_v46 }
 0xb35   : > { %v1694_v48 = vmul.f32 %v1693_v47, %v1681_v37 }
 0xb37   : > { %v1695_v49 = vpack.c.bf16 %v1694_v48, %v1694_v48 }
 0xb39   : > { %2134 = vmatmul.mubr.msk.bf16.vlgmr.msra.gmra.mrb[0].mxu1 %vm688_vm2, %v1695_v49 }
 0xc0c   : > { %v1756_v53 = vpop.f32.mrb[0].mxu1 }
 0xc0d   : > { %v1757_v54 = vadd.f32 %v1983_v52, %v1756_v53  ;;  %v2135_v55 = vpop.f32.mrb[1].mxu1 }
 0xc0e   : > { %v1759_v56 = vpop.f32.mrb[2].mxu1 }
 0xc0f   : > { %v1762_v57 = vmul.f32 %v1757_v54, %v1757_v54  ;;  %v2136_v58 = vpop.f32.mrb[3].mxu1 }
 0xc11   : > { %v1763_v59 = vmul.f32 %v1762_v57, %v1757_v54 }
 0xc13   : > { %v1764_v17 = vmul.f32 0.044715, %v1763_v59 }
 0xc15   : > { %v1765_v60 = vadd.f32 %v1764_v17, %v1757_v54 }
 0xc17   : > { %v1766_v61 = vmul.f32 0.7978846, %v1765_v60 }
 0xc19   : > { %2258 = vtanh.f32 %v1766_v61 }
 0xc23   : > { %v2259_v62 = vpop.eup %2258 }
 0xc24   : > { %v1768_v63 = vadd.f32 1.0, %v2259_v62 }
 0xc26   : > { %v1769_v0 = vmul.f32 0.5, %v1768_v63 }
 0xc28   : > { %v1770_v1 = vmul.f32 %v1769_v0, %v1757_v54 }
 0xc2a   : > { %v1771_v2 = vpack.c.bf16 %v1770_v1, %v1770_v1 }
 0xc2c   : > { %2142 = vmatmul.mubr.msk.bf16.vlgmr.msra.gmra.mrb[4].mxu0 %vm688_vm2, %v1771_v2 }
 0xcff   : > { %v1832_v5 = vpop.f32.mrb[4].mxu0 }
 0xd00   : > { %v1833_v8 = vadd.f32 %v1987_v4, %v1832_v5  ;;  %v2143_v9 = vpop.f32.mrb[5].mxu0 }
 0xd01   : > { %v1835_v10 = vpop.f32.mrb[6].mxu0 }
 0xd02   : > { %v1839_v11 = vadd.f32 %v1838_v7, %v1833_v8  ;;  %v2144_v12 = vpop.f32.mrb[7].mxu0 }
 0xd04   : > { %1841 = vst.msk [vmem:[%s2437_s0] sm:$0xff] %vm1840_vm10, %v1839_v11 }
 0xd05 PF: > { %s30_s1 = sadd.s32 1, %s2278_s1  }
 0xd06   : > { %p27_p5 = scmp.ge.s32.totalorder %s30_s1, 4  }
 0xd08   :  { %29 = sbr.rel (!%p27_p5) target bundleno = 7 (0x7), region = 163 }

</bundles_post_ra>
